<compile_context>
chip_gen: v7x
topology: tpu7x:2x2x1
jax: 0.10.0
libtpu: 0.0.40
codegen_flags: <defaults>
</compile_context>

<pallas_src>
import functools

import jax
import jax.numpy as jnp
from jax import lax
from jax.experimental import pallas as pl
from jax.experimental.pallas import tpu as pltpu

BN_EPS = 1e-5
VMEM_LIMIT_BYTES = 32 * 1024 * 1024   # safe on v5e/v6e/v7x; actual usage is far below


# ------------------------------ small helpers ------------------------------- #

def _round_up(x, m):
    return (x + m - 1) // m * m


def _pick_tile(padded, max_tile):
    """Largest multiple-of-128 tile <= max_tile that divides `padded` (padded % 128 == 0)."""
    t = min(padded, max_tile)
    t = max(128, (t // 128) * 128)
    while padded % t:
        t -= 128
    return t


def _fold_bn(bn):
    inv = 1.0 / jnp.sqrt(bn['var'] + BN_EPS)
    scale = bn['gamma'] * inv
    shift = bn['beta'] - bn['mean'] * bn['gamma'] * inv
    return (scale.reshape(-1, 1).astype(jnp.float32),
            shift.reshape(-1, 1).astype(jnp.float32))


def _im2col_t(x, kh, kw, stride, pad, dil):
    """Channel-major im2col: x (C, N, H, W) -> A^T of shape (kh*kw*C, N*Ho*Wo)."""
    C, N, H, W = x.shape
    Ho = (H + 2 * pad - dil * (kh - 1) - 1) // stride + 1
    Wo = (W + 2 * pad - dil * (kw - 1) - 1) // stride + 1
    xp = jnp.pad(x, ((0, 0), (0, 0), (pad, pad), (pad, pad)))
    rows = []
    for i in range(kh):
        for j in range(kw):
            h0, w0 = i * dil, j * dil
            sl = xp[:, :, h0:h0 + stride * (Ho - 1) + 1:stride,
                          w0:w0 + stride * (Wo - 1) + 1:stride]
            rows.append(sl.reshape(C, N * Ho * Wo))
    return jnp.concatenate(rows, axis=0), Ho, Wo     # K ordering = (kh, kw, Cin)


# ----------------------------- Pallas kernels ------------------------------- #

def _conv_bn_kernel(w_ref, a_ref, sc_ref, sh_ref, *rest, relu, has_res, has_ds):
    """Tiled  o = [relu]( (W@A)*scale + shift [+ (Wd@Ad)*scale_d + shift_d] [+ res] ).

    Grid = (m_tiles, k_tiles).  Accumulates W@A over the K grid axis into a f32 VMEM
    scratch; the epilogue (BN affine, optional fused 1x1-downsample branch, optional
    residual, ReLU, store) runs only on the last K step.
    """
    i = 0
    res_ref = None
    if has_res:
        res_ref = rest[i]; i += 1
    if has_ds:
        wd_ref, ad_ref, scd_ref, shd_ref = rest[i:i + 4]; i += 4
    o_ref, acc_ref = rest[i], rest[i + 1]

    k = pl.program_id(1)

    @pl.when(k == 0)
    def _init():
        acc_ref[...] = jnp.zeros_like(acc_ref)

    acc_ref[...] += jnp.dot(w_ref[...], a_ref[...],
                            preferred_element_type=jnp.float32)

    @pl.when(k == pl.num_programs(1) - 1)
    def _finalize():
        y = acc_ref[...] * sc_ref[...] + sh_ref[...]
        if has_ds:
            yd = jnp.dot(wd_ref[...], ad_ref[...],
                         preferred_element_type=jnp.float32)
            y = y + yd * scd_ref[...] + shd_ref[...]
        if has_res:
            y = y + res_ref[...]
        if relu:
            y = jnp.maximum(y, 0.0)
        o_ref[...] = y


def _maxpool_kernel(t_ref, o_ref):
    # Max over the 9 pooling-window taps (leading axis); (C, TM) lane-dense output.
    m = t_ref[0]
    for k in range(1, t_ref.shape[0]):
        m = jnp.maximum(m, t_ref[k])
    o_ref[...] = m


def _fused_conv_matmul(wm, a, scale, shift, *, res=None, ds=None, relu=True):
    """Launch the tiled conv-as-matmul kernel.  wm:(C,K), a:(K,M) -> (C,M) f32."""
    C, K = wm.shape
    _, M = a.shape

    # M (pixel) axis: lane axis -> pad to a multiple of 128 and tile.
    M_pad = _round_up(M, 128)
    TM = _pick_tile(M_pad, 512)
    nm = M_pad // TM

    # K (reduction) axis: single full block when small, else 128-aligned tiles.
    if K <= 1024:
        K_pad, TK = K, K
    else:
        K_pad = _round_up(K, 128)
        TK = _pick_tile(K_pad, 512)
    nk = K_pad // TK

    a_p = jnp.pad(a, ((0, K_pad - K), (0, M_pad - M))).astype(jnp.bfloat16)
    w_p = jnp.pad(wm, ((0, 0), (0, K_pad - K))).astype(jnp.bfloat16)

    inputs = [w_p, a_p, scale, shift]
    in_specs = [
        pl.BlockSpec((C, TK), lambda m, k: (0, k)),
        pl.BlockSpec((TK, TM), lambda m, k: (k, m)),
        pl.BlockSpec((C, 1), lambda m, k: (0, 0)),
        pl.BlockSpec((C, 1), lambda m, k: (0, 0)),
    ]

    has_res = res is not None
    has_ds = ds is not None
    if has_res:
        inputs.append(jnp.pad(res.astype(jnp.float32), ((0, 0), (0, M_pad - M))))
        in_specs.append(pl.BlockSpec((C, TM), lambda m, k: (0, m)))
    if has_ds:
        wd, ad, scd, shd = ds
        Kd = wd.shape[1]
        inputs += [wd.astype(jnp.bfloat16),
                   jnp.pad(ad, ((0, 0), (0, M_pad - M))).astype(jnp.bfloat16),
                   scd, shd]
        in_specs += [
            pl.BlockSpec((C, Kd), lambda m, k: (0, 0)),
            pl.BlockSpec((Kd, TM), lambda m, k: (0, m)),
            pl.BlockSpec((C, 1), lambda m, k: (0, 0)),
            pl.BlockSpec((C, 1), lambda m, k: (0, 0)),
        ]

    kernel = functools.partial(_conv_bn_kernel, relu=relu,
                               has_res=has_res, has_ds=has_ds)
    out = pl.pallas_call(
        kernel,
        out_shape=jax.ShapeDtypeStruct((C, M_pad), jnp.float32),
        grid=(nm, nk),
        in_specs=in_specs,
        out_specs=pl.BlockSpec((C, TM), lambda m, k: (0, m)),
        scratch_shapes=[pltpu.VMEM((C, TM), jnp.float32)],
        compiler_params=pltpu.CompilerParams(
            dimension_semantics=("parallel", "arbitrary"),
            vmem_limit_bytes=VMEM_LIMIT_BYTES),
    )(*inputs)
    return out[:, :M]


# ------------------------------ conv wrappers -------------------------------- #

def conv_bn_pallas(x, w, bn, stride, pad, dil, relu, residual=None, ds_branch=None):
    """Conv2d (no bias) + folded BN (+fused 1x1-downsample branch) (+residual) (+ReLU).

    x: (Cin, N, H, W) channel-major activation.
    residual: optional (Cout, M) tensor added before the ReLU.
    ds_branch: optional (x_ds, w_ds, bn_ds, stride_ds) — a 1x1 conv + BN branch fused
               into the same kernel (BasicBlock downsample), added before the ReLU.
    Returns (Cout, N, Ho, Wo).
    """
    Cin, N, H, W = x.shape
    Cout, _, kh, kw = w.shape
    a, Ho, Wo = _im2col_t(x, kh, kw, stride, pad, dil)          # (K, M)
    wm = jnp.transpose(w, (0, 2, 3, 1)).reshape(Cout, kh * kw * Cin)
    scale, shift = _fold_bn(bn)
    M = N * Ho * Wo

    ds = None
    if ds_branch is not None:
        xd, wd, bnd, sd = ds_branch
        ad, Hd, Wd = _im2col_t(xd, 1, 1, sd, 0, 1)
        assert (Hd, Wd) == (Ho, Wo)
        wdm = wd.reshape(Cout, -1)                               # 1x1 kernel
        scd, shd = _fold_bn(bnd)
        ds = (wdm, ad, scd, shd)

    out = _fused_conv_matmul(wm, a.astype(jnp.float32), scale, shift,
                             res=residual, ds=ds, relu=relu)
    return out.reshape(Cout, N, Ho, Wo)


def maxpool_3x3_s2_p1_pallas(x):
    """nn.MaxPool2d(kernel_size=3, stride=2, padding=1) on a (C, N, H, W) activation."""
    C, N, H, W = x.shape
    Ho = (H + 2 - 3) // 2 + 1
    Wo = (W + 2 - 3) // 2 + 1
    xp = jnp.pad(x, ((0, 0), (0, 0), (1, 1), (1, 1)), constant_values=-jnp.inf)
    taps = []
    for i in range(3):
        for j in range(3):
            sl = xp[:, :, i:i + 2 * (Ho - 1) + 1:2, j:j + 2 * (Wo - 1) + 1:2]
            taps.append(sl.reshape(C, N * Ho * Wo))
    t = jnp.stack(taps, axis=0).astype(jnp.float32)              # (9, C, M)
    M = N * Ho * Wo
    M_pad = _round_up(M, 128)
    TM = _pick_tile(M_pad, 512)
    nm = M_pad // TM
    t_p = jnp.pad(t, ((0, 0), (0, 0), (0, M_pad - M)))

    out = pl.pallas_call(
        _maxpool_kernel,
        out_shape=jax.ShapeDtypeStruct((C, M_pad), jnp.float32),
        grid=(nm,),
        in_specs=[pl.BlockSpec((9, C, TM), lambda m: (0, 0, m))],
        out_specs=pl.BlockSpec((C, TM), lambda m: (0, m)),
        compiler_params=pltpu.CompilerParams(
            dimension_semantics=("parallel",),
            vmem_limit_bytes=VMEM_LIMIT_BYTES),
    )(t_p)
    return out[:, :M].reshape(C, N, Ho, Wo)


# -------------------------- reference (pure JAX, NCHW) ----------------------- #

def conv_bn_ref(x, w, bn, stride, pad, dil, relu, residual=None):
    y = lax.conv_general_dilated(
        x, w, (stride, stride), [(pad, pad), (pad, pad)],
        rhs_dilation=(dil, dil),
        dimension_numbers=('NCHW', 'OIHW', 'NCHW'))
    inv = 1.0 / jnp.sqrt(bn['var'] + BN_EPS)
    scale = (bn['gamma'] * inv).reshape(1, -1, 1, 1)
    shift = (bn['beta'] - bn['mean'] * bn['gamma'] * inv).reshape(1, -1, 1, 1)
    y = y * scale + shift
    if residual is not None:
        y = y + residual
    if relu:
        y = jnp.maximum(y, 0.0)
    return y


def maxpool_ref(x):
    return lax.reduce_window(x, -jnp.inf, lax.max, (1, 1, 3, 3), (1, 1, 2, 2),
                             [(0, 0), (0, 0), (1, 1), (1, 1)])


# ------------------------------ parameters ----------------------------------- #

def make_bn_params(key, c):
    k1, k2, k3, k4 = jax.random.split(key, 4)
    return {
        'gamma': 1.0 + 0.1 * jax.random.normal(k1, (c,), jnp.float32),
        'beta': 0.1 * jax.random.normal(k2, (c,), jnp.float32),
        'mean': 0.1 * jax.random.normal(k3, (c,), jnp.float32),
        'var': 1.0 + 0.1 * jnp.abs(jax.random.normal(k4, (c,), jnp.float32)),
    }


def make_conv_weight(key, cout, cin, kh, kw):
    fan_in = cin * kh * kw
    return jax.random.normal(key, (cout, cin, kh, kw), jnp.float32) * (0.5 * (2.0 / fan_in) ** 0.5)


def make_basic_block(key, inplanes, planes, cfg1, cfg2, ds_stride):
    ks = jax.random.split(key, 6)
    p = {
        'w1': make_conv_weight(ks[0], planes, inplanes, 3, 3),
        'bn1': make_bn_params(ks[1], planes),
        'w2': make_conv_weight(ks[2], planes, planes, 3, 3),
        'bn2': make_bn_params(ks[3], planes),
    }
    if ds_stride is not None:
        p['wd'] = make_conv_weight(ks[4], planes, inplanes, 1, 1)
        p['bnd'] = make_bn_params(ks[5], planes)
    cfg = {'cfg1': cfg1, 'cfg2': cfg2, 'ds_stride': ds_stride}
    return p, cfg


def make_resnet_dilated_params(key, base=8, in_ch=3):
    keys = jax.random.split(key, 16)
    params = {
        'conv1_w': make_conv_weight(keys[0], base, in_ch, 7, 7),
        'bn1': make_bn_params(keys[1], base),
    }
    # Per-conv (stride, pad, dilation) AFTER ResnetDilated._nostride_dilate(dilate_scale=8).
    layer_specs = [
        # layer1: stride 1, no dilation, no downsample
        (base, base, [((1, 1, 1), (1, 1, 1), None), ((1, 1, 1), (1, 1, 1), None)]),
        # layer2: stride 2 kept (not touched by _nostride_dilate)
        (base, 2 * base, [((2, 1, 1), (1, 1, 1), 2), ((1, 1, 1), (1, 1, 1), None)]),
        # layer3: dilate=2 -> stride removed; conv1 dil=1/pad=1, other 3x3 dil=2/pad=2
        (2 * base, 4 * base, [((1, 1, 1), (1, 2, 2), 1), ((1, 2, 2), (1, 2, 2), None)]),
        # layer4: dilate=4 -> stride removed; conv1 dil=2/pad=2, other 3x3 dil=4/pad=4
        (4 * base, 8 * base, [((1, 2, 2), (1, 4, 4), 1), ((1, 4, 4), (1, 4, 4), None)]),
    ]
    layers = []
    ki = 2
    for inpl, planes, blocks in layer_specs:
        layer = []
        cur_in = inpl
        for cfg1, cfg2, ds in blocks:
            layer.append(make_basic_block(keys[ki], cur_in, planes, cfg1, cfg2, ds))
            ki += 1
            cur_in = planes
        layers.append(layer)
    params['layers'] = layers
    return params


# -------------------------------- forward ------------------------------------ #

def resnet_dilated_forward_pallas(x_nchw, params):
    """Matches ResnetDilated.forward (dropout=False): returns (features_NCHW, None)."""
    x = jnp.transpose(x_nchw, (1, 0, 2, 3)).astype(jnp.float32)   # NCHW -> (C, N, H, W)
    # x = relu1(bn1(conv1(x)))
    x = conv_bn_pallas(x, params['conv1_w'], params['bn1'], 2, 3, 1, True)
    # TODO(synk): nn.Dropout2d(0.1) path (dropout=True) not implemented; default dropout=False.
    x = maxpool_3x3_s2_p1_pallas(x)
    for layer in params['layers']:
        for p, cfg in layer:
            s1, p1, d1 = cfg['cfg1']
            s2, p2, d2 = cfg['cfg2']
            out = conv_bn_pallas(x, p['w1'], p['bn1'], s1, p1, d1, True)
            if cfg['ds_stride'] is not None:
                # relu( bn2(conv2(out)) + bnd(convd(x)) ) fused into a single kernel call
                x = conv_bn_pallas(out, p['w2'], p['bn2'], s2, p2, d2, True,
                                   ds_branch=(x, p['wd'], p['bnd'], cfg['ds_stride']))
            else:
                identity = x.reshape(x.shape[0], -1)               # (C, M)
                x = conv_bn_pallas(out, p['w2'], p['bn2'], s2, p2, d2, True,
                                   residual=identity)
    return jnp.transpose(x, (1, 0, 2, 3)), None                   # back to NCHW


def resnet_dilated_forward_ref(x, params):
    x = x.astype(jnp.float32)
    x = conv_bn_ref(x, params['conv1_w'], params['bn1'], 2, 3, 1, True)
    x = maxpool_ref(x)
    for layer in params['layers']:
        for p, cfg in layer:
            identity = x
            s1, p1, d1 = cfg['cfg1']
            s2, p2, d2 = cfg['cfg2']
            out = conv_bn_ref(x, p['w1'], p['bn1'], s1, p1, d1, True)
            if cfg['ds_stride'] is not None:
                identity = conv_bn_ref(x, p['wd'], p['bnd'], cfg['ds_stride'], 0, 1, False)
            x = conv_bn_ref(out, p['w2'], p['bn2'], s2, p2, d2, True, residual=identity)
    return x, None


# ---------------------------------- main -------------------------------------- #

if __name__ == "__main__":
    key = jax.random.PRNGKey(0)
    kp, kx = jax.random.split(key)
    params = make_resnet_dilated_params(kp, base=8, in_ch=3)
    x = jax.random.normal(kx, (2, 3, 32, 32), jnp.float32)        # NCHW, like PyTorch

    fwd = jax.jit(lambda inp: resnet_dilated_forward_pallas(inp, params))
    out, aux = fwd(x)
    out = jax.block_until_ready(out)
    assert aux is None
    assert out.shape == (2, 64, 4, 4), out.shape
    assert bool(jnp.all(jnp.isfinite(out)))

    ref, _ = resnet_dilated_forward_ref(x, params)
    ref = jax.block_until_ready(ref)
    # bf16 MXU inputs (f32 accumulation) -> compare with a mixed abs/rel tolerance.
    denom = jnp.maximum(jnp.abs(ref), 1.0)
    err = float(jnp.max(jnp.abs(out - ref) / denom))
    assert err < 5e-2, f"max (abs-or-rel) error vs reference: {err}"

    print("KERNEL_OK")
</pallas_src>

<mosaic_0001>
module attributes {stable_mosaic.version = 11 : i64} {
  func.func @_conv_bn_kernel(%arg0: i32, %arg1: i32, %arg2: memref<8x147xbf16, #tpu.memory_space<vmem>>, %arg3: memref<147x512xbf16, #tpu.memory_space<vmem>>, %arg4: memref<8x1xf32, #tpu.memory_space<vmem>>, %arg5: memref<8x1xf32, #tpu.memory_space<vmem>>, %arg6: memref<8x512xf32, #tpu.memory_space<vmem>>, %arg7: memref<8x512xf32, #tpu.memory_space<vmem>>) attributes {dimension_semantics = [#tpu.dimension_semantics<parallel>, #tpu.dimension_semantics<arbitrary>], iteration_bounds = array<i64: 1, 1>, scalar_prefetch = 0 : i64, scratch_operands = 1 : i64, tpu.core_type = #tpu.core_type<tc>, window_params = [{transform_indices = @transform_0, window_bounds = array<i64: 8, 147>}, {transform_indices = @transform_1, window_bounds = array<i64: 147, 512>}, {pipeline_mode = #tpu.pipeline_mode<synchronous>, transform_indices = @transform_2, window_bounds = array<i64: 8, 1>}, {pipeline_mode = #tpu.pipeline_mode<synchronous>, transform_indices = @transform_3, window_bounds = array<i64: 8, 1>}, {transform_indices = @transform_4, window_bounds = array<i64: 8, 512>}]} {
    %c0_i32 = arith.constant 0 : i32
    %0 = arith.cmpi eq, %arg1, %c0_i32 : i32
    %1 = arith.extui %0 : i1 to i32
    %c0_i32_0 = arith.constant 0 : i32
    %2 = arith.cmpi ne, %1, %c0_i32_0 : i32
    scf.if %2 {
      %cst_10 = arith.constant 0.000000e+00 : f32
      %12 = vector.broadcast %cst_10 : f32 to vector<8x512xf32>
      %c0_11 = arith.constant 0 : index
      %c0_12 = arith.constant 0 : index
      %13 = vector.load %arg7[%c0_11, %c0_12] : memref<8x512xf32, #tpu.memory_space<vmem>>, vector<8x512xf32>
      tpu.vector_store %arg7[%c0_11, %c0_12], %12 {strides = array<i32>} : memref<8x512xf32, #tpu.memory_space<vmem>>, vector<8x512xf32>,
    } else {
    }
    %c0 = arith.constant 0 : index
    %c0_1 = arith.constant 0 : index
    %3 = vector.load %arg7[%c0, %c0_1] : memref<8x512xf32, #tpu.memory_space<vmem>>, vector<8x512xf32>
    %c0_2 = arith.constant 0 : index
    %c0_3 = arith.constant 0 : index
    %4 = vector.load %arg2[%c0_2, %c0_3] : memref<8x147xbf16, #tpu.memory_space<vmem>>, vector<8x147xbf16>
    %c0_4 = arith.constant 0 : index
    %c0_5 = arith.constant 0 : index
    %5 = vector.load %arg3[%c0_4, %c0_5] : memref<147x512xbf16, #tpu.memory_space<vmem>>, vector<147x512xbf16>
    %cst = arith.constant dense<0.000000e+00> : vector<8x512xf32>
    %6 = tpu.matmul %4, %5, %cst {dimension_numbers = #tpu.dot_dimension_numbers<[1], [0], [0], [1], [0, 0, 1, 1], [], []>} : vector<8x147xbf16>, vector<147x512xbf16>, vector<8x512xf32> -> vector<8x512xf32>
    %7 = arith.addf %3, %6 : vector<8x512xf32>
    %c0_6 = arith.constant 0 : index
    %c0_7 = arith.constant 0 : index
    %8 = vector.load %arg7[%c0_6, %c0_7] : memref<8x512xf32, #tpu.memory_space<vmem>>, vector<8x512xf32>
    tpu.vector_store %arg7[%c0_6, %c0_7], %7 {strides = array<i32>} : memref<8x512xf32, #tpu.memory_space<vmem>>, vector<8x512xf32>,
    %c0_i32_8 = arith.constant 0 : i32
    %9 = arith.cmpi eq, %arg1, %c0_i32_8 : i32
    %10 = arith.extui %9 : i1 to i32
    %c0_i32_9 = arith.constant 0 : i32
    %11 = arith.cmpi ne, %10, %c0_i32_9 : i32
    scf.if %11 {
      %c0_10 = arith.constant 0 : index
      %c0_11 = arith.constant 0 : index
      %12 = vector.load %arg7[%c0_10, %c0_11] : memref<8x512xf32, #tpu.memory_space<vmem>>, vector<8x512xf32>
      %c0_12 = arith.constant 0 : index
      %c0_13 = arith.constant 0 : index
      %13 = vector.load %arg4[%c0_12, %c0_13] : memref<8x1xf32, #tpu.memory_space<vmem>>, vector<8x1xf32>
      %14 = vector.broadcast %13 : vector<8x1xf32> to vector<8x512xf32>
      %15 = arith.mulf %12, %14 : vector<8x512xf32>
      %c0_14 = arith.constant 0 : index
      %c0_15 = arith.constant 0 : index
      %16 = vector.load %arg5[%c0_14, %c0_15] : memref<8x1xf32, #tpu.memory_space<vmem>>, vector<8x1xf32>
      %17 = vector.broadcast %16 : vector<8x1xf32> to vector<8x512xf32>
      %18 = arith.addf %15, %17 : vector<8x512xf32>
      %cst_16 = arith.constant 0.000000e+00 : f32
      %19 = vector.broadcast %cst_16 : f32 to vector<8x512xf32>
      %20 = arith.maximumf %18, %19 : vector<8x512xf32>
      %c0_17 = arith.constant 0 : index
      %c0_18 = arith.constant 0 : index
      %21 = vector.load %arg6[%c0_17, %c0_18] : memref<8x512xf32, #tpu.memory_space<vmem>>, vector<8x512xf32>
      tpu.vector_store %arg6[%c0_17, %c0_18], %20 {strides = array<i32>} : memref<8x512xf32, #tpu.memory_space<vmem>>, vector<8x512xf32>,
    } else {
    }
    return
  }
  func.func @transform_0(%arg0: i32, %arg1: i32) -> (i32, i32) {
    %c0_i32 = arith.constant 0 : i32
    %c0_i32_0 = arith.constant 0 : i32
    return %c0_i32, %arg1 : i32, i32
  }
  func.func @transform_1(%arg0: i32, %arg1: i32) -> (i32, i32) {
    %c0_i32 = arith.constant 0 : i32
    return %arg1, %arg0 : i32, i32
  }
  func.func @transform_2(%arg0: i32, %arg1: i32) -> (i32, i32) {
    %c0_i32 = arith.constant 0 : i32
    %c0_i32_0 = arith.constant 0 : i32
    %c0_i32_1 = arith.constant 0 : i32
    return %c0_i32, %c0_i32_0 : i32, i32
  }
  func.func @transform_3(%arg0: i32, %arg1: i32) -> (i32, i32) {
    %c0_i32 = arith.constant 0 : i32
    %c0_i32_0 = arith.constant 0 : i32
    %c0_i32_1 = arith.constant 0 : i32
    return %c0_i32, %c0_i32_0 : i32, i32
  }
  func.func @transform_4(%arg0: i32, %arg1: i32) -> (i32, i32) {
    %c0_i32 = arith.constant 0 : i32
    %c0_i32_0 = arith.constant 0 : i32
    return %c0_i32, %arg0 : i32, i32
  }
}

module attributes {stable_mosaic.version = 11 : i64} {
  func.func @_maxpool_kernel(%arg0: i32, %arg1: memref<9x8x128xf32, #tpu.memory_space<vmem>>, %arg2: memref<8x128xf32, #tpu.memory_space<vmem>>) attributes {dimension_semantics = [#tpu.dimension_semantics<parallel>], iteration_bounds = array<i64: 1>, scalar_prefetch = 0 : i64, scratch_operands = 0 : i64, tpu.core_type = #tpu.core_type<tc>, window_params = [{transform_indices = @transform_0, window_bounds = array<i64: 9, 8, 128>}, {transform_indices = @transform_1, window_bounds = array<i64: 8, 128>}]} {
    %c0 = arith.constant 0 : index
    %c0_0 = arith.constant 0 : index
    %c0_1 = arith.constant 0 : index
    %0 = vector.load %arg1[%c0, %c0_0, %c0_1] : memref<9x8x128xf32, #tpu.memory_space<vmem>>, vector<1x8x128xf32>
    %1 = vector.shape_cast %0 : vector<1x8x128xf32> to vector<8x128xf32>
    %c1 = arith.constant 1 : index
    %c0_2 = arith.constant 0 : index
    %c0_3 = arith.constant 0 : index
    %2 = vector.load %arg1[%c1, %c0_2, %c0_3] : memref<9x8x128xf32, #tpu.memory_space<vmem>>, vector<1x8x128xf32>
    %3 = vector.shape_cast %2 : vector<1x8x128xf32> to vector<8x128xf32>
    %4 = arith.maximumf %1, %3 : vector<8x128xf32>
    %c2 = arith.constant 2 : index
    %c0_4 = arith.constant 0 : index
    %c0_5 = arith.constant 0 : index
    %5 = vector.load %arg1[%c2, %c0_4, %c0_5] : memref<9x8x128xf32, #tpu.memory_space<vmem>>, vector<1x8x128xf32>
    %6 = vector.shape_cast %5 : vector<1x8x128xf32> to vector<8x128xf32>
    %7 = arith.maximumf %4, %6 : vector<8x128xf32>
    %c3 = arith.constant 3 : index
    %c0_6 = arith.constant 0 : index
    %c0_7 = arith.constant 0 : index
    %8 = vector.load %arg1[%c3, %c0_6, %c0_7] : memref<9x8x128xf32, #tpu.memory_space<vmem>>, vector<1x8x128xf32>
    %9 = vector.shape_cast %8 : vector<1x8x128xf32> to vector<8x128xf32>
    %10 = arith.maximumf %7, %9 : vector<8x128xf32>
    %c4 = arith.constant 4 : index
    %c0_8 = arith.constant 0 : index
    %c0_9 = arith.constant 0 : index
    %11 = vector.load %arg1[%c4, %c0_8, %c0_9] : memref<9x8x128xf32, #tpu.memory_space<vmem>>, vector<1x8x128xf32>
    %12 = vector.shape_cast %11 : vector<1x8x128xf32> to vector<8x128xf32>
    %13 = arith.maximumf %10, %12 : vector<8x128xf32>
    %c5 = arith.constant 5 : index
    %c0_10 = arith.constant 0 : index
    %c0_11 = arith.constant 0 : index
    %14 = vector.load %arg1[%c5, %c0_10, %c0_11] : memref<9x8x128xf32, #tpu.memory_space<vmem>>, vector<1x8x128xf32>
    %15 = vector.shape_cast %14 : vector<1x8x128xf32> to vector<8x128xf32>
    %16 = arith.maximumf %13, %15 : vector<8x128xf32>
    %c6 = arith.constant 6 : index
    %c0_12 = arith.constant 0 : index
    %c0_13 = arith.constant 0 : index
    %17 = vector.load %arg1[%c6, %c0_12, %c0_13] : memref<9x8x128xf32, #tpu.memory_space<vmem>>, vector<1x8x128xf32>
    %18 = vector.shape_cast %17 : vector<1x8x128xf32> to vector<8x128xf32>
    %19 = arith.maximumf %16, %18 : vector<8x128xf32>
    %c7 = arith.constant 7 : index
    %c0_14 = arith.constant 0 : index
    %c0_15 = arith.constant 0 : index
    %20 = vector.load %arg1[%c7, %c0_14, %c0_15] : memref<9x8x128xf32, #tpu.memory_space<vmem>>, vector<1x8x128xf32>
    %21 = vector.shape_cast %20 : vector<1x8x128xf32> to vector<8x128xf32>
    %22 = arith.maximumf %19, %21 : vector<8x128xf32>
    %c8 = arith.constant 8 : index
    %c0_16 = arith.constant 0 : index
    %c0_17 = arith.constant 0 : index
    %23 = vector.load %arg1[%c8, %c0_16, %c0_17] : memref<9x8x128xf32, #tpu.memory_space<vmem>>, vector<1x8x128xf32>
    %24 = vector.shape_cast %23 : vector<1x8x128xf32> to vector<8x128xf32>
    %25 = arith.maximumf %22, %24 : vector<8x128xf32>
    %c0_18 = arith.constant 0 : index
    %c0_19 = arith.constant 0 : index
    %26 = vector.load %arg2[%c0_18, %c0_19] : memref<8x128xf32, #tpu.memory_space<vmem>>, vector<8x128xf32>
    tpu.vector_store %arg2[%c0_18, %c0_19], %25 {strides = array<i32>} : memref<8x128xf32, #tpu.memory_space<vmem>>, vector<8x128xf32>,
    return
  }
  func.func @transform_0(%arg0: i32) -> (i32, i32, i32) {
    %c0_i32 = arith.constant 0 : i32
    %c0_i32_0 = arith.constant 0 : i32
    %c0_i32_1 = arith.constant 0 : i32
    return %c0_i32, %c0_i32_0, %arg0 : i32, i32, i32
  }
  func.func @transform_1(%arg0: i32) -> (i32, i32) {
    %c0_i32 = arith.constant 0 : i32
    %c0_i32_0 = arith.constant 0 : i32
    return %c0_i32, %arg0 : i32, i32
  }
}

module attributes {stable_mosaic.version = 11 : i64} {
  func.func @_conv_bn_kernel(%arg0: i32, %arg1: i32, %arg2: memref<8x72xbf16, #tpu.memory_space<vmem>>, %arg3: memref<72x128xbf16, #tpu.memory_space<vmem>>, %arg4: memref<8x1xf32, #tpu.memory_space<vmem>>, %arg5: memref<8x1xf32, #tpu.memory_space<vmem>>, %arg6: memref<8x128xf32, #tpu.memory_space<vmem>>, %arg7: memref<8x128xf32, #tpu.memory_space<vmem>>) attributes {dimension_semantics = [#tpu.dimension_semantics<parallel>, #tpu.dimension_semantics<arbitrary>], iteration_bounds = array<i64: 1, 1>, scalar_prefetch = 0 : i64, scratch_operands = 1 : i64, tpu.core_type = #tpu.core_type<tc>, window_params = [{transform_indices = @transform_0, window_bounds = array<i64: 8, 72>}, {transform_indices = @transform_1, window_bounds = array<i64: 72, 128>}, {pipeline_mode = #tpu.pipeline_mode<synchronous>, transform_indices = @transform_2, window_bounds = array<i64: 8, 1>}, {pipeline_mode = #tpu.pipeline_mode<synchronous>, transform_indices = @transform_3, window_bounds = array<i64: 8, 1>}, {transform_indices = @transform_4, window_bounds = array<i64: 8, 128>}]} {
    %c0_i32 = arith.constant 0 : i32
    %0 = arith.cmpi eq, %arg1, %c0_i32 : i32
    %1 = arith.extui %0 : i1 to i32
    %c0_i32_0 = arith.constant 0 : i32
    %2 = arith.cmpi ne, %1, %c0_i32_0 : i32
    scf.if %2 {
      %cst_10 = arith.constant 0.000000e+00 : f32
      %12 = vector.broadcast %cst_10 : f32 to vector<8x128xf32>
      %c0_11 = arith.constant 0 : index
      %c0_12 = arith.constant 0 : index
      %13 = vector.load %arg7[%c0_11, %c0_12] : memref<8x128xf32, #tpu.memory_space<vmem>>, vector<8x128xf32>
      tpu.vector_store %arg7[%c0_11, %c0_12], %12 {strides = array<i32>} : memref<8x128xf32, #tpu.memory_space<vmem>>, vector<8x128xf32>,
    } else {
    }
    %c0 = arith.constant 0 : index
    %c0_1 = arith.constant 0 : index
    %3 = vector.load %arg7[%c0, %c0_1] : memref<8x128xf32, #tpu.memory_space<vmem>>, vector<8x128xf32>
    %c0_2 = arith.constant 0 : index
    %c0_3 = arith.constant 0 : index
    %4 = vector.load %arg2[%c0_2, %c0_3] : memref<8x72xbf16, #tpu.memory_space<vmem>>, vector<8x72xbf16>
    %c0_4 = arith.constant 0 : index
    %c0_5 = arith.constant 0 : index
    %5 = vector.load %arg3[%c0_4, %c0_5] : memref<72x128xbf16, #tpu.memory_space<vmem>>, vector<72x128xbf16>
    %cst = arith.constant dense<0.000000e+00> : vector<8x128xf32>
    %6 = tpu.matmul %4, %5, %cst {dimension_numbers = #tpu.dot_dimension_numbers<[1], [0], [0], [1], [0, 0, 1, 1], [], []>} : vector<8x72xbf16>, vector<72x128xbf16>, vector<8x128xf32> -> vector<8x128xf32>
    %7 = arith.addf %3, %6 : vector<8x128xf32>
    %c0_6 = arith.constant 0 : index
    %c0_7 = arith.constant 0 : index
    %8 = vector.load %arg7[%c0_6, %c0_7] : memref<8x128xf32, #tpu.memory_space<vmem>>, vector<8x128xf32>
    tpu.vector_store %arg7[%c0_6, %c0_7], %7 {strides = array<i32>} : memref<8x128xf32, #tpu.memory_space<vmem>>, vector<8x128xf32>,
    %c0_i32_8 = arith.constant 0 : i32
    %9 = arith.cmpi eq, %arg1, %c0_i32_8 : i32
    %10 = arith.extui %9 : i1 to i32
    %c0_i32_9 = arith.constant 0 : i32
    %11 = arith.cmpi ne, %10, %c0_i32_9 : i32
    scf.if %11 {
      %c0_10 = arith.constant 0 : index
      %c0_11 = arith.constant 0 : index
      %12 = vector.load %arg7[%c0_10, %c0_11] : memref<8x128xf32, #tpu.memory_space<vmem>>, vector<8x128xf32>
      %c0_12 = arith.constant 0 : index
      %c0_13 = arith.constant 0 : index
      %13 = vector.load %arg4[%c0_12, %c0_13] : memref<8x1xf32, #tpu.memory_space<vmem>>, vector<8x1xf32>
      %14 = vector.broadcast %13 : vector<8x1xf32> to vector<8x128xf32>
      %15 = arith.mulf %12, %14 : vector<8x128xf32>
      %c0_14 = arith.constant 0 : index
      %c0_15 = arith.constant 0 : index
      %16 = vector.load %arg5[%c0_14, %c0_15] : memref<8x1xf32, #tpu.memory_space<vmem>>, vector<8x1xf32>
      %17 = vector.broadcast %16 : vector<8x1xf32> to vector<8x128xf32>
      %18 = arith.addf %15, %17 : vector<8x128xf32>
      %cst_16 = arith.constant 0.000000e+00 : f32
      %19 = vector.broadcast %cst_16 : f32 to vector<8x128xf32>
      %20 = arith.maximumf %18, %19 : vector<8x128xf32>
      %c0_17 = arith.constant 0 : index
      %c0_18 = arith.constant 0 : index
      %21 = vector.load %arg6[%c0_17, %c0_18] : memref<8x128xf32, #tpu.memory_space<vmem>>, vector<8x128xf32>
      tpu.vector_store %arg6[%c0_17, %c0_18], %20 {strides = array<i32>} : memref<8x128xf32, #tpu.memory_space<vmem>>, vector<8x128xf32>,
    } else {
    }
    return
  }
  func.func @transform_0(%arg0: i32, %arg1: i32) -> (i32, i32) {
    %c0_i32 = arith.constant 0 : i32
    %c0_i32_0 = arith.constant 0 : i32
    return %c0_i32, %arg1 : i32, i32
  }
  func.func @transform_1(%arg0: i32, %arg1: i32) -> (i32, i32) {
    %c0_i32 = arith.constant 0 : i32
    return %arg1, %arg0 : i32, i32
  }
  func.func @transform_2(%arg0: i32, %arg1: i32) -> (i32, i32) {
    %c0_i32 = arith.constant 0 : i32
    %c0_i32_0 = arith.constant 0 : i32
    %c0_i32_1 = arith.constant 0 : i32
    return %c0_i32, %c0_i32_0 : i32, i32
  }
  func.func @transform_3(%arg0: i32, %arg1: i32) -> (i32, i32) {
    %c0_i32 = arith.constant 0 : i32
    %c0_i32_0 = arith.constant 0 : i32
    %c0_i32_1 = arith.constant 0 : i32
    return %c0_i32, %c0_i32_0 : i32, i32
  }
  func.func @transform_4(%arg0: i32, %arg1: i32) -> (i32, i32) {
    %c0_i32 = arith.constant 0 : i32
    %c0_i32_0 = arith.constant 0 : i32
    return %c0_i32, %arg0 : i32, i32
  }
}

module attributes {stable_mosaic.version = 11 : i64} {
  func.func @_conv_bn_kernel(%arg0: i32, %arg1: i32, %arg2: memref<8x72xbf16, #tpu.memory_space<vmem>>, %arg3: memref<72x128xbf16, #tpu.memory_space<vmem>>, %arg4: memref<8x1xf32, #tpu.memory_space<vmem>>, %arg5: memref<8x1xf32, #tpu.memory_space<vmem>>, %arg6: memref<8x128xf32, #tpu.memory_space<vmem>>, %arg7: memref<8x128xf32, #tpu.memory_space<vmem>>, %arg8: memref<8x128xf32, #tpu.memory_space<vmem>>) attributes {dimension_semantics = [#tpu.dimension_semantics<parallel>, #tpu.dimension_semantics<arbitrary>], iteration_bounds = array<i64: 1, 1>, scalar_prefetch = 0 : i64, scratch_operands = 1 : i64, tpu.core_type = #tpu.core_type<tc>, window_params = [{transform_indices = @transform_0, window_bounds = array<i64: 8, 72>}, {transform_indices = @transform_1, window_bounds = array<i64: 72, 128>}, {pipeline_mode = #tpu.pipeline_mode<synchronous>, transform_indices = @transform_2, window_bounds = array<i64: 8, 1>}, {pipeline_mode = #tpu.pipeline_mode<synchronous>, transform_indices = @transform_3, window_bounds = array<i64: 8, 1>}, {transform_indices = @transform_4, window_bounds = array<i64: 8, 128>}, {transform_indices = @transform_5, window_bounds = array<i64: 8, 128>}]} {
    %c0_i32 = arith.constant 0 : i32
    %0 = arith.cmpi eq, %arg1, %c0_i32 : i32
    %1 = arith.extui %0 : i1 to i32
    %c0_i32_0 = arith.constant 0 : i32
    %2 = arith.cmpi ne, %1, %c0_i32_0 : i32
    scf.if %2 {
      %cst_10 = arith.constant 0.000000e+00 : f32
      %12 = vector.broadcast %cst_10 : f32 to vector<8x128xf32>
      %c0_11 = arith.constant 0 : index
      %c0_12 = arith.constant 0 : index
      %13 = vector.load %arg8[%c0_11, %c0_12] : memref<8x128xf32, #tpu.memory_space<vmem>>, vector<8x128xf32>
      tpu.vector_store %arg8[%c0_11, %c0_12], %12 {strides = array<i32>} : memref<8x128xf32, #tpu.memory_space<vmem>>, vector<8x128xf32>,
    } else {
    }
    %c0 = arith.constant 0 : index
    %c0_1 = arith.constant 0 : index
    %3 = vector.load %arg8[%c0, %c0_1] : memref<8x128xf32, #tpu.memory_space<vmem>>, vector<8x128xf32>
    %c0_2 = arith.constant 0 : index
    %c0_3 = arith.constant 0 : index
    %4 = vector.load %arg2[%c0_2, %c0_3] : memref<8x72xbf16, #tpu.memory_space<vmem>>, vector<8x72xbf16>
    %c0_4 = arith.constant 0 : index
    %c0_5 = arith.constant 0 : index
    %5 = vector.load %arg3[%c0_4, %c0_5] : memref<72x128xbf16, #tpu.memory_space<vmem>>, vector<72x128xbf16>
    %cst = arith.constant dense<0.000000e+00> : vector<8x128xf32>
    %6 = tpu.matmul %4, %5, %cst {dimension_numbers = #tpu.dot_dimension_numbers<[1], [0], [0], [1], [0, 0, 1, 1], [], []>} : vector<8x72xbf16>, vector<72x128xbf16>, vector<8x128xf32> -> vector<8x128xf32>
    %7 = arith.addf %3, %6 : vector<8x128xf32>
    %c0_6 = arith.constant 0 : index
    %c0_7 = arith.constant 0 : index
    %8 = vector.load %arg8[%c0_6, %c0_7] : memref<8x128xf32, #tpu.memory_space<vmem>>, vector<8x128xf32>
    tpu.vector_store %arg8[%c0_6, %c0_7], %7 {strides = array<i32>} : memref<8x128xf32, #tpu.memory_space<vmem>>, vector<8x128xf32>,
    %c0_i32_8 = arith.constant 0 : i32
    %9 = arith.cmpi eq, %arg1, %c0_i32_8 : i32
    %10 = arith.extui %9 : i1 to i32
    %c0_i32_9 = arith.constant 0 : i32
    %11 = arith.cmpi ne, %10, %c0_i32_9 : i32
    scf.if %11 {
      %c0_10 = arith.constant 0 : index
      %c0_11 = arith.constant 0 : index
      %12 = vector.load %arg8[%c0_10, %c0_11] : memref<8x128xf32, #tpu.memory_space<vmem>>, vector<8x128xf32>
      %c0_12 = arith.constant 0 : index
      %c0_13 = arith.constant 0 : index
      %13 = vector.load %arg4[%c0_12, %c0_13] : memref<8x1xf32, #tpu.memory_space<vmem>>, vector<8x1xf32>
      %14 = vector.broadcast %13 : vector<8x1xf32> to vector<8x128xf32>
      %15 = arith.mulf %12, %14 : vector<8x128xf32>
      %c0_14 = arith.constant 0 : index
      %c0_15 = arith.constant 0 : index
      %16 = vector.load %arg5[%c0_14, %c0_15] : memref<8x1xf32, #tpu.memory_space<vmem>>, vector<8x1xf32>
      %17 = vector.broadcast %16 : vector<8x1xf32> to vector<8x128xf32>
      %18 = arith.addf %15, %17 : vector<8x128xf32>
      %c0_16 = arith.constant 0 : index
      %c0_17 = arith.constant 0 : index
      %19 = vector.load %arg6[%c0_16, %c0_17] : memref<8x128xf32, #tpu.memory_space<vmem>>, vector<8x128xf32>
      %20 = arith.addf %18, %19 : vector<8x128xf32>
      %cst_18 = arith.constant 0.000000e+00 : f32
      %21 = vector.broadcast %cst_18 : f32 to vector<8x128xf32>
      %22 = arith.maximumf %20, %21 : vector<8x128xf32>
      %c0_19 = arith.constant 0 : index
      %c0_20 = arith.constant 0 : index
      %23 = vector.load %arg7[%c0_19, %c0_20] : memref<8x128xf32, #tpu.memory_space<vmem>>, vector<8x128xf32>
      tpu.vector_store %arg7[%c0_19, %c0_20], %22 {strides = array<i32>} : memref<8x128xf32, #tpu.memory_space<vmem>>, vector<8x128xf32>,
    } else {
    }
    return
  }
  func.func @transform_0(%arg0: i32, %arg1: i32) -> (i32, i32) {
    %c0_i32 = arith.constant 0 : i32
    %c0_i32_0 = arith.constant 0 : i32
    return %c0_i32, %arg1 : i32, i32
  }
  func.func @transform_1(%arg0: i32, %arg1: i32) -> (i32, i32) {
    %c0_i32 = arith.constant 0 : i32
    return %arg1, %arg0 : i32, i32
  }
  func.func @transform_2(%arg0: i32, %arg1: i32) -> (i32, i32) {
    %c0_i32 = arith.constant 0 : i32
    %c0_i32_0 = arith.constant 0 : i32
    %c0_i32_1 = arith.constant 0 : i32
    return %c0_i32, %c0_i32_0 : i32, i32
  }
  func.func @transform_3(%arg0: i32, %arg1: i32) -> (i32, i32) {
    %c0_i32 = arith.constant 0 : i32
    %c0_i32_0 = arith.constant 0 : i32
    %c0_i32_1 = arith.constant 0 : i32
    return %c0_i32, %c0_i32_0 : i32, i32
  }
  func.func @transform_4(%arg0: i32, %arg1: i32) -> (i32, i32) {
    %c0_i32 = arith.constant 0 : i32
    %c0_i32_0 = arith.constant 0 : i32
    return %c0_i32, %arg0 : i32, i32
  }
  func.func @transform_5(%arg0: i32, %arg1: i32) -> (i32, i32) {
    %c0_i32 = arith.constant 0 : i32
    %c0_i32_0 = arith.constant 0 : i32
    return %c0_i32, %arg0 : i32, i32
  }
}

module attributes {stable_mosaic.version = 11 : i64} {
  func.func @_conv_bn_kernel(%arg0: i32, %arg1: i32, %arg2: memref<16x72xbf16, #tpu.memory_space<vmem>>, %arg3: memref<72x128xbf16, #tpu.memory_space<vmem>>, %arg4: memref<16x1xf32, #tpu.memory_space<vmem>>, %arg5: memref<16x1xf32, #tpu.memory_space<vmem>>, %arg6: memref<16x128xf32, #tpu.memory_space<vmem>>, %arg7: memref<16x128xf32, #tpu.memory_space<vmem>>) attributes {dimension_semantics = [#tpu.dimension_semantics<parallel>, #tpu.dimension_semantics<arbitrary>], iteration_bounds = array<i64: 1, 1>, scalar_prefetch = 0 : i64, scratch_operands = 1 : i64, tpu.core_type = #tpu.core_type<tc>, window_params = [{transform_indices = @transform_0, window_bounds = array<i64: 16, 72>}, {transform_indices = @transform_1, window_bounds = array<i64: 72, 128>}, {pipeline_mode = #tpu.pipeline_mode<synchronous>, transform_indices = @transform_2, window_bounds = array<i64: 16, 1>}, {pipeline_mode = #tpu.pipeline_mode<synchronous>, transform_indices = @transform_3, window_bounds = array<i64: 16, 1>}, {transform_indices = @transform_4, window_bounds = array<i64: 16, 128>}]} {
    %c0_i32 = arith.constant 0 : i32
    %0 = arith.cmpi eq, %arg1, %c0_i32 : i32
    %1 = arith.extui %0 : i1 to i32
    %c0_i32_0 = arith.constant 0 : i32
    %2 = arith.cmpi ne, %1, %c0_i32_0 : i32
    scf.if %2 {
      %cst_10 = arith.constant 0.000000e+00 : f32
      %12 = vector.broadcast %cst_10 : f32 to vector<16x128xf32>
      %c0_11 = arith.constant 0 : index
      %c0_12 = arith.constant 0 : index
      %13 = vector.load %arg7[%c0_11, %c0_12] : memref<16x128xf32, #tpu.memory_space<vmem>>, vector<16x128xf32>
      tpu.vector_store %arg7[%c0_11, %c0_12], %12 {strides = array<i32>} : memref<16x128xf32, #tpu.memory_space<vmem>>, vector<16x128xf32>,
    } else {
    }
    %c0 = arith.constant 0 : index
    %c0_1 = arith.constant 0 : index
    %3 = vector.load %arg7[%c0, %c0_1] : memref<16x128xf32, #tpu.memory_space<vmem>>, vector<16x128xf32>
    %c0_2 = arith.constant 0 : index
    %c0_3 = arith.constant 0 : index
    %4 = vector.load %arg2[%c0_2, %c0_3] : memref<16x72xbf16, #tpu.memory_space<vmem>>, vector<16x72xbf16>
    %c0_4 = arith.constant 0 : index
    %c0_5 = arith.constant 0 : index
    %5 = vector.load %arg3[%c0_4, %c0_5] : memref<72x128xbf16, #tpu.memory_space<vmem>>, vector<72x128xbf16>
    %cst = arith.constant dense<0.000000e+00> : vector<16x128xf32>
    %6 = tpu.matmul %4, %5, %cst {dimension_numbers = #tpu.dot_dimension_numbers<[1], [0], [0], [1], [0, 0, 1, 1], [], []>} : vector<16x72xbf16>, vector<72x128xbf16>, vector<16x128xf32> -> vector<16x128xf32>
    %7 = arith.addf %3, %6 : vector<16x128xf32>
    %c0_6 = arith.constant 0 : index
    %c0_7 = arith.constant 0 : index
    %8 = vector.load %arg7[%c0_6, %c0_7] : memref<16x128xf32, #tpu.memory_space<vmem>>, vector<16x128xf32>
    tpu.vector_store %arg7[%c0_6, %c0_7], %7 {strides = array<i32>} : memref<16x128xf32, #tpu.memory_space<vmem>>, vector<16x128xf32>,
    %c0_i32_8 = arith.constant 0 : i32
    %9 = arith.cmpi eq, %arg1, %c0_i32_8 : i32
    %10 = arith.extui %9 : i1 to i32
    %c0_i32_9 = arith.constant 0 : i32
    %11 = arith.cmpi ne, %10, %c0_i32_9 : i32
    scf.if %11 {
      %c0_10 = arith.constant 0 : index
      %c0_11 = arith.constant 0 : index
      %12 = vector.load %arg7[%c0_10, %c0_11] : memref<16x128xf32, #tpu.memory_space<vmem>>, vector<16x128xf32>
      %c0_12 = arith.constant 0 : index
      %c0_13 = arith.constant 0 : index
      %13 = vector.load %arg4[%c0_12, %c0_13] : memref<16x1xf32, #tpu.memory_space<vmem>>, vector<16x1xf32>
      %14 = vector.broadcast %13 : vector<16x1xf32> to vector<16x128xf32>
      %15 = arith.mulf %12, %14 : vector<16x128xf32>
      %c0_14 = arith.constant 0 : index
      %c0_15 = arith.constant 0 : index
      %16 = vector.load %arg5[%c0_14, %c0_15] : memref<16x1xf32, #tpu.memory_space<vmem>>, vector<16x1xf32>
      %17 = vector.broadcast %16 : vector<16x1xf32> to vector<16x128xf32>
      %18 = arith.addf %15, %17 : vector<16x128xf32>
      %cst_16 = arith.constant 0.000000e+00 : f32
      %19 = vector.broadcast %cst_16 : f32 to vector<16x128xf32>
      %20 = arith.maximumf %18, %19 : vector<16x128xf32>
      %c0_17 = arith.constant 0 : index
      %c0_18 = arith.constant 0 : index
      %21 = vector.load %arg6[%c0_17, %c0_18] : memref<16x128xf32, #tpu.memory_space<vmem>>, vector<16x128xf32>
      tpu.vector_store %arg6[%c0_17, %c0_18], %20 {strides = array<i32>} : memref<16x128xf32, #tpu.memory_space<vmem>>, vector<16x128xf32>,
    } else {
    }
    return
  }
  func.func @transform_0(%arg0: i32, %arg1: i32) -> (i32, i32) {
    %c0_i32 = arith.constant 0 : i32
    %c0_i32_0 = arith.constant 0 : i32
    return %c0_i32, %arg1 : i32, i32
  }
  func.func @transform_1(%arg0: i32, %arg1: i32) -> (i32, i32) {
    %c0_i32 = arith.constant 0 : i32
    return %arg1, %arg0 : i32, i32
  }
  func.func @transform_2(%arg0: i32, %arg1: i32) -> (i32, i32) {
    %c0_i32 = arith.constant 0 : i32
    %c0_i32_0 = arith.constant 0 : i32
    %c0_i32_1 = arith.constant 0 : i32
    return %c0_i32, %c0_i32_0 : i32, i32
  }
  func.func @transform_3(%arg0: i32, %arg1: i32) -> (i32, i32) {
    %c0_i32 = arith.constant 0 : i32
    %c0_i32_0 = arith.constant 0 : i32
    %c0_i32_1 = arith.constant 0 : i32
    return %c0_i32, %c0_i32_0 : i32, i32
  }
  func.func @transform_4(%arg0: i32, %arg1: i32) -> (i32, i32) {
    %c0_i32 = arith.constant 0 : i32
    %c0_i32_0 = arith.constant 0 : i32
    return %c0_i32, %arg0 : i32, i32
  }
}

module attributes {stable_mosaic.version = 11 : i64} {
  func.func @_conv_bn_kernel(%arg0: i32, %arg1: i32, %arg2: memref<16x144xbf16, #tpu.memory_space<vmem>>, %arg3: memref<144x128xbf16, #tpu.memory_space<vmem>>, %arg4: memref<16x1xf32, #tpu.memory_space<vmem>>, %arg5: memref<16x1xf32, #tpu.memory_space<vmem>>, %arg6: memref<16x128xf32, #tpu.memory_space<vmem>>, %arg7: memref<16x128xf32, #tpu.memory_space<vmem>>) attributes {dimension_semantics = [#tpu.dimension_semantics<parallel>, #tpu.dimension_semantics<arbitrary>], iteration_bounds = array<i64: 1, 1>, scalar_prefetch = 0 : i64, scratch_operands = 1 : i64, tpu.core_type = #tpu.core_type<tc>, window_params = [{transform_indices = @transform_0, window_bounds = array<i64: 16, 144>}, {transform_indices = @transform_1, window_bounds = array<i64: 144, 128>}, {pipeline_mode = #tpu.pipeline_mode<synchronous>, transform_indices = @transform_2, window_bounds = array<i64: 16, 1>}, {pipeline_mode = #tpu.pipeline_mode<synchronous>, transform_indices = @transform_3, window_bounds = array<i64: 16, 1>}, {transform_indices = @transform_4, window_bounds = array<i64: 16, 128>}]} {
    %c0_i32 = arith.constant 0 : i32
    %0 = arith.cmpi eq, %arg1, %c0_i32 : i32
    %1 = arith.extui %0 : i1 to i32
    %c0_i32_0 = arith.constant 0 : i32
    %2 = arith.cmpi ne, %1, %c0_i32_0 : i32
    scf.if %2 {
      %cst_10 = arith.constant 0.000000e+00 : f32
      %12 = vector.broadcast %cst_10 : f32 to vector<16x128xf32>
      %c0_11 = arith.constant 0 : index
      %c0_12 = arith.constant 0 : index
      %13 = vector.load %arg7[%c0_11, %c0_12] : memref<16x128xf32, #tpu.memory_space<vmem>>, vector<16x128xf32>
      tpu.vector_store %arg7[%c0_11, %c0_12], %12 {strides = array<i32>} : memref<16x128xf32, #tpu.memory_space<vmem>>, vector<16x128xf32>,
    } else {
    }
    %c0 = arith.constant 0 : index
    %c0_1 = arith.constant 0 : index
    %3 = vector.load %arg7[%c0, %c0_1] : memref<16x128xf32, #tpu.memory_space<vmem>>, vector<16x128xf32>
    %c0_2 = arith.constant 0 : index
    %c0_3 = arith.constant 0 : index
    %4 = vector.load %arg2[%c0_2, %c0_3] : memref<16x144xbf16, #tpu.memory_space<vmem>>, vector<16x144xbf16>
    %c0_4 = arith.constant 0 : index
    %c0_5 = arith.constant 0 : index
    %5 = vector.load %arg3[%c0_4, %c0_5] : memref<144x128xbf16, #tpu.memory_space<vmem>>, vector<144x128xbf16>
    %cst = arith.constant dense<0.000000e+00> : vector<16x128xf32>
    %6 = tpu.matmul %4, %5, %cst {dimension_numbers = #tpu.dot_dimension_numbers<[1], [0], [0], [1], [0, 0, 1, 1], [], []>} : vector<16x144xbf16>, vector<144x128xbf16>, vector<16x128xf32> -> vector<16x128xf32>
    %7 = arith.addf %3, %6 : vector<16x128xf32>
    %c0_6 = arith.constant 0 : index
    %c0_7 = arith.constant 0 : index
    %8 = vector.load %arg7[%c0_6, %c0_7] : memref<16x128xf32, #tpu.memory_space<vmem>>, vector<16x128xf32>
    tpu.vector_store %arg7[%c0_6, %c0_7], %7 {strides = array<i32>} : memref<16x128xf32, #tpu.memory_space<vmem>>, vector<16x128xf32>,
    %c0_i32_8 = arith.constant 0 : i32
    %9 = arith.cmpi eq, %arg1, %c0_i32_8 : i32
    %10 = arith.extui %9 : i1 to i32
    %c0_i32_9 = arith.constant 0 : i32
    %11 = arith.cmpi ne, %10, %c0_i32_9 : i32
    scf.if %11 {
      %c0_10 = arith.constant 0 : index
      %c0_11 = arith.constant 0 : index
      %12 = vector.load %arg7[%c0_10, %c0_11] : memref<16x128xf32, #tpu.memory_space<vmem>>, vector<16x128xf32>
      %c0_12 = arith.constant 0 : index
      %c0_13 = arith.constant 0 : index
      %13 = vector.load %arg4[%c0_12, %c0_13] : memref<16x1xf32, #tpu.memory_space<vmem>>, vector<16x1xf32>
      %14 = vector.broadcast %13 : vector<16x1xf32> to vector<16x128xf32>
      %15 = arith.mulf %12, %14 : vector<16x128xf32>
      %c0_14 = arith.constant 0 : index
      %c0_15 = arith.constant 0 : index
      %16 = vector.load %arg5[%c0_14, %c0_15] : memref<16x1xf32, #tpu.memory_space<vmem>>, vector<16x1xf32>
      %17 = vector.broadcast %16 : vector<16x1xf32> to vector<16x128xf32>
      %18 = arith.addf %15, %17 : vector<16x128xf32>
      %cst_16 = arith.constant 0.000000e+00 : f32
      %19 = vector.broadcast %cst_16 : f32 to vector<16x128xf32>
      %20 = arith.maximumf %18, %19 : vector<16x128xf32>
      %c0_17 = arith.constant 0 : index
      %c0_18 = arith.constant 0 : index
      %21 = vector.load %arg6[%c0_17, %c0_18] : memref<16x128xf32, #tpu.memory_space<vmem>>, vector<16x128xf32>
      tpu.vector_store %arg6[%c0_17, %c0_18], %20 {strides = array<i32>} : memref<16x128xf32, #tpu.memory_space<vmem>>, vector<16x128xf32>,
    } else {
    }
    return
  }
  func.func @transform_0(%arg0: i32, %arg1: i32) -> (i32, i32) {
    %c0_i32 = arith.constant 0 : i32
    %c0_i32_0 = arith.constant 0 : i32
    return %c0_i32, %arg1 : i32, i32
  }
  func.func @transform_1(%arg0: i32, %arg1: i32) -> (i32, i32) {
    %c0_i32 = arith.constant 0 : i32
    return %arg1, %arg0 : i32, i32
  }
  func.func @transform_2(%arg0: i32, %arg1: i32) -> (i32, i32) {
    %c0_i32 = arith.constant 0 : i32
    %c0_i32_0 = arith.constant 0 : i32
    %c0_i32_1 = arith.constant 0 : i32
    return %c0_i32, %c0_i32_0 : i32, i32
  }
  func.func @transform_3(%arg0: i32, %arg1: i32) -> (i32, i32) {
    %c0_i32 = arith.constant 0 : i32
    %c0_i32_0 = arith.constant 0 : i32
    %c0_i32_1 = arith.constant 0 : i32
    return %c0_i32, %c0_i32_0 : i32, i32
  }
  func.func @transform_4(%arg0: i32, %arg1: i32) -> (i32, i32) {
    %c0_i32 = arith.constant 0 : i32
    %c0_i32_0 = arith.constant 0 : i32
    return %c0_i32, %arg0 : i32, i32
  }
}

module attributes {stable_mosaic.version = 11 : i64} {
  func.func @_conv_bn_kernel(%arg0: i32, %arg1: i32, %arg2: memref<16x144xbf16, #tpu.memory_space<vmem>>, %arg3: memref<144x128xbf16, #tpu.memory_space<vmem>>, %arg4: memref<16x1xf32, #tpu.memory_space<vmem>>, %arg5: memref<16x1xf32, #tpu.memory_space<vmem>>, %arg6: memref<16x8xbf16, #tpu.memory_space<vmem>>, %arg7: memref<8x128xbf16, #tpu.memory_space<vmem>>, %arg8: memref<16x1xf32, #tpu.memory_space<vmem>>, %arg9: memref<16x1xf32, #tpu.memory_space<vmem>>, %arg10: memref<16x128xf32, #tpu.memory_space<vmem>>, %arg11: memref<16x128xf32, #tpu.memory_space<vmem>>) attributes {dimension_semantics = [#tpu.dimension_semantics<parallel>, #tpu.dimension_semantics<arbitrary>], iteration_bounds = array<i64: 1, 1>, scalar_prefetch = 0 : i64, scratch_operands = 1 : i64, tpu.core_type = #tpu.core_type<tc>, window_params = [{transform_indices = @transform_0, window_bounds = array<i64: 16, 144>}, {transform_indices = @transform_1, window_bounds = array<i64: 144, 128>}, {pipeline_mode = #tpu.pipeline_mode<synchronous>, transform_indices = @transform_2, window_bounds = array<i64: 16, 1>}, {pipeline_mode = #tpu.pipeline_mode<synchronous>, transform_indices = @transform_3, window_bounds = array<i64: 16, 1>}, {pipeline_mode = #tpu.pipeline_mode<synchronous>, transform_indices = @transform_4, window_bounds = array<i64: 16, 8>}, {transform_indices = @transform_5, window_bounds = array<i64: 8, 128>}, {pipeline_mode = #tpu.pipeline_mode<synchronous>, transform_indices = @transform_6, window_bounds = array<i64: 16, 1>}, {pipeline_mode = #tpu.pipeline_mode<synchronous>, transform_indices = @transform_7, window_bounds = array<i64: 16, 1>}, {transform_indices = @transform_8, window_bounds = array<i64: 16, 128>}]} {
    %c0_i32 = arith.constant 0 : i32
    %0 = arith.cmpi eq, %arg1, %c0_i32 : i32
    %1 = arith.extui %0 : i1 to i32
    %c0_i32_0 = arith.constant 0 : i32
    %2 = arith.cmpi ne, %1, %c0_i32_0 : i32
    scf.if %2 {
      %cst_10 = arith.constant 0.000000e+00 : f32
      %12 = vector.broadcast %cst_10 : f32 to vector<16x128xf32>
      %c0_11 = arith.constant 0 : index
      %c0_12 = arith.constant 0 : index
      %13 = vector.load %arg11[%c0_11, %c0_12] : memref<16x128xf32, #tpu.memory_space<vmem>>, vector<16x128xf32>
      tpu.vector_store %arg11[%c0_11, %c0_12], %12 {strides = array<i32>} : memref<16x128xf32, #tpu.memory_space<vmem>>, vector<16x128xf32>,
    } else {
    }
    %c0 = arith.constant 0 : index
    %c0_1 = arith.constant 0 : index
    %3 = vector.load %arg11[%c0, %c0_1] : memref<16x128xf32, #tpu.memory_space<vmem>>, vector<16x128xf32>
    %c0_2 = arith.constant 0 : index
    %c0_3 = arith.constant 0 : index
    %4 = vector.load %arg2[%c0_2, %c0_3] : memref<16x144xbf16, #tpu.memory_space<vmem>>, vector<16x144xbf16>
    %c0_4 = arith.constant 0 : index
    %c0_5 = arith.constant 0 : index
    %5 = vector.load %arg3[%c0_4, %c0_5] : memref<144x128xbf16, #tpu.memory_space<vmem>>, vector<144x128xbf16>
    %cst = arith.constant dense<0.000000e+00> : vector<16x128xf32>
    %6 = tpu.matmul %4, %5, %cst {dimension_numbers = #tpu.dot_dimension_numbers<[1], [0], [0], [1], [0, 0, 1, 1], [], []>} : vector<16x144xbf16>, vector<144x128xbf16>, vector<16x128xf32> -> vector<16x128xf32>
    %7 = arith.addf %3, %6 : vector<16x128xf32>
    %c0_6 = arith.constant 0 : index
    %c0_7 = arith.constant 0 : index
    %8 = vector.load %arg11[%c0_6, %c0_7] : memref<16x128xf32, #tpu.memory_space<vmem>>, vector<16x128xf32>
    tpu.vector_store %arg11[%c0_6, %c0_7], %7 {strides = array<i32>} : memref<16x128xf32, #tpu.memory_space<vmem>>, vector<16x128xf32>,
    %c0_i32_8 = arith.constant 0 : i32
    %9 = arith.cmpi eq, %arg1, %c0_i32_8 : i32
    %10 = arith.extui %9 : i1 to i32
    %c0_i32_9 = arith.constant 0 : i32
    %11 = arith.cmpi ne, %10, %c0_i32_9 : i32
    scf.if %11 {
      %c0_10 = arith.constant 0 : index
      %c0_11 = arith.constant 0 : index
      %12 = vector.load %arg11[%c0_10, %c0_11] : memref<16x128xf32, #tpu.memory_space<vmem>>, vector<16x128xf32>
      %c0_12 = arith.constant 0 : index
      %c0_13 = arith.constant 0 : index
      %13 = vector.load %arg4[%c0_12, %c0_13] : memref<16x1xf32, #tpu.memory_space<vmem>>, vector<16x1xf32>
      %14 = vector.broadcast %13 : vector<16x1xf32> to vector<16x128xf32>
      %15 = arith.mulf %12, %14 : vector<16x128xf32>
      %c0_14 = arith.constant 0 : index
      %c0_15 = arith.constant 0 : index
      %16 = vector.load %arg5[%c0_14, %c0_15] : memref<16x1xf32, #tpu.memory_space<vmem>>, vector<16x1xf32>
      %17 = vector.broadcast %16 : vector<16x1xf32> to vector<16x128xf32>
      %18 = arith.addf %15, %17 : vector<16x128xf32>
      %c0_16 = arith.constant 0 : index
      %c0_17 = arith.constant 0 : index
      %19 = vector.load %arg6[%c0_16, %c0_17] : memref<16x8xbf16, #tpu.memory_space<vmem>>, vector<16x8xbf16>
      %c0_18 = arith.constant 0 : index
      %c0_19 = arith.constant 0 : index
      %20 = vector.load %arg7[%c0_18, %c0_19] : memref<8x128xbf16, #tpu.memory_space<vmem>>, vector<8x128xbf16>
      %cst_20 = arith.constant dense<0.000000e+00> : vector<16x128xf32>
      %21 = tpu.matmul %19, %20, %cst_20 {dimension_numbers = #tpu.dot_dimension_numbers<[1], [0], [0], [1], [0, 0, 1, 1], [], []>} : vector<16x8xbf16>, vector<8x128xbf16>, vector<16x128xf32> -> vector<16x128xf32>
      %c0_21 = arith.constant 0 : index
      %c0_22 = arith.constant 0 : index
      %22 = vector.load %arg8[%c0_21, %c0_22] : memref<16x1xf32, #tpu.memory_space<vmem>>, vector<16x1xf32>
      %23 = vector.broadcast %22 : vector<16x1xf32> to vector<16x128xf32>
      %24 = arith.mulf %21, %23 : vector<16x128xf32>
      %25 = arith.addf %18, %24 : vector<16x128xf32>
      %c0_23 = arith.constant 0 : index
      %c0_24 = arith.constant 0 : index
      %26 = vector.load %arg9[%c0_23, %c0_24] : memref<16x1xf32, #tpu.memory_space<vmem>>, vector<16x1xf32>
      %27 = vector.broadcast %26 : vector<16x1xf32> to vector<16x128xf32>
      %28 = arith.addf %25, %27 : vector<16x128xf32>
      %cst_25 = arith.constant 0.000000e+00 : f32
      %29 = vector.broadcast %cst_25 : f32 to vector<16x128xf32>
      %30 = arith.maximumf %28, %29 : vector<16x128xf32>
      %c0_26 = arith.constant 0 : index
      %c0_27 = arith.constant 0 : index
      %31 = vector.load %arg10[%c0_26, %c0_27] : memref<16x128xf32, #tpu.memory_space<vmem>>, vector<16x128xf32>
      tpu.vector_store %arg10[%c0_26, %c0_27], %30 {strides = array<i32>} : memref<16x128xf32, #tpu.memory_space<vmem>>, vector<16x128xf32>,
    } else {
    }
    return
  }
  func.func @transform_0(%arg0: i32, %arg1: i32) -> (i32, i32) {
    %c0_i32 = arith.constant 0 : i32
    %c0_i32_0 = arith.constant 0 : i32
    return %c0_i32, %arg1 : i32, i32
  }
  func.func @transform_1(%arg0: i32, %arg1: i32) -> (i32, i32) {
    %c0_i32 = arith.constant 0 : i32
    return %arg1, %arg0 : i32, i32
  }
  func.func @transform_2(%arg0: i32, %arg1: i32) -> (i32, i32) {
    %c0_i32 = arith.constant 0 : i32
    %c0_i32_0 = arith.constant 0 : i32
    %c0_i32_1 = arith.constant 0 : i32
    return %c0_i32, %c0_i32_0 : i32, i32
  }
  func.func @transform_3(%arg0: i32, %arg1: i32) -> (i32, i32) {
    %c0_i32 = arith.constant 0 : i32
    %c0_i32_0 = arith.constant 0 : i32
    %c0_i32_1 = arith.constant 0 : i32
    return %c0_i32, %c0_i32_0 : i32, i32
  }
  func.func @transform_4(%arg0: i32, %arg1: i32) -> (i32, i32) {
    %c0_i32 = arith.constant 0 : i32
    %c0_i32_0 = arith.constant 0 : i32
    %c0_i32_1 = arith.constant 0 : i32
    return %c0_i32, %c0_i32_0 : i32, i32
  }
  func.func @transform_5(%arg0: i32, %arg1: i32) -> (i32, i32) {
    %c0_i32 = arith.constant 0 : i32
    %c0_i32_0 = arith.constant 0 : i32
    return %c0_i32, %arg0 : i32, i32
  }
  func.func @transform_6(%arg0: i32, %arg1: i32) -> (i32, i32) {
    %c0_i32 = arith.constant 0 : i32
    %c0_i32_0 = arith.constant 0 : i32
    %c0_i32_1 = arith.constant 0 : i32
    return %c0_i32, %c0_i32_0 : i32, i32
  }
  func.func @transform_7(%arg0: i32, %arg1: i32) -> (i32, i32) {
    %c0_i32 = arith.constant 0 : i32
    %c0_i32_0 = arith.constant 0 : i32
    %c0_i32_1 = arith.constant 0 : i32
    return %c0_i32, %c0_i32_0 : i32, i32
  }
  func.func @transform_8(%arg0: i32, %arg1: i32) -> (i32, i32) {
    %c0_i32 = arith.constant 0 : i32
    %c0_i32_0 = arith.constant 0 : i32
    return %c0_i32, %arg0 : i32, i32
  }
}

module attributes {stable_mosaic.version = 11 : i64} {
  func.func @_conv_bn_kernel(%arg0: i32, %arg1: i32, %arg2: memref<16x144xbf16, #tpu.memory_space<vmem>>, %arg3: memref<144x128xbf16, #tpu.memory_space<vmem>>, %arg4: memref<16x1xf32, #tpu.memory_space<vmem>>, %arg5: memref<16x1xf32, #tpu.memory_space<vmem>>, %arg6: memref<16x128xf32, #tpu.memory_space<vmem>>, %arg7: memref<16x128xf32, #tpu.memory_space<vmem>>, %arg8: memref<16x128xf32, #tpu.memory_space<vmem>>) attributes {dimension_semantics = [#tpu.dimension_semantics<parallel>, #tpu.dimension_semantics<arbitrary>], iteration_bounds = array<i64: 1, 1>, scalar_prefetch = 0 : i64, scratch_operands = 1 : i64, tpu.core_type = #tpu.core_type<tc>, window_params = [{transform_indices = @transform_0, window_bounds = array<i64: 16, 144>}, {transform_indices = @transform_1, window_bounds = array<i64: 144, 128>}, {pipeline_mode = #tpu.pipeline_mode<synchronous>, transform_indices = @transform_2, window_bounds = array<i64: 16, 1>}, {pipeline_mode = #tpu.pipeline_mode<synchronous>, transform_indices = @transform_3, window_bounds = array<i64: 16, 1>}, {transform_indices = @transform_4, window_bounds = array<i64: 16, 128>}, {transform_indices = @transform_5, window_bounds = array<i64: 16, 128>}]} {
    %c0_i32 = arith.constant 0 : i32
    %0 = arith.cmpi eq, %arg1, %c0_i32 : i32
    %1 = arith.extui %0 : i1 to i32
    %c0_i32_0 = arith.constant 0 : i32
    %2 = arith.cmpi ne, %1, %c0_i32_0 : i32
    scf.if %2 {
      %cst_10 = arith.constant 0.000000e+00 : f32
      %12 = vector.broadcast %cst_10 : f32 to vector<16x128xf32>
      %c0_11 = arith.constant 0 : index
      %c0_12 = arith.constant 0 : index
      %13 = vector.load %arg8[%c0_11, %c0_12] : memref<16x128xf32, #tpu.memory_space<vmem>>, vector<16x128xf32>
      tpu.vector_store %arg8[%c0_11, %c0_12], %12 {strides = array<i32>} : memref<16x128xf32, #tpu.memory_space<vmem>>, vector<16x128xf32>,
    } else {
    }
    %c0 = arith.constant 0 : index
    %c0_1 = arith.constant 0 : index
    %3 = vector.load %arg8[%c0, %c0_1] : memref<16x128xf32, #tpu.memory_space<vmem>>, vector<16x128xf32>
    %c0_2 = arith.constant 0 : index
    %c0_3 = arith.constant 0 : index
    %4 = vector.load %arg2[%c0_2, %c0_3] : memref<16x144xbf16, #tpu.memory_space<vmem>>, vector<16x144xbf16>
    %c0_4 = arith.constant 0 : index
    %c0_5 = arith.constant 0 : index
    %5 = vector.load %arg3[%c0_4, %c0_5] : memref<144x128xbf16, #tpu.memory_space<vmem>>, vector<144x128xbf16>
    %cst = arith.constant dense<0.000000e+00> : vector<16x128xf32>
    %6 = tpu.matmul %4, %5, %cst {dimension_numbers = #tpu.dot_dimension_numbers<[1], [0], [0], [1], [0, 0, 1, 1], [], []>} : vector<16x144xbf16>, vector<144x128xbf16>, vector<16x128xf32> -> vector<16x128xf32>
    %7 = arith.addf %3, %6 : vector<16x128xf32>
    %c0_6 = arith.constant 0 : index
    %c0_7 = arith.constant 0 : index
    %8 = vector.load %arg8[%c0_6, %c0_7] : memref<16x128xf32, #tpu.memory_space<vmem>>, vector<16x128xf32>
    tpu.vector_store %arg8[%c0_6, %c0_7], %7 {strides = array<i32>} : memref<16x128xf32, #tpu.memory_space<vmem>>, vector<16x128xf32>,
    %c0_i32_8 = arith.constant 0 : i32
    %9 = arith.cmpi eq, %arg1, %c0_i32_8 : i32
    %10 = arith.extui %9 : i1 to i32
    %c0_i32_9 = arith.constant 0 : i32
    %11 = arith.cmpi ne, %10, %c0_i32_9 : i32
    scf.if %11 {
      %c0_10 = arith.constant 0 : index
      %c0_11 = arith.constant 0 : index
      %12 = vector.load %arg8[%c0_10, %c0_11] : memref<16x128xf32, #tpu.memory_space<vmem>>, vector<16x128xf32>
      %c0_12 = arith.constant 0 : index
      %c0_13 = arith.constant 0 : index
      %13 = vector.load %arg4[%c0_12, %c0_13] : memref<16x1xf32, #tpu.memory_space<vmem>>, vector<16x1xf32>
      %14 = vector.broadcast %13 : vector<16x1xf32> to vector<16x128xf32>
      %15 = arith.mulf %12, %14 : vector<16x128xf32>
      %c0_14 = arith.constant 0 : index
      %c0_15 = arith.constant 0 : index
      %16 = vector.load %arg5[%c0_14, %c0_15] : memref<16x1xf32, #tpu.memory_space<vmem>>, vector<16x1xf32>
      %17 = vector.broadcast %16 : vector<16x1xf32> to vector<16x128xf32>
      %18 = arith.addf %15, %17 : vector<16x128xf32>
      %c0_16 = arith.constant 0 : index
      %c0_17 = arith.constant 0 : index
      %19 = vector.load %arg6[%c0_16, %c0_17] : memref<16x128xf32, #tpu.memory_space<vmem>>, vector<16x128xf32>
      %20 = arith.addf %18, %19 : vector<16x128xf32>
      %cst_18 = arith.constant 0.000000e+00 : f32
      %21 = vector.broadcast %cst_18 : f32 to vector<16x128xf32>
      %22 = arith.maximumf %20, %21 : vector<16x128xf32>
      %c0_19 = arith.constant 0 : index
      %c0_20 = arith.constant 0 : index
      %23 = vector.load %arg7[%c0_19, %c0_20] : memref<16x128xf32, #tpu.memory_space<vmem>>, vector<16x128xf32>
      tpu.vector_store %arg7[%c0_19, %c0_20], %22 {strides = array<i32>} : memref<16x128xf32, #tpu.memory_space<vmem>>, vector<16x128xf32>,
    } else {
    }
    return
  }
  func.func @transform_0(%arg0: i32, %arg1: i32) -> (i32, i32) {
    %c0_i32 = arith.constant 0 : i32
    %c0_i32_0 = arith.constant 0 : i32
    return %c0_i32, %arg1 : i32, i32
  }
  func.func @transform_1(%arg0: i32, %arg1: i32) -> (i32, i32) {
    %c0_i32 = arith.constant 0 : i32
    return %arg1, %arg0 : i32, i32
  }
  func.func @transform_2(%arg0: i32, %arg1: i32) -> (i32, i32) {
    %c0_i32 = arith.constant 0 : i32
    %c0_i32_0 = arith.constant 0 : i32
    %c0_i32_1 = arith.constant 0 : i32
    return %c0_i32, %c0_i32_0 : i32, i32
  }
  func.func @transform_3(%arg0: i32, %arg1: i32) -> (i32, i32) {
    %c0_i32 = arith.constant 0 : i32
    %c0_i32_0 = arith.constant 0 : i32
    %c0_i32_1 = arith.constant 0 : i32
    return %c0_i32, %c0_i32_0 : i32, i32
  }
  func.func @transform_4(%arg0: i32, %arg1: i32) -> (i32, i32) {
    %c0_i32 = arith.constant 0 : i32
    %c0_i32_0 = arith.constant 0 : i32
    return %c0_i32, %arg0 : i32, i32
  }
  func.func @transform_5(%arg0: i32, %arg1: i32) -> (i32, i32) {
    %c0_i32 = arith.constant 0 : i32
    %c0_i32_0 = arith.constant 0 : i32
    return %c0_i32, %arg0 : i32, i32
  }
}

module attributes {stable_mosaic.version = 11 : i64} {
  func.func @_conv_bn_kernel(%arg0: i32, %arg1: i32, %arg2: memref<32x144xbf16, #tpu.memory_space<vmem>>, %arg3: memref<144x128xbf16, #tpu.memory_space<vmem>>, %arg4: memref<32x1xf32, #tpu.memory_space<vmem>>, %arg5: memref<32x1xf32, #tpu.memory_space<vmem>>, %arg6: memref<32x128xf32, #tpu.memory_space<vmem>>, %arg7: memref<32x128xf32, #tpu.memory_space<vmem>>) attributes {dimension_semantics = [#tpu.dimension_semantics<parallel>, #tpu.dimension_semantics<arbitrary>], iteration_bounds = array<i64: 1, 1>, scalar_prefetch = 0 : i64, scratch_operands = 1 : i64, tpu.core_type = #tpu.core_type<tc>, window_params = [{transform_indices = @transform_0, window_bounds = array<i64: 32, 144>}, {transform_indices = @transform_1, window_bounds = array<i64: 144, 128>}, {pipeline_mode = #tpu.pipeline_mode<synchronous>, transform_indices = @transform_2, window_bounds = array<i64: 32, 1>}, {pipeline_mode = #tpu.pipeline_mode<synchronous>, transform_indices = @transform_3, window_bounds = array<i64: 32, 1>}, {transform_indices = @transform_4, window_bounds = array<i64: 32, 128>}]} {
    %c0_i32 = arith.constant 0 : i32
    %0 = arith.cmpi eq, %arg1, %c0_i32 : i32
    %1 = arith.extui %0 : i1 to i32
    %c0_i32_0 = arith.constant 0 : i32
    %2 = arith.cmpi ne, %1, %c0_i32_0 : i32
    scf.if %2 {
      %cst_10 = arith.constant 0.000000e+00 : f32
      %12 = vector.broadcast %cst_10 : f32 to vector<32x128xf32>
      %c0_11 = arith.constant 0 : index
      %c0_12 = arith.constant 0 : index
      %13 = vector.load %arg7[%c0_11, %c0_12] : memref<32x128xf32, #tpu.memory_space<vmem>>, vector<32x128xf32>
      tpu.vector_store %arg7[%c0_11, %c0_12], %12 {strides = array<i32>} : memref<32x128xf32, #tpu.memory_space<vmem>>, vector<32x128xf32>,
    } else {
    }
    %c0 = arith.constant 0 : index
    %c0_1 = arith.constant 0 : index
    %3 = vector.load %arg7[%c0, %c0_1] : memref<32x128xf32, #tpu.memory_space<vmem>>, vector<32x128xf32>
    %c0_2 = arith.constant 0 : index
    %c0_3 = arith.constant 0 : index
    %4 = vector.load %arg2[%c0_2, %c0_3] : memref<32x144xbf16, #tpu.memory_space<vmem>>, vector<32x144xbf16>
    %c0_4 = arith.constant 0 : index
    %c0_5 = arith.constant 0 : index
    %5 = vector.load %arg3[%c0_4, %c0_5] : memref<144x128xbf16, #tpu.memory_space<vmem>>, vector<144x128xbf16>
    %cst = arith.constant dense<0.000000e+00> : vector<32x128xf32>
    %6 = tpu.matmul %4, %5, %cst {dimension_numbers = #tpu.dot_dimension_numbers<[1], [0], [0], [1], [0, 0, 1, 1], [], []>} : vector<32x144xbf16>, vector<144x128xbf16>, vector<32x128xf32> -> vector<32x128xf32>
    %7 = arith.addf %3, %6 : vector<32x128xf32>
    %c0_6 = arith.constant 0 : index
    %c0_7 = arith.constant 0 : index
    %8 = vector.load %arg7[%c0_6, %c0_7] : memref<32x128xf32, #tpu.memory_space<vmem>>, vector<32x128xf32>
    tpu.vector_store %arg7[%c0_6, %c0_7], %7 {strides = array<i32>} : memref<32x128xf32, #tpu.memory_space<vmem>>, vector<32x128xf32>,
    %c0_i32_8 = arith.constant 0 : i32
    %9 = arith.cmpi eq, %arg1, %c0_i32_8 : i32
    %10 = arith.extui %9 : i1 to i32
    %c0_i32_9 = arith.constant 0 : i32
    %11 = arith.cmpi ne, %10, %c0_i32_9 : i32
    scf.if %11 {
      %c0_10 = arith.constant 0 : index
      %c0_11 = arith.constant 0 : index
      %12 = vector.load %arg7[%c0_10, %c0_11] : memref<32x128xf32, #tpu.memory_space<vmem>>, vector<32x128xf32>
      %c0_12 = arith.constant 0 : index
      %c0_13 = arith.constant 0 : index
      %13 = vector.load %arg4[%c0_12, %c0_13] : memref<32x1xf32, #tpu.memory_space<vmem>>, vector<32x1xf32>
      %14 = vector.broadcast %13 : vector<32x1xf32> to vector<32x128xf32>
      %15 = arith.mulf %12, %14 : vector<32x128xf32>
      %c0_14 = arith.constant 0 : index
      %c0_15 = arith.constant 0 : index
      %16 = vector.load %arg5[%c0_14, %c0_15] : memref<32x1xf32, #tpu.memory_space<vmem>>, vector<32x1xf32>
      %17 = vector.broadcast %16 : vector<32x1xf32> to vector<32x128xf32>
      %18 = arith.addf %15, %17 : vector<32x128xf32>
      %cst_16 = arith.constant 0.000000e+00 : f32
      %19 = vector.broadcast %cst_16 : f32 to vector<32x128xf32>
      %20 = arith.maximumf %18, %19 : vector<32x128xf32>
      %c0_17 = arith.constant 0 : index
      %c0_18 = arith.constant 0 : index
      %21 = vector.load %arg6[%c0_17, %c0_18] : memref<32x128xf32, #tpu.memory_space<vmem>>, vector<32x128xf32>
      tpu.vector_store %arg6[%c0_17, %c0_18], %20 {strides = array<i32>} : memref<32x128xf32, #tpu.memory_space<vmem>>, vector<32x128xf32>,
    } else {
    }
    return
  }
  func.func @transform_0(%arg0: i32, %arg1: i32) -> (i32, i32) {
    %c0_i32 = arith.constant 0 : i32
    %c0_i32_0 = arith.constant 0 : i32
    return %c0_i32, %arg1 : i32, i32
  }
  func.func @transform_1(%arg0: i32, %arg1: i32) -> (i32, i32) {
    %c0_i32 = arith.constant 0 : i32
    return %arg1, %arg0 : i32, i32
  }
  func.func @transform_2(%arg0: i32, %arg1: i32) -> (i32, i32) {
    %c0_i32 = arith.constant 0 : i32
    %c0_i32_0 = arith.constant 0 : i32
    %c0_i32_1 = arith.constant 0 : i32
    return %c0_i32, %c0_i32_0 : i32, i32
  }
  func.func @transform_3(%arg0: i32, %arg1: i32) -> (i32, i32) {
    %c0_i32 = arith.constant 0 : i32
    %c0_i32_0 = arith.constant 0 : i32
    %c0_i32_1 = arith.constant 0 : i32
    return %c0_i32, %c0_i32_0 : i32, i32
  }
  func.func @transform_4(%arg0: i32, %arg1: i32) -> (i32, i32) {
    %c0_i32 = arith.constant 0 : i32
    %c0_i32_0 = arith.constant 0 : i32
    return %c0_i32, %arg0 : i32, i32
  }
}

module attributes {stable_mosaic.version = 11 : i64} {
  func.func @_conv_bn_kernel(%arg0: i32, %arg1: i32, %arg2: memref<32x288xbf16, #tpu.memory_space<vmem>>, %arg3: memref<288x128xbf16, #tpu.memory_space<vmem>>, %arg4: memref<32x1xf32, #tpu.memory_space<vmem>>, %arg5: memref<32x1xf32, #tpu.memory_space<vmem>>, %arg6: memref<32x16xbf16, #tpu.memory_space<vmem>>, %arg7: memref<16x128xbf16, #tpu.memory_space<vmem>>, %arg8: memref<32x1xf32, #tpu.memory_space<vmem>>, %arg9: memref<32x1xf32, #tpu.memory_space<vmem>>, %arg10: memref<32x128xf32, #tpu.memory_space<vmem>>, %arg11: memref<32x128xf32, #tpu.memory_space<vmem>>) attributes {dimension_semantics = [#tpu.dimension_semantics<parallel>, #tpu.dimension_semantics<arbitrary>], iteration_bounds = array<i64: 1, 1>, scalar_prefetch = 0 : i64, scratch_operands = 1 : i64, tpu.core_type = #tpu.core_type<tc>, window_params = [{transform_indices = @transform_0, window_bounds = array<i64: 32, 288>}, {transform_indices = @transform_1, window_bounds = array<i64: 288, 128>}, {pipeline_mode = #tpu.pipeline_mode<synchronous>, transform_indices = @transform_2, window_bounds = array<i64: 32, 1>}, {pipeline_mode = #tpu.pipeline_mode<synchronous>, transform_indices = @transform_3, window_bounds = array<i64: 32, 1>}, {pipeline_mode = #tpu.pipeline_mode<synchronous>, transform_indices = @transform_4, window_bounds = array<i64: 32, 16>}, {transform_indices = @transform_5, window_bounds = array<i64: 16, 128>}, {pipeline_mode = #tpu.pipeline_mode<synchronous>, transform_indices = @transform_6, window_bounds = array<i64: 32, 1>}, {pipeline_mode = #tpu.pipeline_mode<synchronous>, transform_indices = @transform_7, window_bounds = array<i64: 32, 1>}, {transform_indices = @transform_8, window_bounds = array<i64: 32, 128>}]} {
    %c0_i32 = arith.constant 0 : i32
    %0 = arith.cmpi eq, %arg1, %c0_i32 : i32
    %1 = arith.extui %0 : i1 to i32
    %c0_i32_0 = arith.constant 0 : i32
    %2 = arith.cmpi ne, %1, %c0_i32_0 : i32
    scf.if %2 {
      %cst_10 = arith.constant 0.000000e+00 : f32
      %12 = vector.broadcast %cst_10 : f32 to vector<32x128xf32>
      %c0_11 = arith.constant 0 : index
      %c0_12 = arith.constant 0 : index
      %13 = vector.load %arg11[%c0_11, %c0_12] : memref<32x128xf32, #tpu.memory_space<vmem>>, vector<32x128xf32>
      tpu.vector_store %arg11[%c0_11, %c0_12], %12 {strides = array<i32>} : memref<32x128xf32, #tpu.memory_space<vmem>>, vector<32x128xf32>,
    } else {
    }
    %c0 = arith.constant 0 : index
    %c0_1 = arith.constant 0 : index
    %3 = vector.load %arg11[%c0, %c0_1] : memref<32x128xf32, #tpu.memory_space<vmem>>, vector<32x128xf32>
    %c0_2 = arith.constant 0 : index
    %c0_3 = arith.constant 0 : index
    %4 = vector.load %arg2[%c0_2, %c0_3] : memref<32x288xbf16, #tpu.memory_space<vmem>>, vector<32x288xbf16>
    %c0_4 = arith.constant 0 : index
    %c0_5 = arith.constant 0 : index
    %5 = vector.load %arg3[%c0_4, %c0_5] : memref<288x128xbf16, #tpu.memory_space<vmem>>, vector<288x128xbf16>
    %cst = arith.constant dense<0.000000e+00> : vector<32x128xf32>
    %6 = tpu.matmul %4, %5, %cst {dimension_numbers = #tpu.dot_dimension_numbers<[1], [0], [0], [1], [0, 0, 1, 1], [], []>} : vector<32x288xbf16>, vector<288x128xbf16>, vector<32x128xf32> -> vector<32x128xf32>
    %7 = arith.addf %3, %6 : vector<32x128xf32>
    %c0_6 = arith.constant 0 : index
    %c0_7 = arith.constant 0 : index
    %8 = vector.load %arg11[%c0_6, %c0_7] : memref<32x128xf32, #tpu.memory_space<vmem>>, vector<32x128xf32>
    tpu.vector_store %arg11[%c0_6, %c0_7], %7 {strides = array<i32>} : memref<32x128xf32, #tpu.memory_space<vmem>>, vector<32x128xf32>,
    %c0_i32_8 = arith.constant 0 : i32
    %9 = arith.cmpi eq, %arg1, %c0_i32_8 : i32
    %10 = arith.extui %9 : i1 to i32
    %c0_i32_9 = arith.constant 0 : i32
    %11 = arith.cmpi ne, %10, %c0_i32_9 : i32
    scf.if %11 {
      %c0_10 = arith.constant 0 : index
      %c0_11 = arith.constant 0 : index
      %12 = vector.load %arg11[%c0_10, %c0_11] : memref<32x128xf32, #tpu.memory_space<vmem>>, vector<32x128xf32>
      %c0_12 = arith.constant 0 : index
      %c0_13 = arith.constant 0 : index
      %13 = vector.load %arg4[%c0_12, %c0_13] : memref<32x1xf32, #tpu.memory_space<vmem>>, vector<32x1xf32>
      %14 = vector.broadcast %13 : vector<32x1xf32> to vector<32x128xf32>
      %15 = arith.mulf %12, %14 : vector<32x128xf32>
      %c0_14 = arith.constant 0 : index
      %c0_15 = arith.constant 0 : index
      %16 = vector.load %arg5[%c0_14, %c0_15] : memref<32x1xf32, #tpu.memory_space<vmem>>, vector<32x1xf32>
      %17 = vector.broadcast %16 : vector<32x1xf32> to vector<32x128xf32>
      %18 = arith.addf %15, %17 : vector<32x128xf32>
      %c0_16 = arith.constant 0 : index
      %c0_17 = arith.constant 0 : index
      %19 = vector.load %arg6[%c0_16, %c0_17] : memref<32x16xbf16, #tpu.memory_space<vmem>>, vector<32x16xbf16>
      %c0_18 = arith.constant 0 : index
      %c0_19 = arith.constant 0 : index
      %20 = vector.load %arg7[%c0_18, %c0_19] : memref<16x128xbf16, #tpu.memory_space<vmem>>, vector<16x128xbf16>
      %cst_20 = arith.constant dense<0.000000e+00> : vector<32x128xf32>
      %21 = tpu.matmul %19, %20, %cst_20 {dimension_numbers = #tpu.dot_dimension_numbers<[1], [0], [0], [1], [0, 0, 1, 1], [], []>} : vector<32x16xbf16>, vector<16x128xbf16>, vector<32x128xf32> -> vector<32x128xf32>
      %c0_21 = arith.constant 0 : index
      %c0_22 = arith.constant 0 : index
      %22 = vector.load %arg8[%c0_21, %c0_22] : memref<32x1xf32, #tpu.memory_space<vmem>>, vector<32x1xf32>
      %23 = vector.broadcast %22 : vector<32x1xf32> to vector<32x128xf32>
      %24 = arith.mulf %21, %23 : vector<32x128xf32>
      %25 = arith.addf %18, %24 : vector<32x128xf32>
      %c0_23 = arith.constant 0 : index
      %c0_24 = arith.constant 0 : index
      %26 = vector.load %arg9[%c0_23, %c0_24] : memref<32x1xf32, #tpu.memory_space<vmem>>, vector<32x1xf32>
      %27 = vector.broadcast %26 : vector<32x1xf32> to vector<32x128xf32>
      %28 = arith.addf %25, %27 : vector<32x128xf32>
      %cst_25 = arith.constant 0.000000e+00 : f32
      %29 = vector.broadcast %cst_25 : f32 to vector<32x128xf32>
      %30 = arith.maximumf %28, %29 : vector<32x128xf32>
      %c0_26 = arith.constant 0 : index
      %c0_27 = arith.constant 0 : index
      %31 = vector.load %arg10[%c0_26, %c0_27] : memref<32x128xf32, #tpu.memory_space<vmem>>, vector<32x128xf32>
      tpu.vector_store %arg10[%c0_26, %c0_27], %30 {strides = array<i32>} : memref<32x128xf32, #tpu.memory_space<vmem>>, vector<32x128xf32>,
    } else {
    }
    return
  }
  func.func @transform_0(%arg0: i32, %arg1: i32) -> (i32, i32) {
    %c0_i32 = arith.constant 0 : i32
    %c0_i32_0 = arith.constant 0 : i32
    return %c0_i32, %arg1 : i32, i32
  }
  func.func @transform_1(%arg0: i32, %arg1: i32) -> (i32, i32) {
    %c0_i32 = arith.constant 0 : i32
    return %arg1, %arg0 : i32, i32
  }
  func.func @transform_2(%arg0: i32, %arg1: i32) -> (i32, i32) {
    %c0_i32 = arith.constant 0 : i32
    %c0_i32_0 = arith.constant 0 : i32
    %c0_i32_1 = arith.constant 0 : i32
    return %c0_i32, %c0_i32_0 : i32, i32
  }
  func.func @transform_3(%arg0: i32, %arg1: i32) -> (i32, i32) {
    %c0_i32 = arith.constant 0 : i32
    %c0_i32_0 = arith.constant 0 : i32
    %c0_i32_1 = arith.constant 0 : i32
    return %c0_i32, %c0_i32_0 : i32, i32
  }
  func.func @transform_4(%arg0: i32, %arg1: i32) -> (i32, i32) {
    %c0_i32 = arith.constant 0 : i32
    %c0_i32_0 = arith.constant 0 : i32
    %c0_i32_1 = arith.constant 0 : i32
    return %c0_i32, %c0_i32_0 : i32, i32
  }
  func.func @transform_5(%arg0: i32, %arg1: i32) -> (i32, i32) {
    %c0_i32 = arith.constant 0 : i32
    %c0_i32_0 = arith.constant 0 : i32
    return %c0_i32, %arg0 : i32, i32
  }
  func.func @transform_6(%arg0: i32, %arg1: i32) -> (i32, i32) {
    %c0_i32 = arith.constant 0 : i32
    %c0_i32_0 = arith.constant 0 : i32
    %c0_i32_1 = arith.constant 0 : i32
    return %c0_i32, %c0_i32_0 : i32, i32
  }
  func.func @transform_7(%arg0: i32, %arg1: i32) -> (i32, i32) {
    %c0_i32 = arith.constant 0 : i32
    %c0_i32_0 = arith.constant 0 : i32
    %c0_i32_1 = arith.constant 0 : i32
    return %c0_i32, %c0_i32_0 : i32, i32
  }
  func.func @transform_8(%arg0: i32, %arg1: i32) -> (i32, i32) {
    %c0_i32 = arith.constant 0 : i32
    %c0_i32_0 = arith.constant 0 : i32
    return %c0_i32, %arg0 : i32, i32
  }
}

module attributes {stable_mosaic.version = 11 : i64} {
  func.func @_conv_bn_kernel(%arg0: i32, %arg1: i32, %arg2: memref<32x288xbf16, #tpu.memory_space<vmem>>, %arg3: memref<288x128xbf16, #tpu.memory_space<vmem>>, %arg4: memref<32x1xf32, #tpu.memory_space<vmem>>, %arg5: memref<32x1xf32, #tpu.memory_space<vmem>>, %arg6: memref<32x128xf32, #tpu.memory_space<vmem>>, %arg7: memref<32x128xf32, #tpu.memory_space<vmem>>) attributes {dimension_semantics = [#tpu.dimension_semantics<parallel>, #tpu.dimension_semantics<arbitrary>], iteration_bounds = array<i64: 1, 1>, scalar_prefetch = 0 : i64, scratch_operands = 1 : i64, tpu.core_type = #tpu.core_type<tc>, window_params = [{transform_indices = @transform_0, window_bounds = array<i64: 32, 288>}, {transform_indices = @transform_1, window_bounds = array<i64: 288, 128>}, {pipeline_mode = #tpu.pipeline_mode<synchronous>, transform_indices = @transform_2, window_bounds = array<i64: 32, 1>}, {pipeline_mode = #tpu.pipeline_mode<synchronous>, transform_indices = @transform_3, window_bounds = array<i64: 32, 1>}, {transform_indices = @transform_4, window_bounds = array<i64: 32, 128>}]} {
    %c0_i32 = arith.constant 0 : i32
    %0 = arith.cmpi eq, %arg1, %c0_i32 : i32
    %1 = arith.extui %0 : i1 to i32
    %c0_i32_0 = arith.constant 0 : i32
    %2 = arith.cmpi ne, %1, %c0_i32_0 : i32
    scf.if %2 {
      %cst_10 = arith.constant 0.000000e+00 : f32
      %12 = vector.broadcast %cst_10 : f32 to vector<32x128xf32>
      %c0_11 = arith.constant 0 : index
      %c0_12 = arith.constant 0 : index
      %13 = vector.load %arg7[%c0_11, %c0_12] : memref<32x128xf32, #tpu.memory_space<vmem>>, vector<32x128xf32>
      tpu.vector_store %arg7[%c0_11, %c0_12], %12 {strides = array<i32>} : memref<32x128xf32, #tpu.memory_space<vmem>>, vector<32x128xf32>,
    } else {
    }
    %c0 = arith.constant 0 : index
    %c0_1 = arith.constant 0 : index
    %3 = vector.load %arg7[%c0, %c0_1] : memref<32x128xf32, #tpu.memory_space<vmem>>, vector<32x128xf32>
    %c0_2 = arith.constant 0 : index
    %c0_3 = arith.constant 0 : index
    %4 = vector.load %arg2[%c0_2, %c0_3] : memref<32x288xbf16, #tpu.memory_space<vmem>>, vector<32x288xbf16>
    %c0_4 = arith.constant 0 : index
    %c0_5 = arith.constant 0 : index
    %5 = vector.load %arg3[%c0_4, %c0_5] : memref<288x128xbf16, #tpu.memory_space<vmem>>, vector<288x128xbf16>
    %cst = arith.constant dense<0.000000e+00> : vector<32x128xf32>
    %6 = tpu.matmul %4, %5, %cst {dimension_numbers = #tpu.dot_dimension_numbers<[1], [0], [0], [1], [0, 0, 1, 1], [], []>} : vector<32x288xbf16>, vector<288x128xbf16>, vector<32x128xf32> -> vector<32x128xf32>
    %7 = arith.addf %3, %6 : vector<32x128xf32>
    %c0_6 = arith.constant 0 : index
    %c0_7 = arith.constant 0 : index
    %8 = vector.load %arg7[%c0_6, %c0_7] : memref<32x128xf32, #tpu.memory_space<vmem>>, vector<32x128xf32>
    tpu.vector_store %arg7[%c0_6, %c0_7], %7 {strides = array<i32>} : memref<32x128xf32, #tpu.memory_space<vmem>>, vector<32x128xf32>,
    %c0_i32_8 = arith.constant 0 : i32
    %9 = arith.cmpi eq, %arg1, %c0_i32_8 : i32
    %10 = arith.extui %9 : i1 to i32
    %c0_i32_9 = arith.constant 0 : i32
    %11 = arith.cmpi ne, %10, %c0_i32_9 : i32
    scf.if %11 {
      %c0_10 = arith.constant 0 : index
      %c0_11 = arith.constant 0 : index
      %12 = vector.load %arg7[%c0_10, %c0_11] : memref<32x128xf32, #tpu.memory_space<vmem>>, vector<32x128xf32>
      %c0_12 = arith.constant 0 : index
      %c0_13 = arith.constant 0 : index
      %13 = vector.load %arg4[%c0_12, %c0_13] : memref<32x1xf32, #tpu.memory_space<vmem>>, vector<32x1xf32>
      %14 = vector.broadcast %13 : vector<32x1xf32> to vector<32x128xf32>
      %15 = arith.mulf %12, %14 : vector<32x128xf32>
      %c0_14 = arith.constant 0 : index
      %c0_15 = arith.constant 0 : index
      %16 = vector.load %arg5[%c0_14, %c0_15] : memref<32x1xf32, #tpu.memory_space<vmem>>, vector<32x1xf32>
      %17 = vector.broadcast %16 : vector<32x1xf32> to vector<32x128xf32>
      %18 = arith.addf %15, %17 : vector<32x128xf32>
      %cst_16 = arith.constant 0.000000e+00 : f32
      %19 = vector.broadcast %cst_16 : f32 to vector<32x128xf32>
      %20 = arith.maximumf %18, %19 : vector<32x128xf32>
      %c0_17 = arith.constant 0 : index
      %c0_18 = arith.constant 0 : index
      %21 = vector.load %arg6[%c0_17, %c0_18] : memref<32x128xf32, #tpu.memory_space<vmem>>, vector<32x128xf32>
      tpu.vector_store %arg6[%c0_17, %c0_18], %20 {strides = array<i32>} : memref<32x128xf32, #tpu.memory_space<vmem>>, vector<32x128xf32>,
    } else {
    }
    return
  }
  func.func @transform_0(%arg0: i32, %arg1: i32) -> (i32, i32) {
    %c0_i32 = arith.constant 0 : i32
    %c0_i32_0 = arith.constant 0 : i32
    return %c0_i32, %arg1 : i32, i32
  }
  func.func @transform_1(%arg0: i32, %arg1: i32) -> (i32, i32) {
    %c0_i32 = arith.constant 0 : i32
    return %arg1, %arg0 : i32, i32
  }
  func.func @transform_2(%arg0: i32, %arg1: i32) -> (i32, i32) {
    %c0_i32 = arith.constant 0 : i32
    %c0_i32_0 = arith.constant 0 : i32
    %c0_i32_1 = arith.constant 0 : i32
    return %c0_i32, %c0_i32_0 : i32, i32
  }
  func.func @transform_3(%arg0: i32, %arg1: i32) -> (i32, i32) {
    %c0_i32 = arith.constant 0 : i32
    %c0_i32_0 = arith.constant 0 : i32
    %c0_i32_1 = arith.constant 0 : i32
    return %c0_i32, %c0_i32_0 : i32, i32
  }
  func.func @transform_4(%arg0: i32, %arg1: i32) -> (i32, i32) {
    %c0_i32 = arith.constant 0 : i32
    %c0_i32_0 = arith.constant 0 : i32
    return %c0_i32, %arg0 : i32, i32
  }
}

module attributes {stable_mosaic.version = 11 : i64} {
  func.func @_conv_bn_kernel(%arg0: i32, %arg1: i32, %arg2: memref<32x288xbf16, #tpu.memory_space<vmem>>, %arg3: memref<288x128xbf16, #tpu.memory_space<vmem>>, %arg4: memref<32x1xf32, #tpu.memory_space<vmem>>, %arg5: memref<32x1xf32, #tpu.memory_space<vmem>>, %arg6: memref<32x128xf32, #tpu.memory_space<vmem>>, %arg7: memref<32x128xf32, #tpu.memory_space<vmem>>, %arg8: memref<32x128xf32, #tpu.memory_space<vmem>>) attributes {dimension_semantics = [#tpu.dimension_semantics<parallel>, #tpu.dimension_semantics<arbitrary>], iteration_bounds = array<i64: 1, 1>, scalar_prefetch = 0 : i64, scratch_operands = 1 : i64, tpu.core_type = #tpu.core_type<tc>, window_params = [{transform_indices = @transform_0, window_bounds = array<i64: 32, 288>}, {transform_indices = @transform_1, window_bounds = array<i64: 288, 128>}, {pipeline_mode = #tpu.pipeline_mode<synchronous>, transform_indices = @transform_2, window_bounds = array<i64: 32, 1>}, {pipeline_mode = #tpu.pipeline_mode<synchronous>, transform_indices = @transform_3, window_bounds = array<i64: 32, 1>}, {transform_indices = @transform_4, window_bounds = array<i64: 32, 128>}, {transform_indices = @transform_5, window_bounds = array<i64: 32, 128>}]} {
    %c0_i32 = arith.constant 0 : i32
    %0 = arith.cmpi eq, %arg1, %c0_i32 : i32
    %1 = arith.extui %0 : i1 to i32
    %c0_i32_0 = arith.constant 0 : i32
    %2 = arith.cmpi ne, %1, %c0_i32_0 : i32
    scf.if %2 {
      %cst_10 = arith.constant 0.000000e+00 : f32
      %12 = vector.broadcast %cst_10 : f32 to vector<32x128xf32>
      %c0_11 = arith.constant 0 : index
      %c0_12 = arith.constant 0 : index
      %13 = vector.load %arg8[%c0_11, %c0_12] : memref<32x128xf32, #tpu.memory_space<vmem>>, vector<32x128xf32>
      tpu.vector_store %arg8[%c0_11, %c0_12], %12 {strides = array<i32>} : memref<32x128xf32, #tpu.memory_space<vmem>>, vector<32x128xf32>,
    } else {
    }
    %c0 = arith.constant 0 : index
    %c0_1 = arith.constant 0 : index
    %3 = vector.load %arg8[%c0, %c0_1] : memref<32x128xf32, #tpu.memory_space<vmem>>, vector<32x128xf32>
    %c0_2 = arith.constant 0 : index
    %c0_3 = arith.constant 0 : index
    %4 = vector.load %arg2[%c0_2, %c0_3] : memref<32x288xbf16, #tpu.memory_space<vmem>>, vector<32x288xbf16>
    %c0_4 = arith.constant 0 : index
    %c0_5 = arith.constant 0 : index
    %5 = vector.load %arg3[%c0_4, %c0_5] : memref<288x128xbf16, #tpu.memory_space<vmem>>, vector<288x128xbf16>
    %cst = arith.constant dense<0.000000e+00> : vector<32x128xf32>
    %6 = tpu.matmul %4, %5, %cst {dimension_numbers = #tpu.dot_dimension_numbers<[1], [0], [0], [1], [0, 0, 1, 1], [], []>} : vector<32x288xbf16>, vector<288x128xbf16>, vector<32x128xf32> -> vector<32x128xf32>
    %7 = arith.addf %3, %6 : vector<32x128xf32>
    %c0_6 = arith.constant 0 : index
    %c0_7 = arith.constant 0 : index
    %8 = vector.load %arg8[%c0_6, %c0_7] : memref<32x128xf32, #tpu.memory_space<vmem>>, vector<32x128xf32>
    tpu.vector_store %arg8[%c0_6, %c0_7], %7 {strides = array<i32>} : memref<32x128xf32, #tpu.memory_space<vmem>>, vector<32x128xf32>,
    %c0_i32_8 = arith.constant 0 : i32
    %9 = arith.cmpi eq, %arg1, %c0_i32_8 : i32
    %10 = arith.extui %9 : i1 to i32
    %c0_i32_9 = arith.constant 0 : i32
    %11 = arith.cmpi ne, %10, %c0_i32_9 : i32
    scf.if %11 {
      %c0_10 = arith.constant 0 : index
      %c0_11 = arith.constant 0 : index
      %12 = vector.load %arg8[%c0_10, %c0_11] : memref<32x128xf32, #tpu.memory_space<vmem>>, vector<32x128xf32>
      %c0_12 = arith.constant 0 : index
      %c0_13 = arith.constant 0 : index
      %13 = vector.load %arg4[%c0_12, %c0_13] : memref<32x1xf32, #tpu.memory_space<vmem>>, vector<32x1xf32>
      %14 = vector.broadcast %13 : vector<32x1xf32> to vector<32x128xf32>
      %15 = arith.mulf %12, %14 : vector<32x128xf32>
      %c0_14 = arith.constant 0 : index
      %c0_15 = arith.constant 0 : index
      %16 = vector.load %arg5[%c0_14, %c0_15] : memref<32x1xf32, #tpu.memory_space<vmem>>, vector<32x1xf32>
      %17 = vector.broadcast %16 : vector<32x1xf32> to vector<32x128xf32>
      %18 = arith.addf %15, %17 : vector<32x128xf32>
      %c0_16 = arith.constant 0 : index
      %c0_17 = arith.constant 0 : index
      %19 = vector.load %arg6[%c0_16, %c0_17] : memref<32x128xf32, #tpu.memory_space<vmem>>, vector<32x128xf32>
      %20 = arith.addf %18, %19 : vector<32x128xf32>
      %cst_18 = arith.constant 0.000000e+00 : f32
      %21 = vector.broadcast %cst_18 : f32 to vector<32x128xf32>
      %22 = arith.maximumf %20, %21 : vector<32x128xf32>
      %c0_19 = arith.constant 0 : index
      %c0_20 = arith.constant 0 : index
      %23 = vector.load %arg7[%c0_19, %c0_20] : memref<32x128xf32, #tpu.memory_space<vmem>>, vector<32x128xf32>
      tpu.vector_store %arg7[%c0_19, %c0_20], %22 {strides = array<i32>} : memref<32x128xf32, #tpu.memory_space<vmem>>, vector<32x128xf32>,
    } else {
    }
    return
  }
  func.func @transform_0(%arg0: i32, %arg1: i32) -> (i32, i32) {
    %c0_i32 = arith.constant 0 : i32
    %c0_i32_0 = arith.constant 0 : i32
    return %c0_i32, %arg1 : i32, i32
  }
  func.func @transform_1(%arg0: i32, %arg1: i32) -> (i32, i32) {
    %c0_i32 = arith.constant 0 : i32
    return %arg1, %arg0 : i32, i32
  }
  func.func @transform_2(%arg0: i32, %arg1: i32) -> (i32, i32) {
    %c0_i32 = arith.constant 0 : i32
    %c0_i32_0 = arith.constant 0 : i32
    %c0_i32_1 = arith.constant 0 : i32
    return %c0_i32, %c0_i32_0 : i32, i32
  }
  func.func @transform_3(%arg0: i32, %arg1: i32) -> (i32, i32) {
    %c0_i32 = arith.constant 0 : i32
    %c0_i32_0 = arith.constant 0 : i32
    %c0_i32_1 = arith.constant 0 : i32
    return %c0_i32, %c0_i32_0 : i32, i32
  }
  func.func @transform_4(%arg0: i32, %arg1: i32) -> (i32, i32) {
    %c0_i32 = arith.constant 0 : i32
    %c0_i32_0 = arith.constant 0 : i32
    return %c0_i32, %arg0 : i32, i32
  }
  func.func @transform_5(%arg0: i32, %arg1: i32) -> (i32, i32) {
    %c0_i32 = arith.constant 0 : i32
    %c0_i32_0 = arith.constant 0 : i32
    return %c0_i32, %arg0 : i32, i32
  }
}

module attributes {stable_mosaic.version = 11 : i64} {
  func.func @_conv_bn_kernel(%arg0: i32, %arg1: i32, %arg2: memref<64x288xbf16, #tpu.memory_space<vmem>>, %arg3: memref<288x128xbf16, #tpu.memory_space<vmem>>, %arg4: memref<64x1xf32, #tpu.memory_space<vmem>>, %arg5: memref<64x1xf32, #tpu.memory_space<vmem>>, %arg6: memref<64x128xf32, #tpu.memory_space<vmem>>, %arg7: memref<64x128xf32, #tpu.memory_space<vmem>>) attributes {dimension_semantics = [#tpu.dimension_semantics<parallel>, #tpu.dimension_semantics<arbitrary>], iteration_bounds = array<i64: 1, 1>, scalar_prefetch = 0 : i64, scratch_operands = 1 : i64, tpu.core_type = #tpu.core_type<tc>, window_params = [{transform_indices = @transform_0, window_bounds = array<i64: 64, 288>}, {transform_indices = @transform_1, window_bounds = array<i64: 288, 128>}, {pipeline_mode = #tpu.pipeline_mode<synchronous>, transform_indices = @transform_2, window_bounds = array<i64: 64, 1>}, {pipeline_mode = #tpu.pipeline_mode<synchronous>, transform_indices = @transform_3, window_bounds = array<i64: 64, 1>}, {transform_indices = @transform_4, window_bounds = array<i64: 64, 128>}]} {
    %c0_i32 = arith.constant 0 : i32
    %0 = arith.cmpi eq, %arg1, %c0_i32 : i32
    %1 = arith.extui %0 : i1 to i32
    %c0_i32_0 = arith.constant 0 : i32
    %2 = arith.cmpi ne, %1, %c0_i32_0 : i32
    scf.if %2 {
      %cst_10 = arith.constant 0.000000e+00 : f32
      %12 = vector.broadcast %cst_10 : f32 to vector<64x128xf32>
      %c0_11 = arith.constant 0 : index
      %c0_12 = arith.constant 0 : index
      %13 = vector.load %arg7[%c0_11, %c0_12] : memref<64x128xf32, #tpu.memory_space<vmem>>, vector<64x128xf32>
      tpu.vector_store %arg7[%c0_11, %c0_12], %12 {strides = array<i32>} : memref<64x128xf32, #tpu.memory_space<vmem>>, vector<64x128xf32>,
    } else {
    }
    %c0 = arith.constant 0 : index
    %c0_1 = arith.constant 0 : index
    %3 = vector.load %arg7[%c0, %c0_1] : memref<64x128xf32, #tpu.memory_space<vmem>>, vector<64x128xf32>
    %c0_2 = arith.constant 0 : index
    %c0_3 = arith.constant 0 : index
    %4 = vector.load %arg2[%c0_2, %c0_3] : memref<64x288xbf16, #tpu.memory_space<vmem>>, vector<64x288xbf16>
    %c0_4 = arith.constant 0 : index
    %c0_5 = arith.constant 0 : index
    %5 = vector.load %arg3[%c0_4, %c0_5] : memref<288x128xbf16, #tpu.memory_space<vmem>>, vector<288x128xbf16>
    %cst = arith.constant dense<0.000000e+00> : vector<64x128xf32>
    %6 = tpu.matmul %4, %5, %cst {dimension_numbers = #tpu.dot_dimension_numbers<[1], [0], [0], [1], [0, 0, 1, 1], [], []>} : vector<64x288xbf16>, vector<288x128xbf16>, vector<64x128xf32> -> vector<64x128xf32>
    %7 = arith.addf %3, %6 : vector<64x128xf32>
    %c0_6 = arith.constant 0 : index
    %c0_7 = arith.constant 0 : index
    %8 = vector.load %arg7[%c0_6, %c0_7] : memref<64x128xf32, #tpu.memory_space<vmem>>, vector<64x128xf32>
    tpu.vector_store %arg7[%c0_6, %c0_7], %7 {strides = array<i32>} : memref<64x128xf32, #tpu.memory_space<vmem>>, vector<64x128xf32>,
    %c0_i32_8 = arith.constant 0 : i32
    %9 = arith.cmpi eq, %arg1, %c0_i32_8 : i32
    %10 = arith.extui %9 : i1 to i32
    %c0_i32_9 = arith.constant 0 : i32
    %11 = arith.cmpi ne, %10, %c0_i32_9 : i32
    scf.if %11 {
      %c0_10 = arith.constant 0 : index
      %c0_11 = arith.constant 0 : index
      %12 = vector.load %arg7[%c0_10, %c0_11] : memref<64x128xf32, #tpu.memory_space<vmem>>, vector<64x128xf32>
      %c0_12 = arith.constant 0 : index
      %c0_13 = arith.constant 0 : index
      %13 = vector.load %arg4[%c0_12, %c0_13] : memref<64x1xf32, #tpu.memory_space<vmem>>, vector<64x1xf32>
      %14 = vector.broadcast %13 : vector<64x1xf32> to vector<64x128xf32>
      %15 = arith.mulf %12, %14 : vector<64x128xf32>
      %c0_14 = arith.constant 0 : index
      %c0_15 = arith.constant 0 : index
      %16 = vector.load %arg5[%c0_14, %c0_15] : memref<64x1xf32, #tpu.memory_space<vmem>>, vector<64x1xf32>
      %17 = vector.broadcast %16 : vector<64x1xf32> to vector<64x128xf32>
      %18 = arith.addf %15, %17 : vector<64x128xf32>
      %cst_16 = arith.constant 0.000000e+00 : f32
      %19 = vector.broadcast %cst_16 : f32 to vector<64x128xf32>
      %20 = arith.maximumf %18, %19 : vector<64x128xf32>
      %c0_17 = arith.constant 0 : index
      %c0_18 = arith.constant 0 : index
      %21 = vector.load %arg6[%c0_17, %c0_18] : memref<64x128xf32, #tpu.memory_space<vmem>>, vector<64x128xf32>
      tpu.vector_store %arg6[%c0_17, %c0_18], %20 {strides = array<i32>} : memref<64x128xf32, #tpu.memory_space<vmem>>, vector<64x128xf32>,
    } else {
    }
    return
  }
  func.func @transform_0(%arg0: i32, %arg1: i32) -> (i32, i32) {
    %c0_i32 = arith.constant 0 : i32
    %c0_i32_0 = arith.constant 0 : i32
    return %c0_i32, %arg1 : i32, i32
  }
  func.func @transform_1(%arg0: i32, %arg1: i32) -> (i32, i32) {
    %c0_i32 = arith.constant 0 : i32
    return %arg1, %arg0 : i32, i32
  }
  func.func @transform_2(%arg0: i32, %arg1: i32) -> (i32, i32) {
    %c0_i32 = arith.constant 0 : i32
    %c0_i32_0 = arith.constant 0 : i32
    %c0_i32_1 = arith.constant 0 : i32
    return %c0_i32, %c0_i32_0 : i32, i32
  }
  func.func @transform_3(%arg0: i32, %arg1: i32) -> (i32, i32) {
    %c0_i32 = arith.constant 0 : i32
    %c0_i32_0 = arith.constant 0 : i32
    %c0_i32_1 = arith.constant 0 : i32
    return %c0_i32, %c0_i32_0 : i32, i32
  }
  func.func @transform_4(%arg0: i32, %arg1: i32) -> (i32, i32) {
    %c0_i32 = arith.constant 0 : i32
    %c0_i32_0 = arith.constant 0 : i32
    return %c0_i32, %arg0 : i32, i32
  }
}

module attributes {stable_mosaic.version = 11 : i64} {
  func.func @_conv_bn_kernel(%arg0: i32, %arg1: i32, %arg2: memref<64x576xbf16, #tpu.memory_space<vmem>>, %arg3: memref<576x128xbf16, #tpu.memory_space<vmem>>, %arg4: memref<64x1xf32, #tpu.memory_space<vmem>>, %arg5: memref<64x1xf32, #tpu.memory_space<vmem>>, %arg6: memref<64x32xbf16, #tpu.memory_space<vmem>>, %arg7: memref<32x128xbf16, #tpu.memory_space<vmem>>, %arg8: memref<64x1xf32, #tpu.memory_space<vmem>>, %arg9: memref<64x1xf32, #tpu.memory_space<vmem>>, %arg10: memref<64x128xf32, #tpu.memory_space<vmem>>, %arg11: memref<64x128xf32, #tpu.memory_space<vmem>>) attributes {dimension_semantics = [#tpu.dimension_semantics<parallel>, #tpu.dimension_semantics<arbitrary>], iteration_bounds = array<i64: 1, 1>, scalar_prefetch = 0 : i64, scratch_operands = 1 : i64, tpu.core_type = #tpu.core_type<tc>, window_params = [{transform_indices = @transform_0, window_bounds = array<i64: 64, 576>}, {transform_indices = @transform_1, window_bounds = array<i64: 576, 128>}, {pipeline_mode = #tpu.pipeline_mode<synchronous>, transform_indices = @transform_2, window_bounds = array<i64: 64, 1>}, {pipeline_mode = #tpu.pipeline_mode<synchronous>, transform_indices = @transform_3, window_bounds = array<i64: 64, 1>}, {pipeline_mode = #tpu.pipeline_mode<synchronous>, transform_indices = @transform_4, window_bounds = array<i64: 64, 32>}, {transform_indices = @transform_5, window_bounds = array<i64: 32, 128>}, {pipeline_mode = #tpu.pipeline_mode<synchronous>, transform_indices = @transform_6, window_bounds = array<i64: 64, 1>}, {pipeline_mode = #tpu.pipeline_mode<synchronous>, transform_indices = @transform_7, window_bounds = array<i64: 64, 1>}, {transform_indices = @transform_8, window_bounds = array<i64: 64, 128>}]} {
    %c0_i32 = arith.constant 0 : i32
    %0 = arith.cmpi eq, %arg1, %c0_i32 : i32
    %1 = arith.extui %0 : i1 to i32
    %c0_i32_0 = arith.constant 0 : i32
    %2 = arith.cmpi ne, %1, %c0_i32_0 : i32
    scf.if %2 {
      %cst_10 = arith.constant 0.000000e+00 : f32
      %12 = vector.broadcast %cst_10 : f32 to vector<64x128xf32>
      %c0_11 = arith.constant 0 : index
      %c0_12 = arith.constant 0 : index
      %13 = vector.load %arg11[%c0_11, %c0_12] : memref<64x128xf32, #tpu.memory_space<vmem>>, vector<64x128xf32>
      tpu.vector_store %arg11[%c0_11, %c0_12], %12 {strides = array<i32>} : memref<64x128xf32, #tpu.memory_space<vmem>>, vector<64x128xf32>,
    } else {
    }
    %c0 = arith.constant 0 : index
    %c0_1 = arith.constant 0 : index
    %3 = vector.load %arg11[%c0, %c0_1] : memref<64x128xf32, #tpu.memory_space<vmem>>, vector<64x128xf32>
    %c0_2 = arith.constant 0 : index
    %c0_3 = arith.constant 0 : index
    %4 = vector.load %arg2[%c0_2, %c0_3] : memref<64x576xbf16, #tpu.memory_space<vmem>>, vector<64x576xbf16>
    %c0_4 = arith.constant 0 : index
    %c0_5 = arith.constant 0 : index
    %5 = vector.load %arg3[%c0_4, %c0_5] : memref<576x128xbf16, #tpu.memory_space<vmem>>, vector<576x128xbf16>
    %cst = arith.constant dense<0.000000e+00> : vector<64x128xf32>
    %6 = tpu.matmul %4, %5, %cst {dimension_numbers = #tpu.dot_dimension_numbers<[1], [0], [0], [1], [0, 0, 1, 1], [], []>} : vector<64x576xbf16>, vector<576x128xbf16>, vector<64x128xf32> -> vector<64x128xf32>
    %7 = arith.addf %3, %6 : vector<64x128xf32>
    %c0_6 = arith.constant 0 : index
    %c0_7 = arith.constant 0 : index
    %8 = vector.load %arg11[%c0_6, %c0_7] : memref<64x128xf32, #tpu.memory_space<vmem>>, vector<64x128xf32>
    tpu.vector_store %arg11[%c0_6, %c0_7], %7 {strides = array<i32>} : memref<64x128xf32, #tpu.memory_space<vmem>>, vector<64x128xf32>,
    %c0_i32_8 = arith.constant 0 : i32
    %9 = arith.cmpi eq, %arg1, %c0_i32_8 : i32
    %10 = arith.extui %9 : i1 to i32
    %c0_i32_9 = arith.constant 0 : i32
    %11 = arith.cmpi ne, %10, %c0_i32_9 : i32
    scf.if %11 {
      %c0_10 = arith.constant 0 : index
      %c0_11 = arith.constant 0 : index
      %12 = vector.load %arg11[%c0_10, %c0_11] : memref<64x128xf32, #tpu.memory_space<vmem>>, vector<64x128xf32>
      %c0_12 = arith.constant 0 : index
      %c0_13 = arith.constant 0 : index
      %13 = vector.load %arg4[%c0_12, %c0_13] : memref<64x1xf32, #tpu.memory_space<vmem>>, vector<64x1xf32>
      %14 = vector.broadcast %13 : vector<64x1xf32> to vector<64x128xf32>
      %15 = arith.mulf %12, %14 : vector<64x128xf32>
      %c0_14 = arith.constant 0 : index
      %c0_15 = arith.constant 0 : index
      %16 = vector.load %arg5[%c0_14, %c0_15] : memref<64x1xf32, #tpu.memory_space<vmem>>, vector<64x1xf32>
      %17 = vector.broadcast %16 : vector<64x1xf32> to vector<64x128xf32>
      %18 = arith.addf %15, %17 : vector<64x128xf32>
      %c0_16 = arith.constant 0 : index
      %c0_17 = arith.constant 0 : index
      %19 = vector.load %arg6[%c0_16, %c0_17] : memref<64x32xbf16, #tpu.memory_space<vmem>>, vector<64x32xbf16>
      %c0_18 = arith.constant 0 : index
      %c0_19 = arith.constant 0 : index
      %20 = vector.load %arg7[%c0_18, %c0_19] : memref<32x128xbf16, #tpu.memory_space<vmem>>, vector<32x128xbf16>
      %cst_20 = arith.constant dense<0.000000e+00> : vector<64x128xf32>
      %21 = tpu.matmul %19, %20, %cst_20 {dimension_numbers = #tpu.dot_dimension_numbers<[1], [0], [0], [1], [0, 0, 1, 1], [], []>} : vector<64x32xbf16>, vector<32x128xbf16>, vector<64x128xf32> -> vector<64x128xf32>
      %c0_21 = arith.constant 0 : index
      %c0_22 = arith.constant 0 : index
      %22 = vector.load %arg8[%c0_21, %c0_22] : memref<64x1xf32, #tpu.memory_space<vmem>>, vector<64x1xf32>
      %23 = vector.broadcast %22 : vector<64x1xf32> to vector<64x128xf32>
      %24 = arith.mulf %21, %23 : vector<64x128xf32>
      %25 = arith.addf %18, %24 : vector<64x128xf32>
      %c0_23 = arith.constant 0 : index
      %c0_24 = arith.constant 0 : index
      %26 = vector.load %arg9[%c0_23, %c0_24] : memref<64x1xf32, #tpu.memory_space<vmem>>, vector<64x1xf32>
      %27 = vector.broadcast %26 : vector<64x1xf32> to vector<64x128xf32>
      %28 = arith.addf %25, %27 : vector<64x128xf32>
      %cst_25 = arith.constant 0.000000e+00 : f32
      %29 = vector.broadcast %cst_25 : f32 to vector<64x128xf32>
      %30 = arith.maximumf %28, %29 : vector<64x128xf32>
      %c0_26 = arith.constant 0 : index
      %c0_27 = arith.constant 0 : index
      %31 = vector.load %arg10[%c0_26, %c0_27] : memref<64x128xf32, #tpu.memory_space<vmem>>, vector<64x128xf32>
      tpu.vector_store %arg10[%c0_26, %c0_27], %30 {strides = array<i32>} : memref<64x128xf32, #tpu.memory_space<vmem>>, vector<64x128xf32>,
    } else {
    }
    return
  }
  func.func @transform_0(%arg0: i32, %arg1: i32) -> (i32, i32) {
    %c0_i32 = arith.constant 0 : i32
    %c0_i32_0 = arith.constant 0 : i32
    return %c0_i32, %arg1 : i32, i32
  }
  func.func @transform_1(%arg0: i32, %arg1: i32) -> (i32, i32) {
    %c0_i32 = arith.constant 0 : i32
    return %arg1, %arg0 : i32, i32
  }
  func.func @transform_2(%arg0: i32, %arg1: i32) -> (i32, i32) {
    %c0_i32 = arith.constant 0 : i32
    %c0_i32_0 = arith.constant 0 : i32
    %c0_i32_1 = arith.constant 0 : i32
    return %c0_i32, %c0_i32_0 : i32, i32
  }
  func.func @transform_3(%arg0: i32, %arg1: i32) -> (i32, i32) {
    %c0_i32 = arith.constant 0 : i32
    %c0_i32_0 = arith.constant 0 : i32
    %c0_i32_1 = arith.constant 0 : i32
    return %c0_i32, %c0_i32_0 : i32, i32
  }
  func.func @transform_4(%arg0: i32, %arg1: i32) -> (i32, i32) {
    %c0_i32 = arith.constant 0 : i32
    %c0_i32_0 = arith.constant 0 : i32
    %c0_i32_1 = arith.constant 0 : i32
    return %c0_i32, %c0_i32_0 : i32, i32
  }
  func.func @transform_5(%arg0: i32, %arg1: i32) -> (i32, i32) {
    %c0_i32 = arith.constant 0 : i32
    %c0_i32_0 = arith.constant 0 : i32
    return %c0_i32, %arg0 : i32, i32
  }
  func.func @transform_6(%arg0: i32, %arg1: i32) -> (i32, i32) {
    %c0_i32 = arith.constant 0 : i32
    %c0_i32_0 = arith.constant 0 : i32
    %c0_i32_1 = arith.constant 0 : i32
    return %c0_i32, %c0_i32_0 : i32, i32
  }
  func.func @transform_7(%arg0: i32, %arg1: i32) -> (i32, i32) {
    %c0_i32 = arith.constant 0 : i32
    %c0_i32_0 = arith.constant 0 : i32
    %c0_i32_1 = arith.constant 0 : i32
    return %c0_i32, %c0_i32_0 : i32, i32
  }
  func.func @transform_8(%arg0: i32, %arg1: i32) -> (i32, i32) {
    %c0_i32 = arith.constant 0 : i32
    %c0_i32_0 = arith.constant 0 : i32
    return %c0_i32, %arg0 : i32, i32
  }
}

module attributes {stable_mosaic.version = 11 : i64} {
  func.func @_conv_bn_kernel(%arg0: i32, %arg1: i32, %arg2: memref<64x576xbf16, #tpu.memory_space<vmem>>, %arg3: memref<576x128xbf16, #tpu.memory_space<vmem>>, %arg4: memref<64x1xf32, #tpu.memory_space<vmem>>, %arg5: memref<64x1xf32, #tpu.memory_space<vmem>>, %arg6: memref<64x128xf32, #tpu.memory_space<vmem>>, %arg7: memref<64x128xf32, #tpu.memory_space<vmem>>, %arg8: memref<64x128xf32, #tpu.memory_space<vmem>>) attributes {dimension_semantics = [#tpu.dimension_semantics<parallel>, #tpu.dimension_semantics<arbitrary>], iteration_bounds = array<i64: 1, 1>, scalar_prefetch = 0 : i64, scratch_operands = 1 : i64, tpu.core_type = #tpu.core_type<tc>, window_params = [{transform_indices = @transform_0, window_bounds = array<i64: 64, 576>}, {transform_indices = @transform_1, window_bounds = array<i64: 576, 128>}, {pipeline_mode = #tpu.pipeline_mode<synchronous>, transform_indices = @transform_2, window_bounds = array<i64: 64, 1>}, {pipeline_mode = #tpu.pipeline_mode<synchronous>, transform_indices = @transform_3, window_bounds = array<i64: 64, 1>}, {transform_indices = @transform_4, window_bounds = array<i64: 64, 128>}, {transform_indices = @transform_5, window_bounds = array<i64: 64, 128>}]} {
    %c0_i32 = arith.constant 0 : i32
    %0 = arith.cmpi eq, %arg1, %c0_i32 : i32
    %1 = arith.extui %0 : i1 to i32
    %c0_i32_0 = arith.constant 0 : i32
    %2 = arith.cmpi ne, %1, %c0_i32_0 : i32
    scf.if %2 {
      %cst_10 = arith.constant 0.000000e+00 : f32
      %12 = vector.broadcast %cst_10 : f32 to vector<64x128xf32>
      %c0_11 = arith.constant 0 : index
      %c0_12 = arith.constant 0 : index
      %13 = vector.load %arg8[%c0_11, %c0_12] : memref<64x128xf32, #tpu.memory_space<vmem>>, vector<64x128xf32>
      tpu.vector_store %arg8[%c0_11, %c0_12], %12 {strides = array<i32>} : memref<64x128xf32, #tpu.memory_space<vmem>>, vector<64x128xf32>,
    } else {
    }
    %c0 = arith.constant 0 : index
    %c0_1 = arith.constant 0 : index
    %3 = vector.load %arg8[%c0, %c0_1] : memref<64x128xf32, #tpu.memory_space<vmem>>, vector<64x128xf32>
    %c0_2 = arith.constant 0 : index
    %c0_3 = arith.constant 0 : index
    %4 = vector.load %arg2[%c0_2, %c0_3] : memref<64x576xbf16, #tpu.memory_space<vmem>>, vector<64x576xbf16>
    %c0_4 = arith.constant 0 : index
    %c0_5 = arith.constant 0 : index
    %5 = vector.load %arg3[%c0_4, %c0_5] : memref<576x128xbf16, #tpu.memory_space<vmem>>, vector<576x128xbf16>
    %cst = arith.constant dense<0.000000e+00> : vector<64x128xf32>
    %6 = tpu.matmul %4, %5, %cst {dimension_numbers = #tpu.dot_dimension_numbers<[1], [0], [0], [1], [0, 0, 1, 1], [], []>} : vector<64x576xbf16>, vector<576x128xbf16>, vector<64x128xf32> -> vector<64x128xf32>
    %7 = arith.addf %3, %6 : vector<64x128xf32>
    %c0_6 = arith.constant 0 : index
    %c0_7 = arith.constant 0 : index
    %8 = vector.load %arg8[%c0_6, %c0_7] : memref<64x128xf32, #tpu.memory_space<vmem>>, vector<64x128xf32>
    tpu.vector_store %arg8[%c0_6, %c0_7], %7 {strides = array<i32>} : memref<64x128xf32, #tpu.memory_space<vmem>>, vector<64x128xf32>,
    %c0_i32_8 = arith.constant 0 : i32
    %9 = arith.cmpi eq, %arg1, %c0_i32_8 : i32
    %10 = arith.extui %9 : i1 to i32
    %c0_i32_9 = arith.constant 0 : i32
    %11 = arith.cmpi ne, %10, %c0_i32_9 : i32
    scf.if %11 {
      %c0_10 = arith.constant 0 : index
      %c0_11 = arith.constant 0 : index
      %12 = vector.load %arg8[%c0_10, %c0_11] : memref<64x128xf32, #tpu.memory_space<vmem>>, vector<64x128xf32>
      %c0_12 = arith.constant 0 : index
      %c0_13 = arith.constant 0 : index
      %13 = vector.load %arg4[%c0_12, %c0_13] : memref<64x1xf32, #tpu.memory_space<vmem>>, vector<64x1xf32>
      %14 = vector.broadcast %13 : vector<64x1xf32> to vector<64x128xf32>
      %15 = arith.mulf %12, %14 : vector<64x128xf32>
      %c0_14 = arith.constant 0 : index
      %c0_15 = arith.constant 0 : index
      %16 = vector.load %arg5[%c0_14, %c0_15] : memref<64x1xf32, #tpu.memory_space<vmem>>, vector<64x1xf32>
      %17 = vector.broadcast %16 : vector<64x1xf32> to vector<64x128xf32>
      %18 = arith.addf %15, %17 : vector<64x128xf32>
      %c0_16 = arith.constant 0 : index
      %c0_17 = arith.constant 0 : index
      %19 = vector.load %arg6[%c0_16, %c0_17] : memref<64x128xf32, #tpu.memory_space<vmem>>, vector<64x128xf32>
      %20 = arith.addf %18, %19 : vector<64x128xf32>
      %cst_18 = arith.constant 0.000000e+00 : f32
      %21 = vector.broadcast %cst_18 : f32 to vector<64x128xf32>
      %22 = arith.maximumf %20, %21 : vector<64x128xf32>
      %c0_19 = arith.constant 0 : index
      %c0_20 = arith.constant 0 : index
      %23 = vector.load %arg7[%c0_19, %c0_20] : memref<64x128xf32, #tpu.memory_space<vmem>>, vector<64x128xf32>
      tpu.vector_store %arg7[%c0_19, %c0_20], %22 {strides = array<i32>} : memref<64x128xf32, #tpu.memory_space<vmem>>, vector<64x128xf32>,
    } else {
    }
    return
  }
  func.func @transform_0(%arg0: i32, %arg1: i32) -> (i32, i32) {
    %c0_i32 = arith.constant 0 : i32
    %c0_i32_0 = arith.constant 0 : i32
    return %c0_i32, %arg1 : i32, i32
  }
  func.func @transform_1(%arg0: i32, %arg1: i32) -> (i32, i32) {
    %c0_i32 = arith.constant 0 : i32
    return %arg1, %arg0 : i32, i32
  }
  func.func @transform_2(%arg0: i32, %arg1: i32) -> (i32, i32) {
    %c0_i32 = arith.constant 0 : i32
    %c0_i32_0 = arith.constant 0 : i32
    %c0_i32_1 = arith.constant 0 : i32
    return %c0_i32, %c0_i32_0 : i32, i32
  }
  func.func @transform_3(%arg0: i32, %arg1: i32) -> (i32, i32) {
    %c0_i32 = arith.constant 0 : i32
    %c0_i32_0 = arith.constant 0 : i32
    %c0_i32_1 = arith.constant 0 : i32
    return %c0_i32, %c0_i32_0 : i32, i32
  }
  func.func @transform_4(%arg0: i32, %arg1: i32) -> (i32, i32) {
    %c0_i32 = arith.constant 0 : i32
    %c0_i32_0 = arith.constant 0 : i32
    return %c0_i32, %arg0 : i32, i32
  }
  func.func @transform_5(%arg0: i32, %arg1: i32) -> (i32, i32) {
    %c0_i32 = arith.constant 0 : i32
    %c0_i32_0 = arith.constant 0 : i32
    return %c0_i32, %arg0 : i32, i32
  }
}

module attributes {stable_mosaic.version = 11 : i64} {
  func.func @_conv_bn_kernel(%arg0: i32, %arg1: i32, %arg2: memref<64x576xbf16, #tpu.memory_space<vmem>>, %arg3: memref<576x128xbf16, #tpu.memory_space<vmem>>, %arg4: memref<64x1xf32, #tpu.memory_space<vmem>>, %arg5: memref<64x1xf32, #tpu.memory_space<vmem>>, %arg6: memref<64x128xf32, #tpu.memory_space<vmem>>, %arg7: memref<64x128xf32, #tpu.memory_space<vmem>>) attributes {dimension_semantics = [#tpu.dimension_semantics<parallel>, #tpu.dimension_semantics<arbitrary>], iteration_bounds = array<i64: 1, 1>, scalar_prefetch = 0 : i64, scratch_operands = 1 : i64, tpu.core_type = #tpu.core_type<tc>, window_params = [{transform_indices = @transform_0, window_bounds = array<i64: 64, 576>}, {transform_indices = @transform_1, window_bounds = array<i64: 576, 128>}, {pipeline_mode = #tpu.pipeline_mode<synchronous>, transform_indices = @transform_2, window_bounds = array<i64: 64, 1>}, {pipeline_mode = #tpu.pipeline_mode<synchronous>, transform_indices = @transform_3, window_bounds = array<i64: 64, 1>}, {transform_indices = @transform_4, window_bounds = array<i64: 64, 128>}]} {
    %c0_i32 = arith.constant 0 : i32
    %0 = arith.cmpi eq, %arg1, %c0_i32 : i32
    %1 = arith.extui %0 : i1 to i32
    %c0_i32_0 = arith.constant 0 : i32
    %2 = arith.cmpi ne, %1, %c0_i32_0 : i32
    scf.if %2 {
      %cst_10 = arith.constant 0.000000e+00 : f32
      %12 = vector.broadcast %cst_10 : f32 to vector<64x128xf32>
      %c0_11 = arith.constant 0 : index
      %c0_12 = arith.constant 0 : index
      %13 = vector.load %arg7[%c0_11, %c0_12] : memref<64x128xf32, #tpu.memory_space<vmem>>, vector<64x128xf32>
      tpu.vector_store %arg7[%c0_11, %c0_12], %12 {strides = array<i32>} : memref<64x128xf32, #tpu.memory_space<vmem>>, vector<64x128xf32>,
    } else {
    }
    %c0 = arith.constant 0 : index
    %c0_1 = arith.constant 0 : index
    %3 = vector.load %arg7[%c0, %c0_1] : memref<64x128xf32, #tpu.memory_space<vmem>>, vector<64x128xf32>
    %c0_2 = arith.constant 0 : index
    %c0_3 = arith.constant 0 : index
    %4 = vector.load %arg2[%c0_2, %c0_3] : memref<64x576xbf16, #tpu.memory_space<vmem>>, vector<64x576xbf16>
    %c0_4 = arith.constant 0 : index
    %c0_5 = arith.constant 0 : index
    %5 = vector.load %arg3[%c0_4, %c0_5] : memref<576x128xbf16, #tpu.memory_space<vmem>>, vector<576x128xbf16>
    %cst = arith.constant dense<0.000000e+00> : vector<64x128xf32>
    %6 = tpu.matmul %4, %5, %cst {dimension_numbers = #tpu.dot_dimension_numbers<[1], [0], [0], [1], [0, 0, 1, 1], [], []>} : vector<64x576xbf16>, vector<576x128xbf16>, vector<64x128xf32> -> vector<64x128xf32>
    %7 = arith.addf %3, %6 : vector<64x128xf32>
    %c0_6 = arith.constant 0 : index
    %c0_7 = arith.constant 0 : index
    %8 = vector.load %arg7[%c0_6, %c0_7] : memref<64x128xf32, #tpu.memory_space<vmem>>, vector<64x128xf32>
    tpu.vector_store %arg7[%c0_6, %c0_7], %7 {strides = array<i32>} : memref<64x128xf32, #tpu.memory_space<vmem>>, vector<64x128xf32>,
    %c0_i32_8 = arith.constant 0 : i32
    %9 = arith.cmpi eq, %arg1, %c0_i32_8 : i32
    %10 = arith.extui %9 : i1 to i32
    %c0_i32_9 = arith.constant 0 : i32
    %11 = arith.cmpi ne, %10, %c0_i32_9 : i32
    scf.if %11 {
      %c0_10 = arith.constant 0 : index
      %c0_11 = arith.constant 0 : index
      %12 = vector.load %arg7[%c0_10, %c0_11] : memref<64x128xf32, #tpu.memory_space<vmem>>, vector<64x128xf32>
      %c0_12 = arith.constant 0 : index
      %c0_13 = arith.constant 0 : index
      %13 = vector.load %arg4[%c0_12, %c0_13] : memref<64x1xf32, #tpu.memory_space<vmem>>, vector<64x1xf32>
      %14 = vector.broadcast %13 : vector<64x1xf32> to vector<64x128xf32>
      %15 = arith.mulf %12, %14 : vector<64x128xf32>
      %c0_14 = arith.constant 0 : index
      %c0_15 = arith.constant 0 : index
      %16 = vector.load %arg5[%c0_14, %c0_15] : memref<64x1xf32, #tpu.memory_space<vmem>>, vector<64x1xf32>
      %17 = vector.broadcast %16 : vector<64x1xf32> to vector<64x128xf32>
      %18 = arith.addf %15, %17 : vector<64x128xf32>
      %cst_16 = arith.constant 0.000000e+00 : f32
      %19 = vector.broadcast %cst_16 : f32 to vector<64x128xf32>
      %20 = arith.maximumf %18, %19 : vector<64x128xf32>
      %c0_17 = arith.constant 0 : index
      %c0_18 = arith.constant 0 : index
      %21 = vector.load %arg6[%c0_17, %c0_18] : memref<64x128xf32, #tpu.memory_space<vmem>>, vector<64x128xf32>
      tpu.vector_store %arg6[%c0_17, %c0_18], %20 {strides = array<i32>} : memref<64x128xf32, #tpu.memory_space<vmem>>, vector<64x128xf32>,
    } else {
    }
    return
  }
  func.func @transform_0(%arg0: i32, %arg1: i32) -> (i32, i32) {
    %c0_i32 = arith.constant 0 : i32
    %c0_i32_0 = arith.constant 0 : i32
    return %c0_i32, %arg1 : i32, i32
  }
  func.func @transform_1(%arg0: i32, %arg1: i32) -> (i32, i32) {
    %c0_i32 = arith.constant 0 : i32
    return %arg1, %arg0 : i32, i32
  }
  func.func @transform_2(%arg0: i32, %arg1: i32) -> (i32, i32) {
    %c0_i32 = arith.constant 0 : i32
    %c0_i32_0 = arith.constant 0 : i32
    %c0_i32_1 = arith.constant 0 : i32
    return %c0_i32, %c0_i32_0 : i32, i32
  }
  func.func @transform_3(%arg0: i32, %arg1: i32) -> (i32, i32) {
    %c0_i32 = arith.constant 0 : i32
    %c0_i32_0 = arith.constant 0 : i32
    %c0_i32_1 = arith.constant 0 : i32
    return %c0_i32, %c0_i32_0 : i32, i32
  }
  func.func @transform_4(%arg0: i32, %arg1: i32) -> (i32, i32) {
    %c0_i32 = arith.constant 0 : i32
    %c0_i32_0 = arith.constant 0 : i32
    return %c0_i32, %arg0 : i32, i32
  }
}

</mosaic_0001>

<bundles_post_ra>
// kernel: _lambda_.18
= control target key start
LH: loop header
LB: loop body
LE: loop exit
PB: predicated region body
PF: predicated region fallthrough
CT: control target
= control target key end

     0   :  { %v521_v2 = vmov 0   ;;  %vm269_vm0 = vcmask 1040384   ;;  %vm270_vm1 = vcmask 1041408   ;;  %v522_v36 = vmov 65535   ;;  %s684_s1 = inlined_call_operand.vmem [shape: bf16[147,512], index: 1, kind: input, shape index: {}]   ;;  %s685_s0 = inlined_call_operand.vmem [shape: bf16[8,147], index: 0, kind: input, shape index: {}]   ;;  %s686_s2 = inlined_call_operand.vmem [shape: f32[8,1], index: 2, kind: input, shape index: {}]   ;;  %s687_s3 = inlined_call_operand.vmem [shape: f32[8,1], index: 3, kind: input, shape index: {}]   ;;  %s688_s4 = inlined_call_operand.vmem [shape: f32[8,512], index: 4, kind: output, shape index: {}]  }
   0x1   :  { %v461_v0 = vld [vmem:[%s684_s1 + $0x4] ss:$16 sps:$4 sm:$0xff]   ;;  %v463_v1 = vld [vmem:[%s684_s1 + $0xc] ss:$16 sps:$4 sm:$0xff]   ;;  %460 = vset.pattern.permute.xlu0 %v521_v2  ;;  %v465_v3 = vld [vmem:[%s684_s1] ss:$16 sps:$4 sm:$0xff]  }
   0x2   :  { %285 = vmatprep.subr.bf16.mxu0 %v461_v0  ;;  %v466_v4 = vld [vmem:[%s684_s1 + $0x8] ss:$16 sps:$4 sm:$0xff]   ;;  %326 = vmatprep.subr.bf16.mxu1 %v463_v1  ;;  %v467_v5 = vld [vmem:[%s684_s1 + $0x24] ss:$16 sps:$4 sm:$0xff]   ;;  %v469_v6 = vld [vmem:[%s684_s1 + $0x2c] ss:$16 sps:$4 sm:$0xff]  }
   0x3   :  { %286 = vmatpush1.bf16.msra.mxu0 %v465_v3  ;;  %327 = vmatpush1.bf16.msra.mxu1 %v466_v4  ;;  %v471_v7 = vld [vmem:[%s684_s1 + $0x20] ss:$16 sps:$4 sm:$0xff]   ;;  %v472_v8 = vld [vmem:[%s684_s1 + $0x28] ss:$16 sps:$4 sm:$0xff]   ;;  %v473_v9 = vld [vmem:[%s684_s1 + $0x44] ss:$16 sps:$4 sm:$0xff]  }
   0x4   :  { %287 = vmatprep.subr.bf16.mxu0 %v467_v5  ;;  %328 = vmatprep.subr.bf16.mxu1 %v469_v6  ;;  %v475_v10 = vld [vmem:[%s684_s1 + $0x4c] ss:$16 sps:$4 sm:$0xff]   ;;  %v477_v11 = vld [vmem:[%s684_s1 + $0x40] ss:$16 sps:$4 sm:$0xff]   ;;  %v478_v12 = vld [vmem:[%s684_s1 + $0x48] ss:$16 sps:$4 sm:$0xff]  }
   0x5   :  { %v479_v13 = vld [vmem:[%s684_s1 + $0x64] ss:$16 sps:$4 sm:$0xff]   ;;  %v481_v14 = vld [vmem:[%s684_s1 + $0x6c] ss:$16 sps:$4 sm:$0xff]   ;;  %v483_v15 = vld [vmem:[%s684_s1 + $0x60] ss:$16 sps:$4 sm:$0xff]  }
   0x6   :  { %v484_v16 = vld [vmem:[%s684_s1 + $0x68] ss:$16 sps:$4 sm:$0xff]   ;;  %v485_v17 = vld [vmem:[%s684_s1 + $0x84] ss:$16 sps:$4 sm:$0xff]   ;;  %v487_v18 = vld [vmem:[%s684_s1 + $0x8c] ss:$16 sps:$4 sm:$0xff]  }
   0x7   :  { %288 = vmatpush1.bf16.msra.mxu0 %v471_v7  ;;  %329 = vmatpush1.bf16.msra.mxu1 %v472_v8  ;;  %v489_v19 = vld [vmem:[%s684_s1 + $0x80] ss:$16 sps:$4 sm:$0xff]   ;;  %v490_v20 = vld [vmem:[%s684_s1 + $0x88] ss:$16 sps:$4 sm:$0xff]   ;;  %v491_v21 = vld [vmem:[%s684_s1 + $0xa4] ss:$16 sps:$4 sm:$0xff]  }
   0x8   :  { %289 = vmatprep.subr.bf16.mxu0 %v473_v9  ;;  %330 = vmatprep.subr.bf16.mxu1 %v475_v10  ;;  %v493_v22 = vld [vmem:[%s684_s1 + $0xac] ss:$16 sps:$4 sm:$0xff]   ;;  %v495_v23 = vld [vmem:[%s684_s1 + $0xa0] ss:$16 sps:$4 sm:$0xff]   ;;  %v496_v24 = vld [vmem:[%s684_s1 + $0xa8] ss:$16 sps:$4 sm:$0xff]  }
   0x9   :  { %v497_v25 = vld [vmem:[%s684_s1 + $0xc4] ss:$16 sps:$4 sm:$0xff]   ;;  %v499_v26 = vld [vmem:[%s684_s1 + $0xcc] ss:$16 sps:$4 sm:$0xff]   ;;  %v501_v27 = vld [vmem:[%s684_s1 + $0xc0] ss:$16 sps:$4 sm:$0xff]  }
   0xa   :  { %v502_v28 = vld [vmem:[%s684_s1 + $0xc8] ss:$16 sps:$4 sm:$0xff]   ;;  %v30_v29 = vld [vmem:[%s685_s0] sm:$0xff]  ;;  %v505_v31 = vld [vmem:[%s684_s1 + $0xec] ss:$16 sps:$4 sm:$0xff]   ;;  %v271_v37 = vsel %vm269_vm0, 4294967295, %v522_v36 }
   0xb   :  { %290 = vmatpush1.bf16.msra.mxu0 %v477_v11  ;;  %331 = vmatpush1.bf16.msra.mxu1 %v478_v12  ;;  %v503_v30 = vld [vmem:[%s684_s1 + $0xe4] ss:$16 sps:$4 sm:$0xff]   ;;  %v68_v34 = vld [vmem:[%s684_s1 + $0x128] sm:$0x33]  ;;  %v415_v35 = vcombine.high %v30_v29, %v30_v29  ;;  %vm265_vm2 = vcmask 154624   ;;  %v272_v45 = vsel %vm270_vm1, %v271_v37, 0  ;;  %v414_v54 = vcombine.low %v30_v29, %v30_v29 }
   0xc   :  { %291 = vmatprep.subr.bf16.mxu0 %v479_v13  ;;  %332 = vmatprep.subr.bf16.mxu1 %v481_v14  ;;  %v382_v32 = vld [vmem:[%s686_s2] sm:$0xff]  ;;  %v508_v39 = vld [vmem:[%s684_s1 + $0xe8] ss:$16 sps:$4 sm:$0xff]   ;;  %v511_v42 = vld [vmem:[%s684_s1 + $0x10c] ss:$16 sps:$4 sm:$0xff]   ;;  %v455_v44 = vcombine.high %v68_v34, %v68_v34  ;;  %v454_v49 = vcombine.low %v68_v34, %v68_v34 }
   0xd   :  { %v67_v33 = vld [vmem:[%s684_s1 + $0x120] sm:$0x33]  ;;  %385 = vperm.xlu0 %460, %v382_v32   ;;  %456 = vmatprep.mubr.msk.bf16.mxu0 %vm265_vm2, %v415_v35  ;;  %v514_v47 = vld [vmem:[%s684_s1 + $0x108] ss:$16 sps:$4 sm:$0xff]  }
   0xe   :  { %v507_v38 = vld [vmem:[%s684_s1 + $0xe0] ss:$16 sps:$4 sm:$0xff]   ;;  %v509_v41 = vld [vmem:[%s684_s1 + $0x104] ss:$16 sps:$4 sm:$0xff]   ;;  %v453_v43 = vcombine.high %v67_v33, %v67_v33  ;;  %457 = vmatprep.mubr.msk.bf16.mxu1 %vm265_vm2, %v415_v35  ;;  %v452_v48 = vcombine.low %v67_v33, %v67_v33  ;;  %v283_v51 = vand.u32 %v455_v44, %v272_v45  ;;  %v280_v53 = vand.u32 %v454_v49, %v272_v45 }
   0xf   :  { %292 = vmatpush1.bf16.msra.mxu0 %v483_v15  ;;  %333 = vmatpush1.bf16.msra.mxu1 %v484_v16  ;;  %v392_v40 = vld [vmem:[%s687_s3] sm:$0xff] }
  0x10   :  { %293 = vmatprep.subr.bf16.mxu0 %v485_v17  ;;  %334 = vmatprep.subr.bf16.mxu1 %v487_v18  ;;  %v513_v46 = vld [vmem:[%s684_s1 + $0x100] ss:$16 sps:$4 sm:$0xff]   ;;  %v277_v50 = vand.u32 %v453_v43, %v272_v45  ;;  %v274_v52 = vand.u32 %v452_v48, %v272_v45 }
  0x11   :  { %395 = vperm.xlu0 %460, %v392_v40  }
  0x13   :  { %294 = vmatpush1.bf16.msra.mxu0 %v489_v19  ;;  %335 = vmatpush1.bf16.msra.mxu1 %v490_v20 }
  0x14   :  { %295 = vmatprep.subr.bf16.mxu0 %v491_v21  ;;  %336 = vmatprep.subr.bf16.mxu1 %v493_v22 }
  0x17   :  { %296 = vmatpush1.bf16.msra.mxu0 %v495_v23  ;;  %337 = vmatpush1.bf16.msra.mxu1 %v496_v24 }
  0x18   :  { %297 = vmatprep.subr.bf16.mxu0 %v497_v25  ;;  %338 = vmatprep.subr.bf16.mxu1 %v499_v26 }
  0x1b   :  { %298 = vmatpush1.bf16.msra.mxu0 %v501_v27  ;;  %339 = vmatpush1.bf16.msra.mxu1 %v502_v28 }
  0x1c   :  { %299 = vmatprep.subr.bf16.mxu0 %v503_v30  ;;  %340 = vmatprep.subr.bf16.mxu1 %v505_v31 }
  0x1f   :  { %300 = vmatpush1.bf16.msra.mxu0 %v507_v38  ;;  %341 = vmatpush1.bf16.msra.mxu1 %v508_v39 }
  0x20   :  { %301 = vmatprep.subr.bf16.mxu0 %v509_v41  ;;  %342 = vmatprep.subr.bf16.mxu1 %v511_v42 }
  0x23   :  { %302 = vmatpush1.bf16.msra.mxu0 %v513_v46  ;;  %343 = vmatpush1.bf16.msra.mxu1 %v514_v47 }
  0x24   :  { %303 = vmatprep.subr.bf16.mxu0 %v277_v50  ;;  %344 = vmatprep.subr.bf16.mxu1 %v283_v51 }
  0x27   :  { %304 = vmatpush1.bf16.msra.mxu0 %v274_v52  ;;  %345 = vmatpush1.bf16.msra.mxu1 %v280_v53 }
  0x2a   :  { %318 = vmatmul.mubr.bf16.vlgmr.msra.gmra.mrb[0].mxu0 %v414_v54  ;;  %359 = vmatmul.mubr.bf16.vlgmr.msra.gmra.mrb[0].mxu1 %v414_v54 }
  0x8c   :  { %v386_v55 = vpop.permute.xlu0 %385 }
  0x90   :  { %v396_v56 = vpop.permute.xlu0 %395 }
  0xfd   :  { %v319_v57 = vpop.f32.mrb[0].mxu0  ;;  %v360_v58 = vpop.f32.mrb[0].mxu1 }
  0xfe   :  { %v388_v59 = vmul.f32 %v386_v55, %v319_v57  ;;  %v390_v60 = vmul.f32 %v386_v55, %v360_v58  ;;  %v321_v61 = vpop.f32.mrb[1].mxu0  ;;  %v362_v62 = vpop.f32.mrb[1].mxu1 }
  0xff   :  { %v389_v63 = vmul.f32 %v386_v55, %v321_v61  ;;  %v391_v0 = vmul.f32 %v386_v55, %v362_v62  ;;  %v323_v1 = vpop.f32.mrb[2].mxu0  ;;  %v364_v2 = vpop.f32.mrb[2].mxu1 }
 0x100   :  { %v398_v3 = vadd.f32 %v396_v56, %v388_v59  ;;  %v400_v4 = vadd.f32 %v396_v56, %v390_v60  ;;  %v324_v5 = vpop.f32.mrb[3].mxu0  ;;  %v365_v6 = vpop.f32.mrb[3].mxu1 }
 0x101   :  { %v399_v7 = vadd.f32 %v396_v56, %v389_v63  ;;  %v401_v8 = vadd.f32 %v396_v56, %v391_v0 }
 0x102   :  { %v402_v9 = vmax.f32 %v398_v3, 0.0  ;;  %v404_v10 = vmax.f32 %v400_v4, 0.0 }
 0x103   :  { %v403_v11 = vmax.f32 %v399_v7, 0.0  ;;  %v405_v12 = vmax.f32 %v401_v8, 0.0 }
 0x104   :  { %406 = vst [vmem:[%s688_s4] sm:$0xff] %v402_v9  ;;  %408 = vst [vmem:[%s688_s4 + $0x10] sm:$0xff] %v404_v10 }
 0x105   :  { %407 = vst [vmem:[%s688_s4 + $0x8] sm:$0xff] %v403_v11  ;;  %409 = vst [vmem:[%s688_s4 + $0x18] sm:$0xff] %v405_v12 }

// kernel: _lambda_.19
= control target key start
LH: loop header
LB: loop body
LE: loop exit
PB: predicated region body
PF: predicated region fallthrough
CT: control target
= control target key end

     0   :  { %s86_s0 = inlined_call_operand.vmem [shape: f32[9,8,128], index: 0, kind: input, shape index: {}]   ;;  %s87_s1 = inlined_call_operand.vmem [shape: f32[8,128], index: 1, kind: output, shape index: {}]  }
   0x1   :  { %v8_v0 = vld [vmem:[%s86_s0] sm:$0xff]  ;;  %v38_v1 = vld [vmem:[%s86_s0 + $0x8] sm:$0xff]  ;;  %v39_v2 = vld [vmem:[%s86_s0 + $0x10] sm:$0xff] }
   0x2   :  { %v11_v3 = vmax.f32 %v8_v0, %v38_v1  ;;  %v40_v4 = vld [vmem:[%s86_s0 + $0x18] sm:$0xff]  ;;  %v41_v6 = vld [vmem:[%s86_s0 + $0x20] sm:$0xff]  ;;  %v42_v8 = vld [vmem:[%s86_s0 + $0x28] sm:$0xff] }
   0x3   :  { %v43_v10 = vld [vmem:[%s86_s0 + $0x30] sm:$0xff]  ;;  %v44_v12 = vld [vmem:[%s86_s0 + $0x38] sm:$0xff]  ;;  %v45_v14 = vld [vmem:[%s86_s0 + $0x40] sm:$0xff] }
   0x4   :  { %v14_v5 = vmax.f32 %v11_v3, %v39_v2 }
   0x6   :  { %v17_v7 = vmax.f32 %v14_v5, %v40_v4 }
   0x8   :  { %v20_v9 = vmax.f32 %v17_v7, %v41_v6 }
   0xa   :  { %v23_v11 = vmax.f32 %v20_v9, %v42_v8 }
   0xc   :  { %v26_v13 = vmax.f32 %v23_v11, %v43_v10 }
   0xe   :  { %v29_v15 = vmax.f32 %v26_v13, %v44_v12 }
  0x10   :  { %v32_v16 = vmax.f32 %v29_v15, %v45_v14 }
  0x12   :  { %33 = vst [vmem:[%s87_s1] sm:$0xff] %v32_v16 }

// kernel: _lambda_.20
= control target key start
LH: loop header
LB: loop body
LE: loop exit
PB: predicated region body
PF: predicated region fallthrough
CT: control target
= control target key end

     0   :  { %v170_v0 = vmov 0.0   ;;  %vm171_vm0 = vmmov 0   ;;  %v172_v2 = vmov 0   ;;  %vm65_vm1 = vcmask 1043456   ;;  %s225_s1 = inlined_call_operand.vmem [shape: bf16[72,128], index: 1, kind: input, shape index: {}]   ;;  %s226_s2 = inlined_call_operand.vmem [shape: f32[8,1], index: 2, kind: input, shape index: {}]   ;;  %s227_s3 = inlined_call_operand.vmem [shape: f32[8,1], index: 3, kind: input, shape index: {}]   ;;  %s228_s0 = inlined_call_operand.vmem [shape: bf16[8,72], index: 0, kind: input, shape index: {}]   ;;  %s229_s4 = inlined_call_operand.vmem [shape: f32[8,128], index: 4, kind: output, shape index: {}]  }
   0x1   :  { %147 = vmatprep.subr.bf16.mxu0 %v170_v0  ;;  %v165_v1 = vld [vmem:[%s225_s1] sm:$0xff]   ;;  %157 = vmatprep.mubr.msk.bf16.mxu0 %vm171_vm0, %v170_v0  ;;  %v166_v3 = vld [vmem:[%s225_s1 + $0x8] sm:$0xff]   ;;  %v167_v5 = vld [vmem:[%s225_s1 + $0x10] sm:$0xff]   ;;  %vm61_vm2 = vcmask 588800  }
   0x2   :  { %164 = vset.pattern.permute.xlu0 %v172_v2  ;;  %148 = vmatpush3.bf16.msra.mxu0 %v165_v1  ;;  %v115_v4 = vld [vmem:[%s226_s2] sm:$0xff]  ;;  %v168_v7 = vld [vmem:[%s225_s1 + $0x18] sm:$0xff]  }
   0x3   :  { %149 = vmatprep.subr.bf16.mxu0 %v170_v0  ;;  %118 = vperm.xlu0 %164, %v115_v4   ;;  %v122_v6 = vld [vmem:[%s227_s3] sm:$0xff] }
   0x4   :  { %v169_v8 = vld [vmem:[%s225_s1 + $0x20] ss:$0 sps:$4 sm:$0xff]  }
   0x5   :  { %v67_v9 = vsel %vm65_vm1, %v169_v8, 0  ;;  %v24_v10 = vld [vmem:[%s228_s0] sm:$0xf] }
   0x6   :  { %150 = vmatpush3.bf16.msra.mxu0 %v166_v3 }
   0x7   :  { %151 = vmatprep.subr.bf16.mxu0 %v170_v0  ;;  %125 = vperm.xlu0 %164, %v122_v6  }
   0xa   :  { %152 = vmatpush3.bf16.msra.mxu0 %v167_v5 }
   0xb   :  { %153 = vmatprep.subr.bf16.mxu0 %v170_v0 }
   0xe   :  { %154 = vmatpush3.bf16.msra.mxu0 %v168_v7 }
   0xf   :  { %155 = vmatprep.subr.bf16.mxu0 %v170_v0 }
  0x12   :  { %156 = vmatpush3.bf16.msra.mxu0 %v67_v9 }
  0x15   :  { %158 = vmatmul.mubr.msk.bf16.vlgmr.msra.gmra.mrb[0].mxu0 %vm61_vm2, %v24_v10 }
  0x82   :  { %v119_v11 = vpop.permute.xlu0 %118 }
  0x86   :  { %v126_v15 = vpop.permute.xlu0 %125 }
  0xe8   :  { %v103_v12 = vpop.f32.mrb[0].mxu0 }
  0xe9   :  { %v121_v13 = vmul.f32 %v119_v11, %v103_v12  ;;  %v159_v14 = vpop.f32.mrb[1].mxu0 }
  0xea   :  { %v106_v16 = vpop.f32.mrb[2].mxu0 }
  0xeb   :  { %v128_v17 = vadd.f32 %v126_v15, %v121_v13  ;;  %v160_v18 = vpop.f32.mrb[3].mxu0 }
  0xed   :  { %v129_v19 = vmax.f32 %v128_v17, 0.0 }
  0xef   :  { %130 = vst [vmem:[%s229_s4] sm:$0xff] %v129_v19 }

// kernel: _lambda_.21
= control target key start
LH: loop header
LB: loop body
LE: loop exit
PB: predicated region body
PF: predicated region fallthrough
CT: control target
= control target key end

     0   :  { %v175_v0 = vmov 0.0   ;;  %vm176_vm0 = vmmov 0   ;;  %v177_v2 = vmov 0   ;;  %vm68_vm1 = vcmask 1043456   ;;  %s238_s1 = inlined_call_operand.vmem [shape: bf16[72,128], index: 1, kind: input, shape index: {}]   ;;  %s239_s2 = inlined_call_operand.vmem [shape: f32[8,1], index: 2, kind: input, shape index: {}]   ;;  %s240_s3 = inlined_call_operand.vmem [shape: f32[8,1], index: 3, kind: input, shape index: {}]   ;;  %s241_s0 = inlined_call_operand.vmem [shape: bf16[8,72], index: 0, kind: input, shape index: {}]   ;;  %s242_s4 = inlined_call_operand.vmem [shape: f32[8,128], index: 4, kind: input, shape index: {}]   ;;  %s243_s5 = inlined_call_operand.vmem [shape: f32[8,128], index: 5, kind: output, shape index: {}]  }
   0x1   :  { %152 = vmatprep.subr.bf16.mxu0 %v175_v0  ;;  %v170_v1 = vld [vmem:[%s238_s1] sm:$0xff]   ;;  %162 = vmatprep.mubr.msk.bf16.mxu0 %vm176_vm0, %v175_v0  ;;  %v171_v3 = vld [vmem:[%s238_s1 + $0x8] sm:$0xff]   ;;  %v172_v5 = vld [vmem:[%s238_s1 + $0x10] sm:$0xff]   ;;  %vm64_vm2 = vcmask 588800  }
   0x2   :  { %169 = vset.pattern.permute.xlu0 %v177_v2  ;;  %153 = vmatpush3.bf16.msra.mxu0 %v170_v1  ;;  %v118_v4 = vld [vmem:[%s239_s2] sm:$0xff]  ;;  %v173_v7 = vld [vmem:[%s238_s1 + $0x18] sm:$0xff]  }
   0x3   :  { %154 = vmatprep.subr.bf16.mxu0 %v175_v0  ;;  %121 = vperm.xlu0 %169, %v118_v4   ;;  %v125_v6 = vld [vmem:[%s240_s3] sm:$0xff] }
   0x4   :  { %v174_v8 = vld [vmem:[%s238_s1 + $0x20] ss:$0 sps:$4 sm:$0xff]  }
   0x5   :  { %v70_v9 = vsel %vm68_vm1, %v174_v8, 0  ;;  %v27_v10 = vld [vmem:[%s241_s0] sm:$0xf] }
   0x6   :  { %155 = vmatpush3.bf16.msra.mxu0 %v171_v3  ;;  %v132_v16 = vld [vmem:[%s242_s4] sm:$0xff] }
   0x7   :  { %156 = vmatprep.subr.bf16.mxu0 %v175_v0  ;;  %128 = vperm.xlu0 %169, %v125_v6  }
   0xa   :  { %157 = vmatpush3.bf16.msra.mxu0 %v172_v5 }
   0xb   :  { %158 = vmatprep.subr.bf16.mxu0 %v175_v0 }
   0xe   :  { %159 = vmatpush3.bf16.msra.mxu0 %v173_v7 }
   0xf   :  { %160 = vmatprep.subr.bf16.mxu0 %v175_v0 }
  0x12   :  { %161 = vmatpush3.bf16.msra.mxu0 %v70_v9 }
  0x15   :  { %163 = vmatmul.mubr.msk.bf16.vlgmr.msra.gmra.mrb[0].mxu0 %vm64_vm2, %v27_v10 }
  0x82   :  { %v122_v11 = vpop.permute.xlu0 %121 }
  0x86   :  { %v129_v15 = vpop.permute.xlu0 %128 }
  0xe8   :  { %v106_v12 = vpop.f32.mrb[0].mxu0 }
  0xe9   :  { %v124_v13 = vmul.f32 %v122_v11, %v106_v12  ;;  %v164_v14 = vpop.f32.mrb[1].mxu0 }
  0xea   :  { %v109_v17 = vpop.f32.mrb[2].mxu0 }
  0xeb   :  { %v131_v18 = vadd.f32 %v129_v15, %v124_v13  ;;  %v165_v19 = vpop.f32.mrb[3].mxu0 }
  0xed   :  { %v133_v20 = vadd.f32 %v132_v16, %v131_v18 }
  0xef   :  { %v134_v21 = vmax.f32 %v133_v20, 0.0 }
  0xf1   :  { %135 = vst [vmem:[%s243_s5] sm:$0xff] %v134_v21 }

// kernel: _lambda_.24
= control target key start
LH: loop header
LB: loop body
LE: loop exit
PB: predicated region body
PF: predicated region fallthrough
CT: control target
= control target key end

     0   :  { %v201_v0 = vmov 0.0   ;;  %vm202_vm0 = vmmov 0   ;;  %v203_v2 = vmov 0   ;;  %vm73_vm1 = vcmask 1043456   ;;  %s265_s1 = inlined_call_operand.vmem [shape: bf16[72,128], index: 1, kind: input, shape index: {}]   ;;  %s266_s2 = inlined_call_operand.vmem [shape: f32[16,1], index: 2, kind: input, shape index: {}]   ;;  %s267_s0 = inlined_call_operand.vmem [shape: bf16[16,72], index: 0, kind: input, shape index: {}]   ;;  %s268_s3 = inlined_call_operand.vmem [shape: f32[16,1], index: 3, kind: input, shape index: {}]   ;;  %s269_s4 = inlined_call_operand.vmem [shape: f32[16,128], index: 4, kind: output, shape index: {}]  }
   0x1   :  { %176 = vmatprep.subr.bf16.mxu0 %v201_v0  ;;  %v195_v1 = vld [vmem:[%s265_s1] sm:$0xff]   ;;  %186 = vmatprep.mubr.msk.bf16.mxu0 %vm202_vm0, %v201_v0  ;;  %v196_v3 = vld [vmem:[%s265_s1 + $0x8] sm:$0xff]   ;;  %v197_v5 = vld [vmem:[%s265_s1 + $0x10] sm:$0xff]   ;;  %vm69_vm2 = vcmask 588800  }
   0x2   :  { %193 = vset.pattern.permute.xlu0 %v203_v2  ;;  %194 = vset.pattern.permute.xlu1 %v203_v2  ;;  %v127_v4 = vld [vmem:[%s266_s2] sm:$0xff]  ;;  %v128_v7 = vld [vmem:[%s266_s2 + $0x8] sm:$0xff]  ;;  %v198_v9 = vld [vmem:[%s265_s1 + $0x18] sm:$0xff]  }
   0x3   :  { %177 = vmatpush3.bf16.msra.mxu0 %v195_v1  ;;  %131 = vperm.xlu0 %193, %v127_v4   ;;  %v141_v6 = vld [vmem:[%s268_s3] sm:$0xff]  ;;  %v142_v8 = vld [vmem:[%s268_s3 + $0x8] sm:$0xff] }
   0x4   :  { %178 = vmatprep.subr.bf16.mxu0 %v201_v0  ;;  %145 = vperm.xlu1 %194, %v141_v6   ;;  %v199_v10 = vld [vmem:[%s265_s1 + $0x20] ss:$0 sps:$4 sm:$0xff]  }
   0x5   :  { %v75_v11 = vsel %vm73_vm1, %v199_v10, 0  ;;  %v200_v12 = vld [vmem:[%s267_s0] sm:$0xff]  }
   0x7   :  { %179 = vmatpush3.bf16.msra.mxu0 %v196_v3  ;;  %136 = vperm.xlu0 %193, %v128_v7  }
   0x8   :  { %180 = vmatprep.subr.bf16.mxu0 %v201_v0  ;;  %150 = vperm.xlu1 %194, %v142_v8  }
   0xb   :  { %181 = vmatpush3.bf16.msra.mxu0 %v197_v5 }
   0xc   :  { %182 = vmatprep.subr.bf16.mxu0 %v201_v0 }
   0xf   :  { %183 = vmatpush3.bf16.msra.mxu0 %v198_v9 }
  0x10   :  { %184 = vmatprep.subr.bf16.mxu0 %v201_v0 }
  0x13   :  { %185 = vmatpush3.bf16.msra.mxu0 %v75_v11 }
  0x16   :  { %187 = vmatmul.mubr.msk.bf16.vlgmr.msra.gmra.mrb[0].mxu0 %vm69_vm2, %v200_v12 }
  0x82   :  { %v132_v13 = vpop.permute.xlu0 %131 }
  0x83   :  { %v146_v14 = vpop.permute.xlu1 %145 }
  0x86   :  { %v137_v18 = vpop.permute.xlu0 %136 }
  0x87   :  { %v151_v23 = vpop.permute.xlu1 %150 }
  0xe9   :  { %v111_v15 = vpop.f32.mrb[0].mxu0 }
  0xea   :  { %v139_v16 = vmul.f32 %v132_v13, %v111_v15  ;;  %v188_v17 = vpop.f32.mrb[1].mxu0 }
  0xeb   :  { %v114_v19 = vpop.f32.mrb[2].mxu0 }
  0xec   :  { %v153_v20 = vadd.f32 %v146_v14, %v139_v16  ;;  %v140_v21 = vmul.f32 %v137_v18, %v114_v19  ;;  %v189_v22 = vpop.f32.mrb[3].mxu0 }
  0xee   :  { %v155_v24 = vmax.f32 %v153_v20, 0.0  ;;  %v154_v25 = vadd.f32 %v151_v23, %v140_v21 }
  0xf0   :  { %157 = vst [vmem:[%s269_s4] sm:$0xff] %v155_v24  ;;  %v156_v26 = vmax.f32 %v154_v25, 0.0 }
  0xf2   :  { %158 = vst [vmem:[%s269_s4 + $0x8] sm:$0xff] %v156_v26 }

// kernel: _lambda_.26
= control target key start
LH: loop header
LB: loop body
LE: loop exit
PB: predicated region body
PF: predicated region fallthrough
CT: control target
= control target key end

     0   :  { %v226_v0 = vmov 0   ;;  %vm109_vm0 = vcmask 130048   ;;  %s303_s1 = inlined_call_operand.vmem [shape: bf16[144,128], index: 1, kind: input, shape index: {}]   ;;  %s304_s0 = inlined_call_operand.vmem [shape: bf16[16,144], index: 0, kind: input, shape index: {}]   ;;  %s305_s2 = inlined_call_operand.vmem [shape: f32[16,1], index: 2, kind: input, shape index: {}]   ;;  %s306_s3 = inlined_call_operand.vmem [shape: f32[16,1], index: 3, kind: input, shape index: {}]   ;;  %s307_s4 = inlined_call_operand.vmem [shape: f32[16,128], index: 4, kind: output, shape index: {}]  }
   0x1   :  { %113 = vmatprep.subr.bf16.mxu0 %v226_v0  ;;  %v214_v1 = vld [vmem:[%s303_s1] sm:$0xff]   ;;  %212 = vset.pattern.permute.xlu0 %v226_v0  ;;  %v215_v2 = vld [vmem:[%s303_s1 + $0x8] sm:$0xff]   ;;  %v216_v3 = vld [vmem:[%s303_s1 + $0x10] sm:$0xff]  }
   0x2   :  { %213 = vset.pattern.permute.xlu1 %v226_v0  ;;  %114 = vmatpush1.bf16.msra.mxu0 %v214_v1  ;;  %v217_v4 = vld [vmem:[%s303_s1 + $0x18] sm:$0xff]   ;;  %v225_v5 = vld [vmem:[%s304_s0 + $0x4] ss:$8 sps:$4 sm:$0xff]   ;;  %v220_v12 = vld [vmem:[%s303_s1 + $0x30] sm:$0xff]  }
   0x3   :  { %115 = vmatprep.subr.bf16.mxu0 %v226_v0  ;;  %v163_v6 = vld [vmem:[%s305_s2] sm:$0xff]  ;;  %210 = vmatprep.mubr.msk.bf16.mxu0 %vm109_vm0, %v225_v5  ;;  %v164_v8 = vld [vmem:[%s305_s2 + $0x8] sm:$0xff]  ;;  %v221_v13 = vld [vmem:[%s303_s1 + $0x38] sm:$0xff]  }
   0x4   :  { %v177_v7 = vld [vmem:[%s306_s3] sm:$0xff]  ;;  %167 = vperm.xlu0 %212, %v163_v6   ;;  %v178_v9 = vld [vmem:[%s306_s3 + $0x8] sm:$0xff] }
   0x5   :  { %181 = vperm.xlu1 %213, %v177_v7   ;;  %v218_v10 = vld [vmem:[%s303_s1 + $0x20] sm:$0xff]   ;;  %v219_v11 = vld [vmem:[%s303_s1 + $0x28] sm:$0xff]  }
   0x6   :  { %116 = vmatpush1.bf16.msra.mxu0 %v215_v2  ;;  %v222_v14 = vld [vmem:[%s303_s1 + $0x40] sm:$0xff]  }
   0x7   :  { %117 = vmatprep.subr.bf16.mxu0 %v226_v0  ;;  %v223_v15 = vld [vmem:[%s304_s0] ss:$8 sps:$4 sm:$0xff]  }
   0x8   :  { %172 = vperm.xlu0 %212, %v164_v8  }
   0x9   :  { %186 = vperm.xlu1 %213, %v178_v9  }
   0xa   :  { %118 = vmatpush1.bf16.msra.mxu0 %v216_v3 }
   0xb   :  { %119 = vmatprep.subr.bf16.mxu0 %v226_v0 }
   0xe   :  { %120 = vmatpush1.bf16.msra.mxu0 %v217_v4 }
   0xf   :  { %121 = vmatprep.subr.bf16.mxu0 %v226_v0 }
  0x12   :  { %122 = vmatpush1.bf16.msra.mxu0 %v218_v10 }
  0x13   :  { %123 = vmatprep.subr.bf16.mxu0 %v226_v0 }
  0x16   :  { %124 = vmatpush1.bf16.msra.mxu0 %v219_v11 }
  0x17   :  { %125 = vmatprep.subr.bf16.mxu0 %v226_v0 }
  0x1a   :  { %126 = vmatpush1.bf16.msra.mxu0 %v220_v12 }
  0x1b   :  { %127 = vmatprep.subr.bf16.mxu0 %v226_v0 }
  0x1e   :  { %128 = vmatpush1.bf16.msra.mxu0 %v221_v13 }
  0x1f   :  { %129 = vmatprep.subr.bf16.mxu0 %v226_v0 }
  0x22   :  { %130 = vmatpush1.bf16.msra.mxu0 %v222_v14 }
  0x25   :  { %146 = vmatmul.mubr.bf16.vlgmr.msra.gmra.mrb[0].mxu0 %v223_v15 }
  0x83   :  { %v168_v16 = vpop.permute.xlu0 %167 }
  0x84   :  { %v182_v17 = vpop.permute.xlu1 %181 }
  0x87   :  { %v173_v21 = vpop.permute.xlu0 %172 }
  0x88   :  { %v187_v26 = vpop.permute.xlu1 %186 }
  0xf8   :  { %v147_v18 = vpop.f32.mrb[0].mxu0 }
  0xf9   :  { %v175_v19 = vmul.f32 %v168_v16, %v147_v18  ;;  %v149_v20 = vpop.f32.mrb[1].mxu0 }
  0xfa   :  { %v150_v22 = vpop.f32.mrb[2].mxu0 }
  0xfb   :  { %v189_v23 = vadd.f32 %v182_v17, %v175_v19  ;;  %v176_v24 = vmul.f32 %v173_v21, %v150_v22  ;;  %v152_v25 = vpop.f32.mrb[3].mxu0 }
  0xfd   :  { %v191_v27 = vmax.f32 %v189_v23, 0.0  ;;  %v190_v28 = vadd.f32 %v187_v26, %v176_v24 }
  0xff   :  { %193 = vst [vmem:[%s307_s4] sm:$0xff] %v191_v27  ;;  %v192_v29 = vmax.f32 %v190_v28, 0.0 }
 0x101   :  { %194 = vst [vmem:[%s307_s4 + $0x8] sm:$0xff] %v192_v29 }

// kernel: _lambda_.25
= control target key start
LH: loop header
LB: loop body
LE: loop exit
PB: predicated region body
PF: predicated region fallthrough
CT: control target
= control target key end

     0   :  { %v338_v0 = vmov 0   ;;  %v339_v2 = vmov 0.0   ;;  %vm340_vm0 = vmmov 0   ;;  %vm215_vm1 = vcmask 1043456   ;;  %s466_s1 = inlined_call_operand.vmem [shape: bf16[144,128], index: 1, kind: input, shape index: {}]   ;;  %s467_s5 = inlined_call_operand.vmem [shape: bf16[8,128], index: 5, kind: input, shape index: {}]   ;;  %s468_s4 = inlined_call_operand.vmem [shape: bf16[16,8], index: 4, kind: input, shape index: {}]   ;;  %s469_s0 = inlined_call_operand.vmem [shape: bf16[16,144], index: 0, kind: input, shape index: {}]   ;;  %s470_s3 = inlined_call_operand.vmem [shape: f32[16,1], index: 3, kind: input, shape index: {}]   ;;  %s471_s2 = inlined_call_operand.vmem [shape: f32[16,1], index: 2, kind: input, shape index: {}]   ;;  %s472_s6 = inlined_call_operand.vmem [shape: f32[16,1], index: 6, kind: input, shape index: {}]   ;;  %s473_s7 = inlined_call_operand.vmem [shape: f32[16,1], index: 7, kind: input, shape index: {}]   ;;  %s474_s8 = inlined_call_operand.vmem [shape: f32[16,128], index: 8, kind: output, shape index: {}]  }
   0x1   :  { %125 = vmatprep.subr.bf16.mxu0 %v338_v0  ;;  %v325_v1 = vld [vmem:[%s466_s1] sm:$0xff]   ;;  %314 = vmatprep.subr.bf16.mxu1 %v339_v2  ;;  %v326_v3 = vld [vmem:[%s466_s1 + $0x8] sm:$0xff]   ;;  %v327_v4 = vld [vmem:[%s466_s1 + $0x10] sm:$0xff]   ;;  %vm211_vm2 = vcmask 64512   ;;  %vm121_vm3 = vcmask 130048  }
   0x2   :  { %316 = vmatprep.mubr.msk.bf16.mxu1 %vm340_vm0, %v339_v2  ;;  %324 = vset.pattern.permute.xlu1 %v338_v0  ;;  %v205_v5 = vld [vmem:[%s467_s5] sm:$0xf]  ;;  %v328_v8 = vld [vmem:[%s466_s1 + $0x18] sm:$0xff]   ;;  %v337_v9 = vld [vmem:[%s469_s0 + $0x4] ss:$8 sps:$4 sm:$0xff]  }
   0x3   :  { %126 = vmatpush1.bf16.msra.mxu0 %v325_v1  ;;  %323 = vset.pattern.permute.xlu0 %v338_v0  ;;  %v217_v6 = vsel %vm215_vm1, %v205_v5, 0  ;;  %v333_v7 = vld [vmem:[%s468_s4] sm:$0xff]   ;;  %v190_v12 = vld [vmem:[%s470_s3 + $0x8] sm:$0xff]  ;;  %v331_v19 = vld [vmem:[%s466_s1 + $0x30] sm:$0xff]  }
   0x4   :  { %127 = vmatprep.subr.bf16.mxu0 %v338_v0  ;;  %315 = vmatpush3.bf16.msra.mxu1 %v217_v6  ;;  %v189_v10 = vld [vmem:[%s470_s3] sm:$0xff]  ;;  %v176_v14 = vld [vmem:[%s471_s2 + $0x8] sm:$0xff]  ;;  %v332_v21 = vld [vmem:[%s466_s1 + $0x38] sm:$0xff]  }
   0x5   :  { %193 = vperm.xlu1 %324, %v189_v10   ;;  %v175_v11 = vld [vmem:[%s471_s2] sm:$0xff]  ;;  %309 = vmatprep.mubr.msk.bf16.mxu0 %vm121_vm3, %v337_v9  ;;  %v261_v15 = vld [vmem:[%s472_s6 + $0x8] sm:$0xff] }
   0x6   :  { %179 = vperm.xlu0 %323, %v175_v11   ;;  %v329_v13 = vld [vmem:[%s466_s1 + $0x20] sm:$0xff]   ;;  %v330_v16 = vld [vmem:[%s466_s1 + $0x28] sm:$0xff]  }
   0x7   :  { %128 = vmatpush1.bf16.msra.mxu0 %v326_v3  ;;  %317 = vmatmul.mubr.msk.bf16.vlgmr.msra.gmra.mrb[0].mxu1 %vm211_vm2, %v333_v7  ;;  %v260_v17 = vld [vmem:[%s472_s6] sm:$0xff]  ;;  %v277_v18 = vld [vmem:[%s473_s7 + $0x8] sm:$0xff] }
   0x8   :  { %129 = vmatprep.subr.bf16.mxu0 %v338_v0  ;;  %v276_v20 = vld [vmem:[%s473_s7] sm:$0xff] }
   0x9   :  { %198 = vperm.xlu1 %324, %v190_v12   ;;  %v334_v22 = vld [vmem:[%s466_s1 + $0x40] sm:$0xff]  }
   0xa   :  { %184 = vperm.xlu0 %323, %v176_v14   ;;  %v335_v23 = vld [vmem:[%s469_s0] ss:$8 sps:$4 sm:$0xff]  }
   0xb   :  { %130 = vmatpush1.bf16.msra.mxu0 %v327_v4 }
   0xc   :  { %131 = vmatprep.subr.bf16.mxu0 %v338_v0 }
   0xd   :  { %269 = vperm.xlu1 %324, %v261_v15  }
   0xe   :  { %264 = vperm.xlu0 %323, %v260_v17  }
   0xf   :  { %132 = vmatpush1.bf16.msra.mxu0 %v328_v8 }
  0x10   :  { %133 = vmatprep.subr.bf16.mxu0 %v338_v0 }
  0x11   :  { %285 = vperm.xlu1 %324, %v277_v18  }
  0x12   :  { %280 = vperm.xlu0 %323, %v276_v20  }
  0x13   :  { %134 = vmatpush1.bf16.msra.mxu0 %v329_v13 }
  0x14   :  { %135 = vmatprep.subr.bf16.mxu0 %v338_v0 }
  0x17   :  { %136 = vmatpush1.bf16.msra.mxu0 %v330_v16 }
  0x18   :  { %137 = vmatprep.subr.bf16.mxu0 %v338_v0 }
  0x1b   :  { %138 = vmatpush1.bf16.msra.mxu0 %v331_v19 }
  0x1c   :  { %139 = vmatprep.subr.bf16.mxu0 %v338_v0 }
  0x1f   :  { %140 = vmatpush1.bf16.msra.mxu0 %v332_v21 }
  0x20   :  { %141 = vmatprep.subr.bf16.mxu0 %v338_v0 }
  0x23   :  { %142 = vmatpush1.bf16.msra.mxu0 %v334_v22 }
  0x26   :  { %158 = vmatmul.mubr.bf16.vlgmr.msra.gmra.mrb[0].mxu0 %v335_v23 }
  0x84   :  { %v194_v29 = vpop.permute.xlu1 %193 }
  0x85   :  { %v180_v28 = vpop.permute.xlu0 %179 }
  0x88   :  { %v199_v31 = vpop.permute.xlu1 %198 }
  0x89   :  { %v185_v30 = vpop.permute.xlu0 %184 }
  0x8c   :  { %v270_v36 = vpop.permute.xlu1 %269 }
  0x8d   :  { %v265_v32 = vpop.permute.xlu0 %264 }
  0x90   :  { %v286_v48 = vpop.permute.xlu1 %285 }
  0x91   :  { %v281_v45 = vpop.permute.xlu0 %280 }
  0xda   :  { %v253_v24 = vpop.f32.mrb[0].mxu1 }
  0xdb   :  { %v318_v25 = vpop.f32.mrb[1].mxu1  ;;  %v272_v38 = vmul.f32 %v265_v32, %v253_v24 }
  0xdc   :  { %v256_v26 = vpop.f32.mrb[2].mxu1 }
  0xdd   :  { %v319_v27 = vpop.f32.mrb[3].mxu1  ;;  %v273_v42 = vmul.f32 %v270_v36, %v256_v26 }
  0xf9   :  { %v159_v33 = vpop.f32.mrb[0].mxu0 }
  0xfa   :  { %v187_v34 = vmul.f32 %v180_v28, %v159_v33  ;;  %v161_v35 = vpop.f32.mrb[1].mxu0 }
  0xfb   :  { %v162_v37 = vpop.f32.mrb[2].mxu0 }
  0xfc   :  { %v201_v39 = vadd.f32 %v194_v29, %v187_v34  ;;  %v188_v40 = vmul.f32 %v185_v30, %v162_v37  ;;  %v164_v41 = vpop.f32.mrb[3].mxu0 }
  0xfe   :  { %v274_v43 = vadd.f32 %v272_v38, %v201_v39  ;;  %v202_v44 = vadd.f32 %v199_v31, %v188_v40 }
 0x100   :  { %v288_v46 = vadd.f32 %v281_v45, %v274_v43  ;;  %v275_v47 = vadd.f32 %v273_v42, %v202_v44 }
 0x102   :  { %v290_v49 = vmax.f32 %v288_v46, 0.0  ;;  %v289_v50 = vadd.f32 %v286_v48, %v275_v47 }
 0x104   :  { %292 = vst [vmem:[%s474_s8] sm:$0xff] %v290_v49  ;;  %v291_v51 = vmax.f32 %v289_v50, 0.0 }
 0x106   :  { %293 = vst [vmem:[%s474_s8 + $0x8] sm:$0xff] %v291_v51 }

// kernel: _lambda_.27
= control target key start
LH: loop header
LB: loop body
LE: loop exit
PB: predicated region body
PF: predicated region fallthrough
CT: control target
= control target key end

     0   :  { %v233_v0 = vmov 0   ;;  %vm112_vm0 = vcmask 130048   ;;  %s321_s1 = inlined_call_operand.vmem [shape: bf16[144,128], index: 1, kind: input, shape index: {}]   ;;  %s322_s0 = inlined_call_operand.vmem [shape: bf16[16,144], index: 0, kind: input, shape index: {}]   ;;  %s323_s2 = inlined_call_operand.vmem [shape: f32[16,1], index: 2, kind: input, shape index: {}]   ;;  %s324_s3 = inlined_call_operand.vmem [shape: f32[16,1], index: 3, kind: input, shape index: {}]   ;;  %s325_s4 = inlined_call_operand.vmem [shape: f32[16,128], index: 4, kind: input, shape index: {}]   ;;  %s326_s5 = inlined_call_operand.vmem [shape: f32[16,128], index: 5, kind: output, shape index: {}]  }
   0x1   :  { %116 = vmatprep.subr.bf16.mxu0 %v233_v0  ;;  %v221_v1 = vld [vmem:[%s321_s1] sm:$0xff]   ;;  %219 = vset.pattern.permute.xlu0 %v233_v0  ;;  %v222_v2 = vld [vmem:[%s321_s1 + $0x8] sm:$0xff]   ;;  %v223_v3 = vld [vmem:[%s321_s1 + $0x10] sm:$0xff]  }
   0x2   :  { %220 = vset.pattern.permute.xlu1 %v233_v0  ;;  %117 = vmatpush1.bf16.msra.mxu0 %v221_v1  ;;  %v224_v4 = vld [vmem:[%s321_s1 + $0x18] sm:$0xff]   ;;  %v232_v5 = vld [vmem:[%s322_s0 + $0x4] ss:$8 sps:$4 sm:$0xff]   ;;  %v227_v12 = vld [vmem:[%s321_s1 + $0x30] sm:$0xff]  }
   0x3   :  { %118 = vmatprep.subr.bf16.mxu0 %v233_v0  ;;  %v166_v6 = vld [vmem:[%s323_s2] sm:$0xff]  ;;  %217 = vmatprep.mubr.msk.bf16.mxu0 %vm112_vm0, %v232_v5  ;;  %v167_v8 = vld [vmem:[%s323_s2 + $0x8] sm:$0xff]  ;;  %v228_v13 = vld [vmem:[%s321_s1 + $0x38] sm:$0xff]  }
   0x4   :  { %v180_v7 = vld [vmem:[%s324_s3] sm:$0xff]  ;;  %170 = vperm.xlu0 %219, %v166_v6   ;;  %v181_v9 = vld [vmem:[%s324_s3 + $0x8] sm:$0xff] }
   0x5   :  { %184 = vperm.xlu1 %220, %v180_v7   ;;  %v225_v10 = vld [vmem:[%s321_s1 + $0x20] sm:$0xff]   ;;  %v226_v11 = vld [vmem:[%s321_s1 + $0x28] sm:$0xff]  }
   0x6   :  { %119 = vmatpush1.bf16.msra.mxu0 %v222_v2  ;;  %v229_v14 = vld [vmem:[%s321_s1 + $0x40] sm:$0xff]   ;;  %v195_v28 = vld [vmem:[%s325_s4 + $0x8] sm:$0xff] }
   0x7   :  { %120 = vmatprep.subr.bf16.mxu0 %v233_v0  ;;  %v230_v15 = vld [vmem:[%s322_s0] ss:$8 sps:$4 sm:$0xff]  }
   0x8   :  { %175 = vperm.xlu0 %219, %v167_v8   ;;  %v194_v22 = vld [vmem:[%s325_s4] sm:$0xff] }
   0x9   :  { %189 = vperm.xlu1 %220, %v181_v9  }
   0xa   :  { %121 = vmatpush1.bf16.msra.mxu0 %v223_v3 }
   0xb   :  { %122 = vmatprep.subr.bf16.mxu0 %v233_v0 }
   0xe   :  { %123 = vmatpush1.bf16.msra.mxu0 %v224_v4 }
   0xf   :  { %124 = vmatprep.subr.bf16.mxu0 %v233_v0 }
  0x12   :  { %125 = vmatpush1.bf16.msra.mxu0 %v225_v10 }
  0x13   :  { %126 = vmatprep.subr.bf16.mxu0 %v233_v0 }
  0x16   :  { %127 = vmatpush1.bf16.msra.mxu0 %v226_v11 }
  0x17   :  { %128 = vmatprep.subr.bf16.mxu0 %v233_v0 }
  0x1a   :  { %129 = vmatpush1.bf16.msra.mxu0 %v227_v12 }
  0x1b   :  { %130 = vmatprep.subr.bf16.mxu0 %v233_v0 }
  0x1e   :  { %131 = vmatpush1.bf16.msra.mxu0 %v228_v13 }
  0x1f   :  { %132 = vmatprep.subr.bf16.mxu0 %v233_v0 }
  0x22   :  { %133 = vmatpush1.bf16.msra.mxu0 %v229_v14 }
  0x25   :  { %149 = vmatmul.mubr.bf16.vlgmr.msra.gmra.mrb[0].mxu0 %v230_v15 }
  0x83   :  { %v171_v16 = vpop.permute.xlu0 %170 }
  0x84   :  { %v185_v17 = vpop.permute.xlu1 %184 }
  0x87   :  { %v176_v21 = vpop.permute.xlu0 %175 }
  0x88   :  { %v190_v27 = vpop.permute.xlu1 %189 }
  0xf8   :  { %v150_v18 = vpop.f32.mrb[0].mxu0 }
  0xf9   :  { %v178_v19 = vmul.f32 %v171_v16, %v150_v18  ;;  %v152_v20 = vpop.f32.mrb[1].mxu0 }
  0xfa   :  { %v153_v23 = vpop.f32.mrb[2].mxu0 }
  0xfb   :  { %v192_v24 = vadd.f32 %v185_v17, %v178_v19  ;;  %v179_v25 = vmul.f32 %v176_v21, %v153_v23  ;;  %v155_v26 = vpop.f32.mrb[3].mxu0 }
  0xfd   :  { %v196_v29 = vadd.f32 %v194_v22, %v192_v24  ;;  %v193_v30 = vadd.f32 %v190_v27, %v179_v25 }
  0xff   :  { %v198_v31 = vmax.f32 %v196_v29, 0.0  ;;  %v197_v32 = vadd.f32 %v195_v28, %v193_v30 }
 0x101   :  { %200 = vst [vmem:[%s326_s5] sm:$0xff] %v198_v31  ;;  %v199_v33 = vmax.f32 %v197_v32, 0.0 }
 0x103   :  { %201 = vst [vmem:[%s326_s5 + $0x8] sm:$0xff] %v199_v33 }

// kernel: _lambda_.28
= control target key start
LH: loop header
LB: loop body
LE: loop exit
PB: predicated region body
PF: predicated region fallthrough
CT: control target
= control target key end

     0   :  { %v314_v0 = vmov 0   ;;  %vm124_vm0 = vcmask 130048   ;;  %s435_s1 = inlined_call_operand.vmem [shape: bf16[144,128], index: 1, kind: input, shape index: {}]   ;;  %s436_s0 = inlined_call_operand.vmem [shape: bf16[32,144], index: 0, kind: input, shape index: {}]   ;;  %s437_s2 = inlined_call_operand.vmem [shape: f32[32,1], index: 2, kind: input, shape index: {}]   ;;  %s438_s3 = inlined_call_operand.vmem [shape: f32[32,1], index: 3, kind: input, shape index: {}]   ;;  %s439_s4 = inlined_call_operand.vmem [shape: f32[32,128], index: 4, kind: output, shape index: {}]  }
   0x1   :  { %131 = vmatprep.subr.bf16.mxu0 %v314_v0  ;;  %278 = vmatprep.subr.bf16.mxu1 %v314_v0  ;;  %v299_v1 = vld [vmem:[%s435_s1] sm:$0xff]   ;;  %v300_v2 = vld [vmem:[%s435_s1 + $0x8] sm:$0xff]   ;;  %v301_v3 = vld [vmem:[%s435_s1 + $0x10] sm:$0xff]  }
   0x2   :  { %298 = vset.pattern.permute.xlu1 %v314_v0  ;;  %297 = vset.pattern.permute.xlu0 %v314_v0  ;;  %v302_v4 = vld [vmem:[%s435_s1 + $0x18] sm:$0xff]   ;;  %v310_v5 = vld [vmem:[%s436_s0 + $0x4] ss:$8 sps:$4 sm:$0xff]   ;;  %v197_v7 = vld [vmem:[%s437_s2 + $0x10] sm:$0xff] }
   0x3   :  { %132 = vmatpush1.bf16.msra.mxu0 %v299_v1  ;;  %287 = vmatpush1.bf16.msra.mxu1 %v299_v1  ;;  %v313_v6 = vld [vmem:[%s436_s0 + $0x14] ss:$8 sps:$4 sm:$0xff]   ;;  %v195_v8 = vld [vmem:[%s437_s2] sm:$0xff]  ;;  %v196_v11 = vld [vmem:[%s437_s2 + $0x8] sm:$0xff] }
   0x4   :  { %133 = vmatprep.subr.bf16.mxu0 %v314_v0  ;;  %279 = vmatprep.subr.bf16.mxu1 %v314_v0  ;;  %v198_v9 = vld [vmem:[%s437_s2 + $0x18] sm:$0xff]  ;;  %v303_v10 = vld [vmem:[%s435_s1 + $0x20] sm:$0xff]   ;;  %v224_v12 = vld [vmem:[%s438_s3 + $0x8] sm:$0xff] }
   0x5   :  { %276 = vmatprep.mubr.msk.bf16.mxu0 %vm124_vm0, %v310_v5  ;;  %211 = vperm.xlu1 %298, %v197_v7   ;;  %v304_v13 = vld [vmem:[%s435_s1 + $0x28] sm:$0xff]   ;;  %v223_v14 = vld [vmem:[%s438_s3] sm:$0xff]  ;;  %v226_v15 = vld [vmem:[%s438_s3 + $0x18] sm:$0xff] }
   0x6   :  { %277 = vmatprep.mubr.msk.bf16.mxu1 %vm124_vm0, %v313_v6  ;;  %201 = vperm.xlu0 %297, %v195_v8   ;;  %v305_v16 = vld [vmem:[%s435_s1 + $0x30] sm:$0xff]   ;;  %v306_v18 = vld [vmem:[%s435_s1 + $0x38] sm:$0xff]   ;;  %v307_v19 = vld [vmem:[%s435_s1 + $0x40] sm:$0xff]  }
   0x7   :  { %134 = vmatpush1.bf16.msra.mxu0 %v300_v2  ;;  %288 = vmatpush1.bf16.msra.mxu1 %v300_v2  ;;  %v225_v17 = vld [vmem:[%s438_s3 + $0x10] sm:$0xff]  ;;  %v308_v20 = vld [vmem:[%s436_s0] ss:$8 sps:$4 sm:$0xff]  }
   0x8   :  { %135 = vmatprep.subr.bf16.mxu0 %v314_v0  ;;  %280 = vmatprep.subr.bf16.mxu1 %v314_v0  ;;  %v311_v21 = vld [vmem:[%s436_s0 + $0x10] ss:$8 sps:$4 sm:$0xff]  }
   0x9   :  { %216 = vperm.xlu1 %298, %v198_v9  }
   0xa   :  { %206 = vperm.xlu0 %297, %v196_v11  }
   0xb   :  { %136 = vmatpush1.bf16.msra.mxu0 %v301_v3  ;;  %289 = vmatpush1.bf16.msra.mxu1 %v301_v3 }
   0xc   :  { %137 = vmatprep.subr.bf16.mxu0 %v314_v0  ;;  %281 = vmatprep.subr.bf16.mxu1 %v314_v0 }
   0xd   :  { %234 = vperm.xlu1 %298, %v224_v12  }
   0xe   :  { %229 = vperm.xlu0 %297, %v223_v14  }
   0xf   :  { %138 = vmatpush1.bf16.msra.mxu0 %v302_v4  ;;  %290 = vmatpush1.bf16.msra.mxu1 %v302_v4 }
  0x10   :  { %139 = vmatprep.subr.bf16.mxu0 %v314_v0  ;;  %282 = vmatprep.subr.bf16.mxu1 %v314_v0 }
  0x11   :  { %244 = vperm.xlu1 %298, %v226_v15  }
  0x12   :  { %239 = vperm.xlu0 %297, %v225_v17  }
  0x13   :  { %140 = vmatpush1.bf16.msra.mxu0 %v303_v10  ;;  %291 = vmatpush1.bf16.msra.mxu1 %v303_v10 }
  0x14   :  { %141 = vmatprep.subr.bf16.mxu0 %v314_v0  ;;  %283 = vmatprep.subr.bf16.mxu1 %v314_v0 }
  0x17   :  { %142 = vmatpush1.bf16.msra.mxu0 %v304_v13  ;;  %292 = vmatpush1.bf16.msra.mxu1 %v304_v13 }
  0x18   :  { %143 = vmatprep.subr.bf16.mxu0 %v314_v0  ;;  %284 = vmatprep.subr.bf16.mxu1 %v314_v0 }
  0x1b   :  { %144 = vmatpush1.bf16.msra.mxu0 %v305_v16  ;;  %293 = vmatpush1.bf16.msra.mxu1 %v305_v16 }
  0x1c   :  { %145 = vmatprep.subr.bf16.mxu0 %v314_v0  ;;  %285 = vmatprep.subr.bf16.mxu1 %v314_v0 }
  0x1f   :  { %146 = vmatpush1.bf16.msra.mxu0 %v306_v18  ;;  %294 = vmatpush1.bf16.msra.mxu1 %v306_v18 }
  0x20   :  { %147 = vmatprep.subr.bf16.mxu0 %v314_v0  ;;  %286 = vmatprep.subr.bf16.mxu1 %v314_v0 }
  0x23   :  { %148 = vmatpush1.bf16.msra.mxu0 %v307_v19  ;;  %295 = vmatpush1.bf16.msra.mxu1 %v307_v19 }
  0x26   :  { %164 = vmatmul.mubr.bf16.vlgmr.msra.gmra.mrb[0].mxu0 %v308_v20  ;;  %172 = vmatmul.mubr.bf16.vlgmr.msra.gmra.mrb[0].mxu1 %v311_v21 }
  0x84   :  { %v212_v23 = vpop.permute.xlu1 %211 }
  0x85   :  { %v202_v22 = vpop.permute.xlu0 %201 }
  0x88   :  { %v217_v25 = vpop.permute.xlu1 %216 }
  0x89   :  { %v207_v24 = vpop.permute.xlu0 %206 }
  0x8c   :  { %v235_v27 = vpop.permute.xlu1 %234 }
  0x8d   :  { %v230_v26 = vpop.permute.xlu0 %229 }
  0x90   :  { %v245_v43 = vpop.permute.xlu1 %244 }
  0x91   :  { %v240_v28 = vpop.permute.xlu0 %239 }
  0xf9   :  { %v165_v29 = vpop.f32.mrb[0].mxu0  ;;  %v173_v30 = vpop.f32.mrb[0].mxu1 }
  0xfa   :  { %v219_v31 = vmul.f32 %v202_v22, %v165_v29  ;;  %v221_v32 = vmul.f32 %v212_v23, %v173_v30  ;;  %v167_v33 = vpop.f32.mrb[1].mxu0  ;;  %v175_v34 = vpop.f32.mrb[1].mxu1 }
  0xfb   :  { %v168_v35 = vpop.f32.mrb[2].mxu0  ;;  %v176_v36 = vpop.f32.mrb[2].mxu1 }
  0xfc   :  { %v247_v37 = vadd.f32 %v230_v26, %v219_v31  ;;  %v249_v38 = vadd.f32 %v240_v28, %v221_v32  ;;  %v220_v39 = vmul.f32 %v207_v24, %v168_v35  ;;  %v222_v40 = vmul.f32 %v217_v25, %v176_v36  ;;  %v170_v41 = vpop.f32.mrb[3].mxu0  ;;  %v178_v42 = vpop.f32.mrb[3].mxu1 }
  0xfe   :  { %v251_v44 = vmax.f32 %v247_v37, 0.0  ;;  %v253_v45 = vmax.f32 %v249_v38, 0.0  ;;  %v248_v46 = vadd.f32 %v235_v27, %v220_v39  ;;  %v250_v47 = vadd.f32 %v245_v43, %v222_v40 }
 0x100   :  { %255 = vst [vmem:[%s439_s4] sm:$0xff] %v251_v44  ;;  %257 = vst [vmem:[%s439_s4 + $0x10] sm:$0xff] %v253_v45  ;;  %v252_v48 = vmax.f32 %v248_v46, 0.0  ;;  %v254_v49 = vmax.f32 %v250_v47, 0.0 }
 0x102   :  { %256 = vst [vmem:[%s439_s4 + $0x8] sm:$0xff] %v252_v48  ;;  %258 = vst [vmem:[%s439_s4 + $0x18] sm:$0xff] %v254_v49 }

// kernel: _lambda_.30
= control target key start
LH: loop header
LB: loop body
LE: loop exit
PB: predicated region body
PF: predicated region fallthrough
CT: control target
= control target key end

     0   :  { %v495_v1 = vmov 0   ;;  %vm212_vm0 = vcmask 261120   ;;  %s631_s1 = inlined_call_operand.vmem [shape: bf16[288,128], index: 1, kind: input, shape index: {}]   ;;  %s632_s0 = inlined_call_operand.vmem [shape: bf16[32,288], index: 0, kind: input, shape index: {}]   ;;  %s633_s2 = inlined_call_operand.vmem [shape: f32[32,1], index: 2, kind: input, shape index: {}]   ;;  %s634_s3 = inlined_call_operand.vmem [shape: f32[32,1], index: 3, kind: input, shape index: {}]   ;;  %s635_s4 = inlined_call_operand.vmem [shape: f32[32,128], index: 4, kind: output, shape index: {}]  }
   0x1   :  { %v469_v0 = vld [vmem:[%s631_s1 + $0x40] sm:$0xff]   ;;  %468 = vset.pattern.permute.xlu1 %v495_v1  ;;  %467 = vset.pattern.permute.xlu0 %v495_v1  ;;  %v471_v3 = vld [vmem:[%s631_s1 + $0x48] sm:$0xff]   ;;  %v473_v5 = vld [vmem:[%s631_s1 + $0x50] sm:$0xff]  }
   0x2   :  { %v470_v2 = vld [vmem:[%s631_s1] sm:$0xff]   ;;  %426 = vmatprep.subr.bf16.mxu0 %v469_v0  ;;  %v472_v4 = vld [vmem:[%s631_s1 + $0x8] sm:$0xff]   ;;  %v474_v6 = vld [vmem:[%s631_s1 + $0x10] sm:$0xff]  }
   0x3   :  { %427 = vmatpush3.bf16.msra.mxu0 %v470_v2  ;;  %v475_v7 = vld [vmem:[%s631_s1 + $0x58] sm:$0xff]   ;;  %v477_v9 = vld [vmem:[%s631_s1 + $0x60] sm:$0xff]   ;;  %v479_v12 = vld [vmem:[%s631_s1 + $0x68] sm:$0xff]  }
   0x4   :  { %428 = vmatprep.subr.bf16.mxu0 %v471_v3  ;;  %v476_v8 = vld [vmem:[%s631_s1 + $0x18] sm:$0xff]   ;;  %v483_v10 = vld [vmem:[%s631_s1 + $0x80] sm:$0xff]   ;;  %v480_v13 = vld [vmem:[%s631_s1 + $0x28] sm:$0xff]  }
   0x5   :  { %v478_v11 = vld [vmem:[%s631_s1 + $0x20] sm:$0xff]   ;;  %458 = vmatprep.subr.bf16.mxu1 %v483_v10  ;;  %v486_v14 = vld [vmem:[%s631_s1 + $0x88] sm:$0xff]   ;;  %v481_v15 = vld [vmem:[%s631_s1 + $0x70] sm:$0xff]  }
   0x6   :  { %459 = vmatpush3.bf16.msra.mxu1 %v483_v10  ;;  %v489_v16 = vld [vmem:[%s632_s0 + $0x4] ss:$12 sps:$4 sm:$0xff]   ;;  %v490_v17 = vld [vmem:[%s632_s0 + $0x8] ss:$12 sps:$4 sm:$0xff]   ;;  %v491_v18 = vld [vmem:[%s632_s0 + $0x20] ss:$12 sps:$4 sm:$0xff]  }
   0x7   :  { %429 = vmatpush3.bf16.msra.mxu0 %v472_v4  ;;  %460 = vmatprep.subr.bf16.mxu1 %v486_v14  ;;  %v334_v19 = vld [vmem:[%s633_s2 + $0x10] sm:$0xff]  ;;  %v332_v21 = vld [vmem:[%s633_s2] sm:$0xff]  ;;  %v484_v22 = vld [vmem:[%s631_s1 + $0x78] sm:$0xff]  }
   0x8   :  { %430 = vmatprep.subr.bf16.mxu0 %v473_v5  ;;  %251 = vmatprep.mubr.bf16.mxu0 %v489_v16  ;;  %v482_v20 = vld [vmem:[%s631_s1 + $0x30] sm:$0xff]   ;;  %v335_v23 = vld [vmem:[%s633_s2 + $0x18] sm:$0xff]  ;;  %v333_v24 = vld [vmem:[%s633_s2 + $0x8] sm:$0xff] }
   0x9   :  { %462 = vmatprep.mubr.msk.bf16.mxu1 %vm212_vm0, %v490_v17  ;;  %348 = vperm.xlu1 %468, %v334_v19   ;;  %v485_v25 = vld [vmem:[%s631_s1 + $0x38] sm:$0xff]   ;;  %v361_v26 = vld [vmem:[%s634_s3 + $0x8] sm:$0xff]  ;;  %v360_v28 = vld [vmem:[%s634_s3] sm:$0xff] }
   0xa   :  { %461 = vmatpush3.bf16.msra.mxu1 %v486_v14  ;;  %338 = vperm.xlu0 %467, %v332_v21   ;;  %v487_v27 = vld [vmem:[%s632_s0] ss:$12 sps:$4 sm:$0xff]   ;;  %v492_v29 = vld [vmem:[%s632_s0 + $0x1c] ss:$12 sps:$4 sm:$0xff]   ;;  %v362_v31 = vld [vmem:[%s634_s3 + $0x10] sm:$0xff] }
   0xb   :  { %431 = vmatpush3.bf16.msra.mxu0 %v474_v6  ;;  %v363_v30 = vld [vmem:[%s634_s3 + $0x18] sm:$0xff] }
   0xc   :  { %432 = vmatprep.subr.bf16.mxu0 %v475_v7  ;;  %v494_v32 = vld [vmem:[%s632_s0 + $0x18] ss:$12 sps:$4 sm:$0xff]  }
   0xd   :  { %463 = vmatmul.mubr.msk.bf16.vlgmr.msra.gmra.mrb[0].mxu1 %vm212_vm0, %v491_v18  ;;  %353 = vperm.xlu1 %468, %v335_v23  }
   0xe   :  { %343 = vperm.xlu0 %467, %v333_v24  }
   0xf   :  { %433 = vmatpush3.bf16.msra.mxu0 %v476_v8 }
  0x10   :  { %434 = vmatprep.subr.bf16.mxu0 %v477_v9 }
  0x11   :  { %371 = vperm.xlu1 %468, %v361_v26  }
  0x12   :  { %366 = vperm.xlu0 %467, %v360_v28  }
  0x13   :  { %435 = vmatpush3.bf16.msra.mxu0 %v478_v11 }
  0x14   :  { %436 = vmatprep.subr.bf16.mxu0 %v479_v12 }
  0x15   :  { %381 = vperm.xlu1 %468, %v363_v30  }
  0x16   :  { %376 = vperm.xlu0 %467, %v362_v31  }
  0x17   :  { %437 = vmatpush3.bf16.msra.mxu0 %v480_v13 }
  0x18   :  { %438 = vmatprep.subr.bf16.mxu0 %v481_v15 }
  0x1b   :  { %439 = vmatpush3.bf16.msra.mxu0 %v482_v20 }
  0x1c   :  { %440 = vmatprep.subr.bf16.mxu0 %v484_v22 }
  0x1f   :  { %441 = vmatpush3.bf16.msra.mxu0 %v485_v25 }
  0x22   :  { %252 = vmatmul.mubr.bf16.vlgmr.msra.gmra.mrb[0].mxu0 %v487_v27 }
  0x23   :  { %259 = vmatprep.mubr.bf16.mxu0 %v492_v29 }
  0x2a   :  { %260 = vmatmul.mubr.bf16.gmra.mrb[4].mxu0 %v494_v32 }
  0x88   :  { %v349_v38 = vpop.permute.xlu1 %348 }
  0x89   :  { %v339_v37 = vpop.permute.xlu0 %338 }
  0x8c   :  { %v354_v44 = vpop.permute.xlu1 %353 }
  0x8d   :  { %v344_v40 = vpop.permute.xlu0 %343 }
  0x90   :  { %v372_v54 = vpop.permute.xlu1 %371 }
  0x91   :  { %v367_v50 = vpop.permute.xlu0 %366 }
  0x94   :  { %v382_v5 = vpop.permute.xlu1 %381 }
  0x95   :  { %v377_v2 = vpop.permute.xlu0 %376 }
  0xe0   :  { %v464_v33 = vpop.f32.mrb[0].mxu1 }
  0xe1   :  { %v302_v34 = vpop.f32.mrb[1].mxu1 }
  0xe2   :  { %v465_v35 = vpop.f32.mrb[2].mxu1 }
  0xe3   :  { %v305_v36 = vpop.f32.mrb[3].mxu1 }
  0xf5   :  { %v442_v39 = vpop.f32.mrb[0].mxu0 }
  0xf6   :  { %v443_v41 = vpop.f32.mrb[1].mxu0 }
  0xf7   :  { %v444_v42 = vadd.f32 %v443_v41, %v442_v39  ;;  %v445_v43 = vpop.f32.mrb[2].mxu0 }
  0xf8   :  { %v446_v45 = vpop.f32.mrb[3].mxu0 }
  0xf9   :  { %v447_v46 = vadd.f32 %v446_v45, %v445_v43  ;;  %v303_v47 = vadd.f32 %v444_v42, %v302_v34 }
  0xfb   :  { %v356_v48 = vmul.f32 %v339_v37, %v303_v47  ;;  %v306_v49 = vadd.f32 %v447_v46, %v305_v36 }
  0xfd   :  { %v384_v51 = vadd.f32 %v367_v50, %v356_v48  ;;  %v357_v52 = vmul.f32 %v344_v40, %v306_v49  ;;  %v448_v53 = vpop.f32.mrb[4].mxu0 }
  0xfe   :  { %v449_v55 = vpop.f32.mrb[5].mxu0 }
  0xff   :  { %v388_v56 = vmax.f32 %v384_v51, 0.0  ;;  %v385_v57 = vadd.f32 %v372_v54, %v357_v52  ;;  %v450_v58 = vadd.f32 %v449_v55, %v448_v53  ;;  %v451_v59 = vpop.f32.mrb[6].mxu0 }
 0x100   :  { %v452_v60 = vpop.f32.mrb[7].mxu0 }
 0x101   :  { %392 = vst [vmem:[%s635_s4] sm:$0xff] %v388_v56  ;;  %v389_v61 = vmax.f32 %v385_v57, 0.0  ;;  %v311_v62 = vadd.f32 %v464_v33, %v450_v58  ;;  %v453_v63 = vadd.f32 %v452_v60, %v451_v59 }
 0x103   :  { %393 = vst [vmem:[%s635_s4 + $0x8] sm:$0xff] %v389_v61  ;;  %v358_v0 = vmul.f32 %v349_v38, %v311_v62  ;;  %v314_v1 = vadd.f32 %v465_v35, %v453_v63 }
 0x105   :  { %v386_v3 = vadd.f32 %v377_v2, %v358_v0  ;;  %v359_v4 = vmul.f32 %v354_v44, %v314_v1 }
 0x107   :  { %v390_v6 = vmax.f32 %v386_v3, 0.0  ;;  %v387_v7 = vadd.f32 %v382_v5, %v359_v4 }
 0x109   :  { %394 = vst [vmem:[%s635_s4 + $0x10] sm:$0xff] %v390_v6  ;;  %v391_v8 = vmax.f32 %v387_v7, 0.0 }
 0x10b   :  { %395 = vst [vmem:[%s635_s4 + $0x18] sm:$0xff] %v391_v8 }

// kernel: _lambda_.31
= control target key start
LH: loop header
LB: loop body
LE: loop exit
PB: predicated region body
PF: predicated region fallthrough
CT: control target
= control target key end

     0   :  { %v506_v1 = vmov 0   ;;  %vm215_vm0 = vcmask 261120   ;;  %s659_s1 = inlined_call_operand.vmem [shape: bf16[288,128], index: 1, kind: input, shape index: {}]   ;;  %s660_s0 = inlined_call_operand.vmem [shape: bf16[32,288], index: 0, kind: input, shape index: {}]   ;;  %s661_s2 = inlined_call_operand.vmem [shape: f32[32,1], index: 2, kind: input, shape index: {}]   ;;  %s662_s3 = inlined_call_operand.vmem [shape: f32[32,1], index: 3, kind: input, shape index: {}]   ;;  %s663_s4 = inlined_call_operand.vmem [shape: f32[32,128], index: 4, kind: input, shape index: {}]   ;;  %s664_s5 = inlined_call_operand.vmem [shape: f32[32,128], index: 5, kind: output, shape index: {}]  }
   0x1   :  { %v480_v0 = vld [vmem:[%s659_s1 + $0x40] sm:$0xff]   ;;  %479 = vset.pattern.permute.xlu1 %v506_v1  ;;  %478 = vset.pattern.permute.xlu0 %v506_v1  ;;  %v482_v3 = vld [vmem:[%s659_s1 + $0x48] sm:$0xff]   ;;  %v484_v5 = vld [vmem:[%s659_s1 + $0x50] sm:$0xff]  }
   0x2   :  { %v481_v2 = vld [vmem:[%s659_s1] sm:$0xff]   ;;  %437 = vmatprep.subr.bf16.mxu0 %v480_v0  ;;  %v483_v4 = vld [vmem:[%s659_s1 + $0x8] sm:$0xff]   ;;  %v485_v6 = vld [vmem:[%s659_s1 + $0x10] sm:$0xff]  }
   0x3   :  { %438 = vmatpush3.bf16.msra.mxu0 %v481_v2  ;;  %v486_v7 = vld [vmem:[%s659_s1 + $0x58] sm:$0xff]   ;;  %v488_v9 = vld [vmem:[%s659_s1 + $0x60] sm:$0xff]   ;;  %v490_v12 = vld [vmem:[%s659_s1 + $0x68] sm:$0xff]  }
   0x4   :  { %439 = vmatprep.subr.bf16.mxu0 %v482_v3  ;;  %v487_v8 = vld [vmem:[%s659_s1 + $0x18] sm:$0xff]   ;;  %v494_v10 = vld [vmem:[%s659_s1 + $0x80] sm:$0xff]   ;;  %v491_v13 = vld [vmem:[%s659_s1 + $0x28] sm:$0xff]  }
   0x5   :  { %v489_v11 = vld [vmem:[%s659_s1 + $0x20] sm:$0xff]   ;;  %469 = vmatprep.subr.bf16.mxu1 %v494_v10  ;;  %v497_v14 = vld [vmem:[%s659_s1 + $0x88] sm:$0xff]   ;;  %v492_v15 = vld [vmem:[%s659_s1 + $0x70] sm:$0xff]  }
   0x6   :  { %470 = vmatpush3.bf16.msra.mxu1 %v494_v10  ;;  %v500_v16 = vld [vmem:[%s660_s0 + $0x4] ss:$12 sps:$4 sm:$0xff]   ;;  %v501_v17 = vld [vmem:[%s660_s0 + $0x8] ss:$12 sps:$4 sm:$0xff]   ;;  %v502_v18 = vld [vmem:[%s660_s0 + $0x20] ss:$12 sps:$4 sm:$0xff]  }
   0x7   :  { %440 = vmatpush3.bf16.msra.mxu0 %v483_v4  ;;  %471 = vmatprep.subr.bf16.mxu1 %v497_v14  ;;  %v337_v19 = vld [vmem:[%s661_s2 + $0x10] sm:$0xff]  ;;  %v335_v21 = vld [vmem:[%s661_s2] sm:$0xff]  ;;  %v495_v22 = vld [vmem:[%s659_s1 + $0x78] sm:$0xff]  }
   0x8   :  { %441 = vmatprep.subr.bf16.mxu0 %v484_v5  ;;  %254 = vmatprep.mubr.bf16.mxu0 %v500_v16  ;;  %v493_v20 = vld [vmem:[%s659_s1 + $0x30] sm:$0xff]   ;;  %v338_v23 = vld [vmem:[%s661_s2 + $0x18] sm:$0xff]  ;;  %v336_v24 = vld [vmem:[%s661_s2 + $0x8] sm:$0xff] }
   0x9   :  { %473 = vmatprep.mubr.msk.bf16.mxu1 %vm215_vm0, %v501_v17  ;;  %351 = vperm.xlu1 %479, %v337_v19   ;;  %v496_v25 = vld [vmem:[%s659_s1 + $0x38] sm:$0xff]   ;;  %v364_v26 = vld [vmem:[%s662_s3 + $0x8] sm:$0xff]  ;;  %v363_v28 = vld [vmem:[%s662_s3] sm:$0xff] }
   0xa   :  { %472 = vmatpush3.bf16.msra.mxu1 %v497_v14  ;;  %341 = vperm.xlu0 %478, %v335_v21   ;;  %v498_v27 = vld [vmem:[%s660_s0] ss:$12 sps:$4 sm:$0xff]   ;;  %v503_v29 = vld [vmem:[%s660_s0 + $0x1c] ss:$12 sps:$4 sm:$0xff]   ;;  %v365_v31 = vld [vmem:[%s662_s3 + $0x10] sm:$0xff] }
   0xb   :  { %442 = vmatpush3.bf16.msra.mxu0 %v485_v6  ;;  %v366_v30 = vld [vmem:[%s662_s3 + $0x18] sm:$0xff]  ;;  %v391_v51 = vld [vmem:[%s663_s4] sm:$0xff]  ;;  %v392_v56 = vld [vmem:[%s663_s4 + $0x8] sm:$0xff] }
   0xc   :  { %443 = vmatprep.subr.bf16.mxu0 %v486_v7  ;;  %v505_v32 = vld [vmem:[%s660_s0 + $0x18] ss:$12 sps:$4 sm:$0xff]   ;;  %v393_v7 = vld [vmem:[%s663_s4 + $0x10] sm:$0xff] }
   0xd   :  { %474 = vmatmul.mubr.msk.bf16.vlgmr.msra.gmra.mrb[0].mxu1 %vm215_vm0, %v502_v18  ;;  %356 = vperm.xlu1 %479, %v338_v23  }
   0xe   :  { %346 = vperm.xlu0 %478, %v336_v24  }
   0xf   :  { %444 = vmatpush3.bf16.msra.mxu0 %v487_v8 }
  0x10   :  { %445 = vmatprep.subr.bf16.mxu0 %v488_v9 }
  0x11   :  { %374 = vperm.xlu1 %479, %v364_v26  }
  0x12   :  { %369 = vperm.xlu0 %478, %v363_v28  }
  0x13   :  { %446 = vmatpush3.bf16.msra.mxu0 %v489_v11  ;;  %v394_v11 = vld [vmem:[%s663_s4 + $0x18] sm:$0xff] }
  0x14   :  { %447 = vmatprep.subr.bf16.mxu0 %v490_v12 }
  0x15   :  { %384 = vperm.xlu1 %479, %v366_v30  }
  0x16   :  { %379 = vperm.xlu0 %478, %v365_v31  }
  0x17   :  { %448 = vmatpush3.bf16.msra.mxu0 %v491_v13 }
  0x18   :  { %449 = vmatprep.subr.bf16.mxu0 %v492_v15 }
  0x1b   :  { %450 = vmatpush3.bf16.msra.mxu0 %v493_v20 }
  0x1c   :  { %451 = vmatprep.subr.bf16.mxu0 %v495_v22 }
  0x1f   :  { %452 = vmatpush3.bf16.msra.mxu0 %v496_v25 }
  0x22   :  { %255 = vmatmul.mubr.bf16.vlgmr.msra.gmra.mrb[0].mxu0 %v498_v27 }
  0x23   :  { %262 = vmatprep.mubr.bf16.mxu0 %v503_v29 }
  0x2a   :  { %263 = vmatmul.mubr.bf16.gmra.mrb[4].mxu0 %v505_v32 }
  0x88   :  { %v352_v38 = vpop.permute.xlu1 %351 }
  0x89   :  { %v342_v37 = vpop.permute.xlu0 %341 }
  0x8c   :  { %v357_v44 = vpop.permute.xlu1 %356 }
  0x8d   :  { %v347_v40 = vpop.permute.xlu0 %346 }
  0x90   :  { %v375_v55 = vpop.permute.xlu1 %374 }
  0x91   :  { %v370_v50 = vpop.permute.xlu0 %369 }
  0x94   :  { %v385_v10 = vpop.permute.xlu1 %384 }
  0x95   :  { %v380_v6 = vpop.permute.xlu0 %379 }
  0xe0   :  { %v475_v33 = vpop.f32.mrb[0].mxu1 }
  0xe1   :  { %v305_v34 = vpop.f32.mrb[1].mxu1 }
  0xe2   :  { %v476_v35 = vpop.f32.mrb[2].mxu1 }
  0xe3   :  { %v308_v36 = vpop.f32.mrb[3].mxu1 }
  0xf5   :  { %v453_v39 = vpop.f32.mrb[0].mxu0 }
  0xf6   :  { %v454_v41 = vpop.f32.mrb[1].mxu0 }
  0xf7   :  { %v455_v42 = vadd.f32 %v454_v41, %v453_v39  ;;  %v456_v43 = vpop.f32.mrb[2].mxu0 }
  0xf8   :  { %v457_v45 = vpop.f32.mrb[3].mxu0 }
  0xf9   :  { %v458_v46 = vadd.f32 %v457_v45, %v456_v43  ;;  %v306_v47 = vadd.f32 %v455_v42, %v305_v34 }
  0xfb   :  { %v359_v48 = vmul.f32 %v342_v37, %v306_v47  ;;  %v309_v49 = vadd.f32 %v458_v46, %v308_v36 }
  0xfd   :  { %v387_v52 = vadd.f32 %v370_v50, %v359_v48  ;;  %v360_v53 = vmul.f32 %v347_v40, %v309_v49  ;;  %v459_v54 = vpop.f32.mrb[4].mxu0 }
  0xfe   :  { %v460_v57 = vpop.f32.mrb[5].mxu0 }
  0xff   :  { %v395_v58 = vadd.f32 %v391_v51, %v387_v52  ;;  %v388_v59 = vadd.f32 %v375_v55, %v360_v53  ;;  %v461_v60 = vadd.f32 %v460_v57, %v459_v54  ;;  %v462_v61 = vpop.f32.mrb[6].mxu0 }
 0x100   :  { %v463_v62 = vpop.f32.mrb[7].mxu0 }
 0x101   :  { %v399_v63 = vmax.f32 %v395_v58, 0.0  ;;  %v396_v0 = vadd.f32 %v392_v56, %v388_v59  ;;  %v314_v1 = vadd.f32 %v475_v33, %v461_v60  ;;  %v464_v2 = vadd.f32 %v463_v62, %v462_v61 }
 0x103   :  { %403 = vst [vmem:[%s664_s5] sm:$0xff] %v399_v63  ;;  %v400_v3 = vmax.f32 %v396_v0, 0.0  ;;  %v361_v4 = vmul.f32 %v352_v38, %v314_v1  ;;  %v317_v5 = vadd.f32 %v476_v35, %v464_v2 }
 0x105   :  { %404 = vst [vmem:[%s664_s5 + $0x8] sm:$0xff] %v400_v3  ;;  %v389_v8 = vadd.f32 %v380_v6, %v361_v4  ;;  %v362_v9 = vmul.f32 %v357_v44, %v317_v5 }
 0x107   :  { %v397_v12 = vadd.f32 %v393_v7, %v389_v8  ;;  %v390_v13 = vadd.f32 %v385_v10, %v362_v9 }
 0x109   :  { %v401_v14 = vmax.f32 %v397_v12, 0.0  ;;  %v398_v15 = vadd.f32 %v394_v11, %v390_v13 }
 0x10b   :  { %405 = vst [vmem:[%s664_s5 + $0x10] sm:$0xff] %v401_v14  ;;  %v402_v16 = vmax.f32 %v398_v15, 0.0 }
 0x10d   :  { %406 = vst [vmem:[%s664_s5 + $0x18] sm:$0xff] %v402_v16 }

// kernel: _lambda_.29
= control target key start
LH: loop header
LB: loop body
LE: loop exit
PB: predicated region body
PF: predicated region fallthrough
CT: control target
= control target key end

     0   :  { %v662_v1 = vmov 0   ;;  %vm224_vm0 = vcmask 261120   ;;  %vm422_vm1 = vcmask 130048   ;;  %s849_s1 = inlined_call_operand.vmem [shape: bf16[288,128], index: 1, kind: input, shape index: {}]   ;;  %s850_s0 = inlined_call_operand.vmem [shape: bf16[32,288], index: 0, kind: input, shape index: {}]   ;;  %s851_s5 = inlined_call_operand.vmem [shape: bf16[16,128], index: 5, kind: input, shape index: {}]   ;;  %s852_s4 = inlined_call_operand.vmem [shape: bf16[32,16], index: 4, kind: input, shape index: {}]   ;;  %s853_s2 = inlined_call_operand.vmem [shape: f32[32,1], index: 2, kind: input, shape index: {}]   ;;  %s854_s3 = inlined_call_operand.vmem [shape: f32[32,1], index: 3, kind: input, shape index: {}]   ;;  %s855_s6 = inlined_call_operand.vmem [shape: f32[32,1], index: 6, kind: input, shape index: {}]   ;;  %s856_s7 = inlined_call_operand.vmem [shape: f32[32,1], index: 7, kind: input, shape index: {}]   ;;  %s857_s8 = inlined_call_operand.vmem [shape: f32[32,128], index: 8, kind: output, shape index: {}]  }
   0x1   :  { %v633_v0 = vld [vmem:[%s849_s1 + $0x40] sm:$0xff]   ;;  %632 = vset.pattern.permute.xlu1 %v662_v1  ;;  %631 = vset.pattern.permute.xlu0 %v662_v1  ;;  %v635_v3 = vld [vmem:[%s849_s1 + $0x48] sm:$0xff]   ;;  %v638_v6 = vld [vmem:[%s849_s1 + $0x50] sm:$0xff]  }
   0x2   :  { %v634_v2 = vld [vmem:[%s849_s1] sm:$0xff]   ;;  %581 = vmatprep.subr.bf16.mxu0 %v633_v0  ;;  %v636_v4 = vld [vmem:[%s849_s1 + $0x8] sm:$0xff]   ;;  %v639_v7 = vld [vmem:[%s849_s1 + $0x10] sm:$0xff]  }
   0x3   :  { %582 = vmatpush3.bf16.msra.mxu0 %v634_v2  ;;  %v637_v5 = vld [vmem:[%s849_s1 + $0x80] sm:$0xff]   ;;  %v640_v8 = vld [vmem:[%s849_s1 + $0x88] sm:$0xff]   ;;  %v641_v9 = vld [vmem:[%s849_s1 + $0x58] sm:$0xff]  }
   0x4   :  { %583 = vmatprep.subr.bf16.mxu0 %v635_v3  ;;  %616 = vmatprep.subr.bf16.mxu1 %v637_v5  ;;  %v642_v10 = vld [vmem:[%s849_s1 + $0x18] sm:$0xff]   ;;  %v643_v11 = vld [vmem:[%s850_s0 + $0x8] ss:$12 sps:$4 sm:$0xff]   ;;  %v644_v12 = vld [vmem:[%s850_s0 + $0x20] ss:$12 sps:$4 sm:$0xff]  }
   0x5   :  { %617 = vmatpush3.bf16.msra.mxu1 %v637_v5  ;;  %620 = vmatprep.mubr.msk.bf16.mxu1 %vm224_vm0, %v643_v11  ;;  %v645_v13 = vld [vmem:[%s849_s1 + $0x60] sm:$0xff]   ;;  %v648_v16 = vld [vmem:[%s849_s1 + $0x68] sm:$0xff]   ;;  %v652_v20 = vld [vmem:[%s849_s1 + $0x70] sm:$0xff]  }
   0x6   :  { %618 = vmatprep.subr.bf16.mxu1 %v640_v8  ;;  %v647_v14 = vld [vmem:[%s851_s5] sm:$0xff]   ;;  %v651_v18 = vld [vmem:[%s852_s4 + $0x8] sm:$0xff]   ;;  %v653_v21 = vld [vmem:[%s849_s1 + $0x30] sm:$0xff]  }
   0x7   :  { %584 = vmatpush3.bf16.msra.mxu0 %v636_v4  ;;  %v646_v15 = vld [vmem:[%s849_s1 + $0x20] sm:$0xff]   ;;  %v649_v19 = vld [vmem:[%s849_s1 + $0x28] sm:$0xff]   ;;  %v654_v22 = vld [vmem:[%s849_s1 + $0x78] sm:$0xff]  }
   0x8   :  { %585 = vmatprep.subr.bf16.mxu0 %v638_v6  ;;  %v650_v17 = vld [vmem:[%s852_s4] sm:$0xff]   ;;  %v346_v24 = vld [vmem:[%s853_s2 + $0x10] sm:$0xff]  ;;  %v655_v26 = vld [vmem:[%s849_s1 + $0x38] sm:$0xff]  }
   0x9   :  { %619 = vmatpush3.bf16.msra.mxu1 %v640_v8  ;;  %v658_v23 = vld [vmem:[%s850_s0 + $0x4] ss:$12 sps:$4 sm:$0xff]   ;;  %360 = vperm.xlu1 %632, %v346_v24   ;;  %v347_v27 = vld [vmem:[%s853_s2 + $0x18] sm:$0xff]  ;;  %v345_v28 = vld [vmem:[%s853_s2 + $0x8] sm:$0xff] }
   0xa   :  { %624 = vmatprep.subr.bf16.mxu1 %v647_v14  ;;  %263 = vmatprep.mubr.bf16.mxu0 %v658_v23  ;;  %v344_v25 = vld [vmem:[%s853_s2] sm:$0xff]  ;;  %v659_v30 = vld [vmem:[%s850_s0 + $0x1c] ss:$12 sps:$4 sm:$0xff]   ;;  %v374_v34 = vld [vmem:[%s854_s3 + $0x10] sm:$0xff] }
   0xb   :  { %586 = vmatpush3.bf16.msra.mxu0 %v639_v7  ;;  %350 = vperm.xlu0 %631, %v344_v25   ;;  %v656_v29 = vld [vmem:[%s850_s0] ss:$12 sps:$4 sm:$0xff]   ;;  %v375_v33 = vld [vmem:[%s854_s3 + $0x18] sm:$0xff]  ;;  %v480_v39 = vld [vmem:[%s855_s6 + $0x10] sm:$0xff] }
   0xc   :  { %587 = vmatprep.subr.bf16.mxu0 %v641_v9  ;;  %621 = vmatmul.mubr.msk.bf16.vlgmr.msra.gmra.mrb[0].mxu1 %vm224_vm0, %v644_v12  ;;  %v373_v31 = vld [vmem:[%s854_s3 + $0x8] sm:$0xff]  ;;  %v372_v32 = vld [vmem:[%s854_s3] sm:$0xff]  ;;  %v481_v38 = vld [vmem:[%s855_s6 + $0x18] sm:$0xff] }
   0xd   :  { %625 = vmatpush3.bf16.msra.mxu1 %v647_v14  ;;  %626 = vmatprep.mubr.msk.bf16.mxu1 %vm422_vm1, %v650_v17  ;;  %v661_v35 = vld [vmem:[%s850_s0 + $0x18] ss:$12 sps:$4 sm:$0xff]   ;;  %v479_v36 = vld [vmem:[%s855_s6 + $0x8] sm:$0xff]  ;;  %v512_v43 = vld [vmem:[%s856_s7 + $0x10] sm:$0xff] }
   0xe   :  { %365 = vperm.xlu1 %632, %v347_v27   ;;  %v478_v37 = vld [vmem:[%s855_s6] sm:$0xff]  ;;  %v511_v40 = vld [vmem:[%s856_s7 + $0x8] sm:$0xff]  ;;  %v513_v42 = vld [vmem:[%s856_s7 + $0x18] sm:$0xff] }
   0xf   :  { %588 = vmatpush3.bf16.msra.mxu0 %v642_v10  ;;  %355 = vperm.xlu0 %631, %v345_v28   ;;  %v510_v41 = vld [vmem:[%s856_s7] sm:$0xff] }
  0x10   :  { %589 = vmatprep.subr.bf16.mxu0 %v645_v13 }
  0x12   :  { %383 = vperm.xlu1 %632, %v373_v31  }
  0x13   :  { %590 = vmatpush3.bf16.msra.mxu0 %v646_v15  ;;  %378 = vperm.xlu0 %631, %v372_v32  }
  0x14   :  { %591 = vmatprep.subr.bf16.mxu0 %v648_v16  ;;  %627 = vmatmul.mubr.msk.bf16.vlgmr.msra.gmra.mrb[4].mxu1 %vm422_vm1, %v651_v18 }
  0x16   :  { %393 = vperm.xlu1 %632, %v375_v33  }
  0x17   :  { %592 = vmatpush3.bf16.msra.mxu0 %v649_v19  ;;  %388 = vperm.xlu0 %631, %v374_v34  }
  0x18   :  { %593 = vmatprep.subr.bf16.mxu0 %v652_v20 }
  0x1a   :  { %489 = vperm.xlu1 %632, %v479_v36  }
  0x1b   :  { %594 = vmatpush3.bf16.msra.mxu0 %v653_v21  ;;  %484 = vperm.xlu0 %631, %v478_v37  }
  0x1c   :  { %595 = vmatprep.subr.bf16.mxu0 %v654_v22 }
  0x1e   :  { %499 = vperm.xlu1 %632, %v481_v38  }
  0x1f   :  { %596 = vmatpush3.bf16.msra.mxu0 %v655_v26  ;;  %494 = vperm.xlu0 %631, %v480_v39  }
  0x22   :  { %264 = vmatmul.mubr.bf16.vlgmr.msra.gmra.mrb[0].mxu0 %v656_v29  ;;  %521 = vperm.xlu1 %632, %v511_v40  }
  0x23   :  { %271 = vmatprep.mubr.bf16.mxu0 %v659_v30  ;;  %516 = vperm.xlu0 %631, %v510_v41  }
  0x26   :  { %531 = vperm.xlu1 %632, %v513_v42  }
  0x27   :  { %526 = vperm.xlu0 %631, %v512_v43  }
  0x2a   :  { %272 = vmatmul.mubr.bf16.gmra.mrb[4].mxu0 %v661_v35 }
  0x88   :  { %v361_v45 = vpop.permute.xlu1 %360 }
  0x8a   :  { %v351_v44 = vpop.permute.xlu0 %350 }
  0x8d   :  { %v366_v50 = vpop.permute.xlu1 %365 }
  0x8e   :  { %v356_v47 = vpop.permute.xlu0 %355 }
  0x91   :  { %v384_v54 = vpop.permute.xlu1 %383 }
  0x92   :  { %v379_v52 = vpop.permute.xlu0 %378 }
  0x95   :  { %v394_v59 = vpop.permute.xlu1 %393 }
  0x96   :  { %v389_v58 = vpop.permute.xlu0 %388 }
  0x99   :  { %v490_v62 = vpop.permute.xlu1 %489 }
  0x9a   :  { %v485_v60 = vpop.permute.xlu0 %484 }
  0x9d   :  { %v500_v8 = vpop.permute.xlu1 %499 }
  0x9e   :  { %v495_v5 = vpop.permute.xlu0 %494 }
  0xa1   :  { %v522_v25 = vpop.permute.xlu1 %521 }
  0xa2   :  { %v517_v19 = vpop.permute.xlu0 %516 }
  0xa5   :  { %v532_v40 = vpop.permute.xlu1 %531 }
  0xa6   :  { %v527_v37 = vpop.permute.xlu0 %526 }
  0xdf   :  { %v622_v46 = vpop.f32.mrb[0].mxu1 }
  0xe0   :  { %v314_v48 = vpop.f32.mrb[1].mxu1 }
  0xe1   :  { %v623_v49 = vpop.f32.mrb[2].mxu1 }
  0xe2   :  { %v317_v51 = vpop.f32.mrb[3].mxu1 }
  0xe7   :  { %v628_v53 = vpop.f32.mrb[4].mxu1 }
  0xe8   :  { %v463_v55 = vpop.f32.mrb[5].mxu1  ;;  %v504_v30 = vmul.f32 %v628_v53, %v495_v5 }
  0xe9   :  { %v629_v56 = vpop.f32.mrb[6].mxu1  ;;  %v502_v9 = vmul.f32 %v485_v60, %v463_v55 }
  0xea   :  { %v466_v57 = vpop.f32.mrb[7].mxu1  ;;  %v505_v34 = vmul.f32 %v629_v56, %v500_v8 }
  0xeb   :  { %v503_v14 = vmul.f32 %v490_v62, %v466_v57 }
  0xf5   :  { %v597_v61 = vpop.f32.mrb[0].mxu0 }
  0xf6   :  { %v598_v63 = vpop.f32.mrb[1].mxu0 }
  0xf7   :  { %v599_v0 = vadd.f32 %v598_v63, %v597_v61  ;;  %v600_v1 = vpop.f32.mrb[2].mxu0 }
  0xf8   :  { %v601_v2 = vpop.f32.mrb[3].mxu0 }
  0xf9   :  { %v315_v3 = vadd.f32 %v599_v0, %v314_v48  ;;  %v602_v4 = vadd.f32 %v601_v2, %v600_v1 }
  0xfb   :  { %v368_v6 = vmul.f32 %v351_v44, %v315_v3  ;;  %v318_v7 = vadd.f32 %v602_v4, %v317_v51 }
  0xfd   :  { %v396_v10 = vadd.f32 %v379_v52, %v368_v6  ;;  %v369_v11 = vmul.f32 %v356_v47, %v318_v7  ;;  %v603_v12 = vpop.f32.mrb[4].mxu0 }
  0xfe   :  { %v604_v13 = vpop.f32.mrb[5].mxu0 }
  0xff   :  { %v506_v15 = vadd.f32 %v502_v9, %v396_v10  ;;  %v397_v16 = vadd.f32 %v384_v54, %v369_v11  ;;  %v605_v17 = vadd.f32 %v604_v13, %v603_v12  ;;  %v606_v18 = vpop.f32.mrb[6].mxu0 }
 0x100   :  { %v607_v20 = vpop.f32.mrb[7].mxu0 }
 0x101   :  { %v534_v21 = vadd.f32 %v517_v19, %v506_v15  ;;  %v507_v22 = vadd.f32 %v503_v14, %v397_v16  ;;  %v323_v23 = vadd.f32 %v622_v46, %v605_v17  ;;  %v608_v24 = vadd.f32 %v607_v20, %v606_v18 }
 0x103   :  { %v538_v26 = vmax.f32 %v534_v21, 0.0  ;;  %v535_v27 = vadd.f32 %v522_v25, %v507_v22  ;;  %v370_v28 = vmul.f32 %v361_v45, %v323_v23  ;;  %v326_v29 = vadd.f32 %v623_v49, %v608_v24 }
 0x105   :  { %542 = vst [vmem:[%s857_s8] sm:$0xff] %v538_v26  ;;  %v539_v31 = vmax.f32 %v535_v27, 0.0  ;;  %v398_v32 = vadd.f32 %v389_v58, %v370_v28  ;;  %v371_v33 = vmul.f32 %v366_v50, %v326_v29 }
 0x107   :  { %543 = vst [vmem:[%s857_s8 + $0x8] sm:$0xff] %v539_v31  ;;  %v508_v35 = vadd.f32 %v504_v30, %v398_v32  ;;  %v399_v36 = vadd.f32 %v394_v59, %v371_v33 }
 0x109   :  { %v536_v38 = vadd.f32 %v527_v37, %v508_v35  ;;  %v509_v39 = vadd.f32 %v505_v34, %v399_v36 }
 0x10b   :  { %v540_v41 = vmax.f32 %v536_v38, 0.0  ;;  %v537_v42 = vadd.f32 %v532_v40, %v509_v39 }
 0x10d   :  { %544 = vst [vmem:[%s857_s8 + $0x10] sm:$0xff] %v540_v41  ;;  %v541_v43 = vmax.f32 %v537_v42, 0.0 }
 0x10f   :  { %545 = vst [vmem:[%s857_s8 + $0x18] sm:$0xff] %v541_v43 }

// kernel: _lambda_.32
= control target key start
LH: loop header
LB: loop body
LE: loop exit
PB: predicated region body
PF: predicated region fallthrough
CT: control target
= control target key end

     0   :  { %v705_v1 = vmov 0   ;;  %vm258_vm0 = vcmask 261120   ;;  %s906_s1 = inlined_call_operand.vmem [shape: bf16[288,128], index: 1, kind: input, shape index: {}]   ;;  %s907_s0 = inlined_call_operand.vmem [shape: bf16[64,288], index: 0, kind: input, shape index: {}]   ;;  %s908_s2 = inlined_call_operand.vmem [shape: f32[64,1], index: 2, kind: input, shape index: {}]   ;;  %s909_s3 = inlined_call_operand.vmem [shape: f32[64,1], index: 3, kind: input, shape index: {}]   ;;  %s910_s4 = inlined_call_operand.vmem [shape: f32[64,128], index: 4, kind: output, shape index: {}]  }
   0x1   :  { %v671_v0 = vld [vmem:[%s906_s1 + $0x40] sm:$0xff]   ;;  %670 = vset.pattern.permute.xlu1 %v705_v1  ;;  %669 = vset.pattern.permute.xlu0 %v705_v1  ;;  %v673_v3 = vld [vmem:[%s906_s1 + $0x48] sm:$0xff]   ;;  %v675_v5 = vld [vmem:[%s906_s1 + $0x50] sm:$0xff]  }
   0x2   :  { %v672_v2 = vld [vmem:[%s906_s1] sm:$0xff]   ;;  %594 = vmatprep.subr.bf16.mxu0 %v671_v0  ;;  %652 = vmatprep.subr.bf16.mxu1 %v671_v0  ;;  %v674_v4 = vld [vmem:[%s906_s1 + $0x8] sm:$0xff]   ;;  %v676_v6 = vld [vmem:[%s906_s1 + $0x10] sm:$0xff]  }
   0x3   :  { %595 = vmatpush3.bf16.msra.mxu0 %v672_v2  ;;  %660 = vmatpush3.bf16.msra.mxu1 %v672_v2  ;;  %v677_v7 = vld [vmem:[%s906_s1 + $0x58] sm:$0xff]   ;;  %v679_v9 = vld [vmem:[%s906_s1 + $0x60] sm:$0xff]   ;;  %v681_v11 = vld [vmem:[%s906_s1 + $0x68] sm:$0xff]  }
   0x4   :  { %596 = vmatprep.subr.bf16.mxu0 %v673_v3  ;;  %653 = vmatprep.subr.bf16.mxu1 %v673_v3  ;;  %v678_v8 = vld [vmem:[%s906_s1 + $0x18] sm:$0xff]   ;;  %v680_v10 = vld [vmem:[%s906_s1 + $0x20] sm:$0xff]   ;;  %v682_v14 = vld [vmem:[%s906_s1 + $0x28] sm:$0xff]  }
   0x5   :  { %v689_v12 = vld [vmem:[%s907_s0 + $0x4] ss:$12 sps:$4 sm:$0xff]   ;;  %v692_v13 = vld [vmem:[%s907_s0 + $0x4c] ss:$12 sps:$4 sm:$0xff]   ;;  %v690_v23 = vld [vmem:[%s907_s0 + $0x48] ss:$12 sps:$4 sm:$0xff]  }
   0x6   :  { %v683_v15 = vld [vmem:[%s906_s1 + $0x70] sm:$0xff]   ;;  %303 = vmatprep.mubr.bf16.mxu0 %v689_v12  ;;  %327 = vmatprep.mubr.bf16.mxu1 %v692_v13  ;;  %v685_v17 = vld [vmem:[%s906_s1 + $0x78] sm:$0xff]   ;;  %v428_v20 = vld [vmem:[%s908_s2] sm:$0xff] }
   0x7   :  { %597 = vmatpush3.bf16.msra.mxu0 %v674_v4  ;;  %661 = vmatpush3.bf16.msra.mxu1 %v674_v4  ;;  %v684_v16 = vld [vmem:[%s906_s1 + $0x30] sm:$0xff]   ;;  %v686_v18 = vld [vmem:[%s906_s1 + $0x38] sm:$0xff]   ;;  %v693_v21 = vld [vmem:[%s906_s1 + $0x80] sm:$0xff]  }
   0x8   :  { %598 = vmatprep.subr.bf16.mxu0 %v675_v5  ;;  %654 = vmatprep.subr.bf16.mxu1 %v675_v5  ;;  %v430_v19 = vld [vmem:[%s908_s2 + $0x10] sm:$0xff]  ;;  %v687_v22 = vld [vmem:[%s907_s0] ss:$12 sps:$4 sm:$0xff]   ;;  %v431_v24 = vld [vmem:[%s908_s2 + $0x18] sm:$0xff] }
   0x9   :  { %448 = vperm.xlu1 %670, %v430_v19   ;;  %438 = vperm.xlu0 %669, %v428_v20   ;;  %v429_v25 = vld [vmem:[%s908_s2 + $0x8] sm:$0xff]  ;;  %v432_v30 = vld [vmem:[%s908_s2 + $0x20] sm:$0xff]  ;;  %v435_v33 = vld [vmem:[%s908_s2 + $0x38] sm:$0xff] }
   0xa   :  { %v695_v26 = vld [vmem:[%s907_s0 + $0x1c] ss:$12 sps:$4 sm:$0xff]   ;;  %v698_v31 = vld [vmem:[%s907_s0 + $0x18] ss:$12 sps:$4 sm:$0xff]   ;;  %v699_v32 = vld [vmem:[%s907_s0 + $0x20] ss:$12 sps:$4 sm:$0xff]  }
   0xb   :  { %599 = vmatpush3.bf16.msra.mxu0 %v676_v6  ;;  %662 = vmatpush3.bf16.msra.mxu1 %v676_v6  ;;  %v694_v27 = vld [vmem:[%s906_s1 + $0x88] sm:$0xff]   ;;  %v434_v34 = vld [vmem:[%s908_s2 + $0x30] sm:$0xff]  ;;  %v702_v36 = vld [vmem:[%s907_s0 + $0x38] ss:$12 sps:$4 sm:$0xff]  }
   0xc   :  { %600 = vmatprep.subr.bf16.mxu0 %v677_v7  ;;  %655 = vmatprep.subr.bf16.mxu1 %v677_v7  ;;  %v697_v28 = vld [vmem:[%s907_s0 + $0x8] ss:$12 sps:$4 sm:$0xff]   ;;  %v484_v38 = vld [vmem:[%s909_s3] sm:$0xff]  ;;  %v703_v39 = vld [vmem:[%s907_s0 + $0x30] ss:$12 sps:$4 sm:$0xff]  }
   0xd   :  { %453 = vperm.xlu1 %670, %v431_v24   ;;  %443 = vperm.xlu0 %669, %v429_v25   ;;  %v433_v29 = vld [vmem:[%s908_s2 + $0x28] sm:$0xff]  ;;  %v700_v35 = vld [vmem:[%s907_s0 + $0x34] ss:$12 sps:$4 sm:$0xff]   ;;  %v704_v40 = vld [vmem:[%s907_s0 + $0x50] ss:$12 sps:$4 sm:$0xff]  }
   0xe   :  { %v485_v37 = vld [vmem:[%s909_s3 + $0x8] sm:$0xff]  ;;  %v487_v41 = vld [vmem:[%s909_s3 + $0x18] sm:$0xff]  ;;  %v486_v42 = vld [vmem:[%s909_s3 + $0x10] sm:$0xff] }
   0xf   :  { %601 = vmatpush3.bf16.msra.mxu0 %v678_v8  ;;  %663 = vmatpush3.bf16.msra.mxu1 %v678_v8  ;;  %v489_v43 = vld [vmem:[%s909_s3 + $0x28] sm:$0xff]  ;;  %v488_v44 = vld [vmem:[%s909_s3 + $0x20] sm:$0xff]  ;;  %v491_v45 = vld [vmem:[%s909_s3 + $0x38] sm:$0xff] }
  0x10   :  { %602 = vmatprep.subr.bf16.mxu0 %v679_v9  ;;  %656 = vmatprep.subr.bf16.mxu1 %v679_v9  ;;  %v490_v46 = vld [vmem:[%s909_s3 + $0x30] sm:$0xff] }
  0x11   :  { %463 = vperm.xlu1 %670, %v433_v29   ;;  %458 = vperm.xlu0 %669, %v432_v30  }
  0x13   :  { %603 = vmatpush3.bf16.msra.mxu0 %v680_v10  ;;  %664 = vmatpush3.bf16.msra.mxu1 %v680_v10 }
  0x14   :  { %604 = vmatprep.subr.bf16.mxu0 %v681_v11  ;;  %657 = vmatprep.subr.bf16.mxu1 %v681_v11 }
  0x15   :  { %473 = vperm.xlu1 %670, %v435_v33   ;;  %468 = vperm.xlu0 %669, %v434_v34  }
  0x17   :  { %605 = vmatpush3.bf16.msra.mxu0 %v682_v14  ;;  %665 = vmatpush3.bf16.msra.mxu1 %v682_v14 }
  0x18   :  { %606 = vmatprep.subr.bf16.mxu0 %v683_v15  ;;  %658 = vmatprep.subr.bf16.mxu1 %v683_v15 }
  0x19   :  { %499 = vperm.xlu1 %670, %v485_v37   ;;  %494 = vperm.xlu0 %669, %v484_v38  }
  0x1b   :  { %607 = vmatpush3.bf16.msra.mxu0 %v684_v16  ;;  %666 = vmatpush3.bf16.msra.mxu1 %v684_v16 }
  0x1c   :  { %608 = vmatprep.subr.bf16.mxu0 %v685_v17  ;;  %659 = vmatprep.subr.bf16.mxu1 %v685_v17 }
  0x1d   :  { %509 = vperm.xlu1 %670, %v487_v41   ;;  %504 = vperm.xlu0 %669, %v486_v42  }
  0x1f   :  { %609 = vmatpush3.bf16.msra.mxu0 %v686_v18  ;;  %667 = vmatpush3.bf16.msra.mxu1 %v686_v18 }
  0x20   :  { %640 = vmatprep.subr.bf16.mxu1 %v693_v21 }
  0x21   :  { %519 = vperm.xlu1 %670, %v489_v43   ;;  %514 = vperm.xlu0 %669, %v488_v44  }
  0x22   :  { %304 = vmatmul.mubr.bf16.vlgmr.msra.gmra.mrb[0].mxu0 %v687_v22  ;;  %328 = vmatmul.mubr.bf16.vlgmr.msra.gmra.mrb[0].mxu1 %v690_v23 }
  0x23   :  { %641 = vmatpush3.bf16.msra.mxu1 %v693_v21  ;;  %311 = vmatprep.mubr.bf16.mxu0 %v695_v26 }
  0x24   :  { %642 = vmatprep.subr.bf16.mxu1 %v694_v27  ;;  %644 = vmatprep.mubr.msk.bf16.mxu1 %vm258_vm0, %v697_v28 }
  0x25   :  { %529 = vperm.xlu1 %670, %v491_v45   ;;  %524 = vperm.xlu0 %669, %v490_v46  }
  0x27   :  { %643 = vmatpush3.bf16.msra.mxu1 %v694_v27 }
  0x2a   :  { %312 = vmatmul.mubr.bf16.gmra.mrb[4].mxu0 %v698_v31  ;;  %645 = vmatmul.mubr.msk.bf16.vlgmr.msra.gmra.mrb[4].mxu1 %vm258_vm0, %v699_v32 }
  0x2b   :  { %319 = vmatprep.mubr.bf16.mxu0 %v700_v35  ;;  %648 = vmatprep.mubr.msk.bf16.mxu1 %vm258_vm0, %v702_v36 }
  0x32   :  { %320 = vmatmul.mubr.bf16.gmra.mrb[8].mxu0 %v703_v39  ;;  %649 = vmatmul.mubr.msk.bf16.gmra.mrb[8].mxu1 %vm258_vm0, %v704_v40 }
  0x88   :  { %v449_v47 = vpop.permute.xlu1 %448  ;;  %v439_v48 = vpop.permute.xlu0 %438 }
  0x8c   :  { %v454_v49 = vpop.permute.xlu1 %453  ;;  %v444_v50 = vpop.permute.xlu0 %443 }
  0x90   :  { %v873_v51 = vpop.permute.xlu1 %463  ;;  %v875_v52 = vpop.permute.xlu0 %458 }
  0x94   :  { %v877_v53 = vpop.permute.xlu1 %473  ;;  %v469_v54 = vpop.permute.xlu0 %468 }
  0x98   :  { %v500_v55 = vpop.permute.xlu1 %499  ;;  %v495_v56 = vpop.permute.xlu0 %494 }
  0x9c   :  { %v510_v5 = vpop.permute.xlu1 %509  ;;  %v505_v6 = vpop.permute.xlu0 %504 }
  0xa0   :  { %v515_v21 = vpop.permute.xlu0 %514  ;;  %v520_v26 = vpop.permute.xlu1 %519 }
  0xa4   :  { %v525_v46 = vpop.permute.xlu0 %524 }
  0xf5   :  { %v610_v57 = vpop.f32.mrb[0].mxu0  ;;  %v628_v58 = vpop.f32.mrb[0].mxu1 }
  0xf6   :  { %v611_v59 = vpop.f32.mrb[1].mxu0  ;;  %v629_v60 = vpop.f32.mrb[1].mxu1 }
  0xf7   :  { %v612_v61 = vadd.f32 %v611_v59, %v610_v57  ;;  %v630_v62 = vadd.f32 %v629_v60, %v628_v58  ;;  %v613_v63 = vpop.f32.mrb[2].mxu0  ;;  %v631_v0 = vpop.f32.mrb[2].mxu1 }
  0xf8   :  { %v614_v1 = vpop.f32.mrb[3].mxu0  ;;  %v632_v2 = vpop.f32.mrb[3].mxu1 }
  0xf9   :  { %v615_v3 = vadd.f32 %v614_v1, %v613_v63  ;;  %v633_v4 = vadd.f32 %v632_v2, %v631_v0 }
  0xfd   :  { %v616_v7 = vpop.f32.mrb[4].mxu0  ;;  %v646_v8 = vpop.f32.mrb[4].mxu1 }
  0xfe   :  { %v617_v9 = vpop.f32.mrb[5].mxu0  ;;  %v370_v10 = vpop.f32.mrb[5].mxu1 }
  0xff   :  { %v618_v11 = vadd.f32 %v617_v9, %v616_v7  ;;  %v371_v12 = vadd.f32 %v612_v61, %v370_v10  ;;  %v619_v13 = vpop.f32.mrb[6].mxu0  ;;  %v647_v14 = vpop.f32.mrb[6].mxu1 }
 0x100   :  { %v620_v15 = vpop.f32.mrb[7].mxu0  ;;  %v373_v16 = vpop.f32.mrb[7].mxu1 }
 0x101   :  { %v379_v17 = vadd.f32 %v646_v8, %v618_v11  ;;  %v476_v18 = vmul.f32 %v439_v48, %v371_v12  ;;  %v621_v19 = vadd.f32 %v620_v15, %v619_v13  ;;  %v374_v20 = vadd.f32 %v615_v3, %v373_v16 }
 0x103   :  { %v478_v22 = vmul.f32 %v449_v47, %v379_v17  ;;  %v532_v23 = vadd.f32 %v495_v56, %v476_v18  ;;  %v382_v24 = vadd.f32 %v647_v14, %v621_v19  ;;  %v477_v25 = vmul.f32 %v444_v50, %v374_v20  ;;  %v530_v56 = vpop.permute.xlu1 %529 }
 0x105   :  { %v534_v27 = vadd.f32 %v505_v6, %v478_v22  ;;  %v540_v28 = vmax.f32 %v532_v23, 0.0  ;;  %v479_v29 = vmul.f32 %v454_v49, %v382_v24  ;;  %v533_v30 = vadd.f32 %v500_v55, %v477_v25  ;;  %v622_v31 = vpop.f32.mrb[8].mxu0  ;;  %v650_v32 = vpop.f32.mrb[8].mxu1 }
 0x106   :  { %v395_v33 = vadd.f32 %v650_v32, %v630_v62  ;;  %v623_v34 = vpop.f32.mrb[9].mxu0  ;;  %v386_v35 = vpop.f32.mrb[9].mxu1 }
 0x107   :  { %v542_v36 = vmax.f32 %v534_v27, 0.0  ;;  %548 = vst [vmem:[%s910_s4] sm:$0xff] %v540_v28  ;;  %v535_v37 = vadd.f32 %v510_v5, %v479_v29  ;;  %v541_v38 = vmax.f32 %v533_v30, 0.0  ;;  %v624_v39 = vadd.f32 %v623_v34, %v622_v31  ;;  %v625_v40 = vpop.f32.mrb[10].mxu0  ;;  %v651_v41 = vpop.f32.mrb[10].mxu1 }
 0x108   :  { %v482_v42 = vmul.f32 %v469_v54, %v395_v33  ;;  %v398_v43 = vadd.f32 %v651_v41, %v633_v4  ;;  %v626_v44 = vpop.f32.mrb[11].mxu0  ;;  %v389_v45 = vpop.f32.mrb[11].mxu1 }
 0x109   :  { %550 = vst [vmem:[%s910_s4 + $0x10] sm:$0xff] %v542_v36  ;;  %v543_v47 = vmax.f32 %v535_v37, 0.0  ;;  %549 = vst [vmem:[%s910_s4 + $0x8] sm:$0xff] %v541_v38  ;;  %v387_v48 = vadd.f32 %v624_v39, %v386_v35  ;;  %v627_v49 = vadd.f32 %v626_v44, %v625_v40 }
 0x10a   :  { %v538_v50 = vadd.f32 %v525_v46, %v482_v42  ;;  %v483_v55 = vmul.f32 %v877_v53, %v398_v43 }
 0x10b   :  { %551 = vst [vmem:[%s910_s4 + $0x18] sm:$0xff] %v543_v47  ;;  %v480_v54 = vmul.f32 %v875_v52, %v387_v48  ;;  %v390_v57 = vadd.f32 %v627_v49, %v389_v45 }
 0x10c   :  { %v546_v58 = vmax.f32 %v538_v50, 0.0  ;;  %v539_v59 = vadd.f32 %v530_v56, %v483_v55 }
 0x10d   :  { %v536_v60 = vadd.f32 %v515_v21, %v480_v54  ;;  %v481_v61 = vmul.f32 %v873_v51, %v390_v57 }
 0x10e   :  { %554 = vst [vmem:[%s910_s4 + $0x30] sm:$0xff] %v546_v58  ;;  %v547_v62 = vmax.f32 %v539_v59, 0.0 }
 0x10f   :  { %v544_v63 = vmax.f32 %v536_v60, 0.0  ;;  %v537_v53 = vadd.f32 %v520_v26, %v481_v61 }
 0x110   :  { %555 = vst [vmem:[%s910_s4 + $0x38] sm:$0xff] %v547_v62 }
 0x111   :  { %552 = vst [vmem:[%s910_s4 + $0x20] sm:$0xff] %v544_v63  ;;  %v545_v52 = vmax.f32 %v537_v53, 0.0 }
 0x113   :  { %553 = vst [vmem:[%s910_s4 + $0x28] sm:$0xff] %v545_v52 }

// kernel: _lambda_.33
= control target key start
LH: loop header
LB: loop body
LE: loop exit
PB: predicated region body
PF: predicated region fallthrough
CT: control target
= control target key end

     0   :  { %v1336_v1 = vmov 0   ;;  %vm462_vm0 = vcmask 523264   ;;  %vm853_vm1 = vcmask 261120   ;;  %s1771_s1 = inlined_call_operand.vmem [shape: bf16[576,128], index: 1, kind: input, shape index: {}]   ;;  %s1772_s0 = inlined_call_operand.vmem [shape: bf16[64,576], index: 0, kind: input, shape index: {}]   ;;  %s1773_s5 = inlined_call_operand.vmem [shape: bf16[32,128], index: 5, kind: input, shape index: {}]   ;;  %s1774_s2 = inlined_call_operand.vmem [shape: f32[64,1], index: 2, kind: input, shape index: {}]   ;;  %s1775_s4 = inlined_call_operand.vmem [shape: bf16[64,32], index: 4, kind: input, shape index: {}]   ;;  %s1776_s3 = inlined_call_operand.vmem [shape: f32[64,1], index: 3, kind: input, shape index: {}]   ;;  %s1777_s6 = inlined_call_operand.vmem [shape: f32[64,1], index: 6, kind: input, shape index: {}]   ;;  %s1778_s7 = inlined_call_operand.vmem [shape: f32[64,1], index: 7, kind: input, shape index: {}]   ;;  %s1779_s8 = inlined_call_operand.vmem [shape: f32[64,128], index: 8, kind: output, shape index: {}]  }
   0x1   :  { %v1266_v0 = vld [vmem:[%s1771_s1 + $0x40] sm:$0xff]   ;;  %1265 = vset.pattern.permute.xlu1 %v1336_v1  ;;  %1264 = vset.pattern.permute.xlu0 %v1336_v1  ;;  %v1270_v5 = vld [vmem:[%s1771_s1 + $0x48] sm:$0xff]   ;;  %v1274_v9 = vld [vmem:[%s1771_s1 + $0x50] sm:$0xff]  }
   0x2   :  { %v1267_v2 = vld [vmem:[%s1771_s1 + $0xc0] sm:$0xff]   ;;  %1141 = vmatprep.subr.bf16.mxu0 %v1266_v0  ;;  %v1271_v6 = vld [vmem:[%s1771_s1 + $0xc8] sm:$0xff]   ;;  %v1275_v10 = vld [vmem:[%s1771_s1 + $0xd0] sm:$0xff]  }
   0x3   :  { %v1268_v3 = vld [vmem:[%s1771_s1] sm:$0xff]   ;;  %1181 = vmatprep.subr.bf16.mxu1 %v1267_v2  ;;  %v1272_v7 = vld [vmem:[%s1771_s1 + $0x8] sm:$0xff]   ;;  %v1276_v11 = vld [vmem:[%s1771_s1 + $0x10] sm:$0xff]  }
   0x4   :  { %v1269_v4 = vld [vmem:[%s1771_s1 + $0x80] sm:$0xff]   ;;  %1142 = vmatpush3.bf16.msra.mxu0 %v1268_v3  ;;  %v1273_v8 = vld [vmem:[%s1771_s1 + $0x88] sm:$0xff]   ;;  %v1277_v12 = vld [vmem:[%s1771_s1 + $0x90] sm:$0xff]  }
   0x5   :  { %1182 = vmatpush3.bf16.msra.mxu1 %v1269_v4  ;;  %1143 = vmatprep.subr.bf16.mxu0 %v1270_v5  ;;  %v1278_v13 = vld [vmem:[%s1771_s1 + $0x58] sm:$0xff]   ;;  %v1282_v17 = vld [vmem:[%s1771_s1 + $0x60] sm:$0xff]   ;;  %v1286_v21 = vld [vmem:[%s1771_s1 + $0x68] sm:$0xff]  }
   0x6   :  { %1183 = vmatprep.subr.bf16.mxu1 %v1271_v6  ;;  %v1279_v14 = vld [vmem:[%s1771_s1 + $0xd8] sm:$0xff]   ;;  %v1283_v18 = vld [vmem:[%s1771_s1 + $0xe0] sm:$0xff]   ;;  %v1287_v22 = vld [vmem:[%s1771_s1 + $0xe8] sm:$0xff]  }
   0x7   :  { %v1280_v15 = vld [vmem:[%s1771_s1 + $0x18] sm:$0xff]   ;;  %v1284_v19 = vld [vmem:[%s1771_s1 + $0x20] sm:$0xff]   ;;  %v1288_v23 = vld [vmem:[%s1771_s1 + $0x28] sm:$0xff]  }
   0x8   :  { %1144 = vmatpush3.bf16.msra.mxu0 %v1272_v7  ;;  %v1281_v16 = vld [vmem:[%s1771_s1 + $0x98] sm:$0xff]   ;;  %v1285_v20 = vld [vmem:[%s1771_s1 + $0xa0] sm:$0xff]   ;;  %v1289_v24 = vld [vmem:[%s1771_s1 + $0xa8] sm:$0xff]  }
   0x9   :  { %1184 = vmatpush3.bf16.msra.mxu1 %v1273_v8  ;;  %1145 = vmatprep.subr.bf16.mxu0 %v1274_v9  ;;  %v1290_v25 = vld [vmem:[%s1771_s1 + $0x70] sm:$0xff]   ;;  %v1294_v29 = vld [vmem:[%s1771_s1 + $0x78] sm:$0xff]   ;;  %v1303_v36 = vld [vmem:[%s1772_s0 + $0xc] ss:$20 sps:$4 sm:$0xff]  }
   0xa   :  { %1185 = vmatprep.subr.bf16.mxu1 %v1275_v10  ;;  %v1291_v26 = vld [vmem:[%s1771_s1 + $0xf0] sm:$0xff]   ;;  %v1295_v30 = vld [vmem:[%s1771_s1 + $0xf8] sm:$0xff]   ;;  %v1304_v37 = vld [vmem:[%s1771_s1 + $0x100] sm:$0xff]   ;;  %572 = vmatprep.mubr.bf16.mxu1 %v1303_v36 }
   0xb   :  { %v1292_v27 = vld [vmem:[%s1771_s1 + $0x30] sm:$0xff]   ;;  %v1296_v31 = vld [vmem:[%s1771_s1 + $0x38] sm:$0xff]   ;;  %v1305_v38 = vld [vmem:[%s1773_s5] sm:$0xff]  }
   0xc   :  { %1146 = vmatpush3.bf16.msra.mxu0 %v1276_v11  ;;  %v1293_v28 = vld [vmem:[%s1771_s1 + $0xb0] sm:$0xff]   ;;  %v1297_v32 = vld [vmem:[%s1771_s1 + $0xb8] sm:$0xff]   ;;  %v1306_v39 = vld [vmem:[%s1772_s0 + $0x2c] ss:$20 sps:$4 sm:$0xff]  }
   0xd   :  { %1186 = vmatpush3.bf16.msra.mxu1 %v1277_v12  ;;  %1147 = vmatprep.subr.bf16.mxu0 %v1278_v13  ;;  %v1298_v33 = vld [vmem:[%s1772_s0] ss:$20 sps:$4 sm:$0xff]   ;;  %v1300_v34 = vld [vmem:[%s1772_s0 + $0x4] ss:$20 sps:$4 sm:$0xff]   ;;  %v1301_v35 = vld [vmem:[%s1772_s0 + $0x8] ss:$20 sps:$4 sm:$0xff]  }
   0xe   :  { %1187 = vmatprep.subr.bf16.mxu1 %v1279_v14  ;;  %507 = vmatprep.mubr.bf16.mxu0 %v1300_v34  ;;  %v1308_v40 = vld [vmem:[%s1772_s0 + $0x34] ss:$20 sps:$4 sm:$0xff]   ;;  %v1311_v42 = vld [vmem:[%s1772_s0 + $0x30] ss:$20 sps:$4 sm:$0xff]   ;;  %v700_v49 = vld [vmem:[%s1774_s2 + $0x18] sm:$0xff] }
   0xf   :  { %v1310_v41 = vld [vmem:[%s1772_s0 + $0x28] ss:$20 sps:$4 sm:$0xff]   ;;  %v699_v46 = vld [vmem:[%s1774_s2 + $0x10] sm:$0xff]  ;;  %v697_v47 = vld [vmem:[%s1774_s2] sm:$0xff] }
  0x10   :  { %1148 = vmatpush3.bf16.msra.mxu0 %v1280_v15  ;;  %v1312_v43 = vld [vmem:[%s1771_s1 + $0x108] sm:$0xff]   ;;  %v1315_v45 = vld [vmem:[%s1772_s0 + $0x5c] ss:$20 sps:$4 sm:$0xff]   ;;  %717 = vperm.xlu1 %1265, %v699_v46   ;;  %v701_v56 = vld [vmem:[%s1774_s2 + $0x20] sm:$0xff] }
  0x11   :  { %1188 = vmatpush3.bf16.msra.mxu1 %v1281_v16  ;;  %1149 = vmatprep.subr.bf16.mxu0 %v1282_v17  ;;  %v1313_v44 = vld [vmem:[%s1772_s0 + $0x54] ss:$20 sps:$4 sm:$0xff]   ;;  %v1317_v52 = vld [vmem:[%s1772_s0 + $0x50] ss:$20 sps:$4 sm:$0xff]   ;;  %v1318_v53 = vld [vmem:[%s1772_s0 + $0x58] ss:$20 sps:$4 sm:$0xff]  }
  0x12   :  { %1189 = vmatprep.subr.bf16.mxu1 %v1283_v18  ;;  %707 = vperm.xlu0 %1264, %v697_v47   ;;  %v1319_v48 = vld [vmem:[%s1771_s1 + $0x110] sm:$0xff]   ;;  %v698_v50 = vld [vmem:[%s1774_s2 + $0x8] sm:$0xff]  ;;  %v1323_v57 = vld [vmem:[%s1772_s0 + $0x84] ss:$20 sps:$4 sm:$0xff]  }
  0x13   :  { %v1320_v51 = vld [vmem:[%s1773_s5 + $0x8] sm:$0xff]   ;;  %v1321_v55 = vld [vmem:[%s1772_s0 + $0x7c] ss:$20 sps:$4 sm:$0xff]   ;;  %v1326_v62 = vld [vmem:[%s1772_s0 + $0x80] ss:$20 sps:$4 sm:$0xff]  }
  0x14   :  { %1150 = vmatpush3.bf16.msra.mxu0 %v1284_v19  ;;  %722 = vperm.xlu1 %1265, %v700_v49   ;;  %v702_v54 = vld [vmem:[%s1774_s2 + $0x28] sm:$0xff]  ;;  %v1327_v58 = vld [vmem:[%s1771_s1 + $0x118] sm:$0xff]   ;;  %v703_v60 = vld [vmem:[%s1774_s2 + $0x30] sm:$0xff] }
  0x15   :  { %1190 = vmatpush3.bf16.msra.mxu1 %v1285_v20  ;;  %1151 = vmatprep.subr.bf16.mxu0 %v1286_v21  ;;  %v704_v59 = vld [vmem:[%s1774_s2 + $0x38] sm:$0xff]  ;;  %v1328_v63 = vld [vmem:[%s1772_s0 + $0x10] ss:$20 sps:$4 sm:$0xff]   ;;  %v754_v0 = vld [vmem:[%s1776_s3 + $0x8] sm:$0xff] }
  0x16   :  { %1191 = vmatprep.subr.bf16.mxu1 %v1287_v22  ;;  %712 = vperm.xlu0 %1264, %v698_v50   ;;  %v1325_v61 = vld [vmem:[%s1772_s0 + $0x78] ss:$20 sps:$4 sm:$0xff]   ;;  %v753_v1 = vld [vmem:[%s1776_s3] sm:$0xff]  ;;  %v755_v4 = vld [vmem:[%s1776_s3 + $0x10] sm:$0xff] }
  0x17   :  { %v1329_v2 = vld [vmem:[%s1775_s4] sm:$0xff]   ;;  %v756_v3 = vld [vmem:[%s1776_s3 + $0x18] sm:$0xff]  ;;  %v758_v6 = vld [vmem:[%s1776_s3 + $0x28] sm:$0xff] }
  0x18   :  { %1152 = vmatpush3.bf16.msra.mxu0 %v1288_v23  ;;  %732 = vperm.xlu1 %1265, %v702_v54   ;;  %v1330_v5 = vld [vmem:[%s1772_s0 + $0x38] ss:$20 sps:$4 sm:$0xff]   ;;  %v1332_v8 = vld [vmem:[%s1772_s0 + $0x60] ss:$20 sps:$4 sm:$0xff]   ;;  %v1334_v13 = vld [vmem:[%s1772_s0 + $0x88] ss:$20 sps:$4 sm:$0xff]  }
  0x19   :  { %1192 = vmatpush3.bf16.msra.mxu1 %v1289_v24  ;;  %1153 = vmatprep.subr.bf16.mxu0 %v1290_v25  ;;  %v1331_v7 = vld [vmem:[%s1775_s4 + $0x8] sm:$0xff]   ;;  %v757_v9 = vld [vmem:[%s1776_s3 + $0x20] sm:$0xff]  ;;  %v1333_v10 = vld [vmem:[%s1775_s4 + $0x10] sm:$0xff]  }
  0x1a   :  { %1193 = vmatprep.subr.bf16.mxu1 %v1291_v26  ;;  %727 = vperm.xlu0 %1264, %v701_v56   ;;  %v760_v11 = vld [vmem:[%s1776_s3 + $0x38] sm:$0xff]  ;;  %v759_v12 = vld [vmem:[%s1776_s3 + $0x30] sm:$0xff]  ;;  %v932_v14 = vld [vmem:[%s1777_s6 + $0x8] sm:$0xff] }
  0x1b   :  { %v1335_v15 = vld [vmem:[%s1775_s4 + $0x18] sm:$0xff]   ;;  %v931_v16 = vld [vmem:[%s1777_s6] sm:$0xff]  ;;  %v933_v18 = vld [vmem:[%s1777_s6 + $0x10] sm:$0xff] }
  0x1c   :  { %1154 = vmatpush3.bf16.msra.mxu0 %v1292_v27  ;;  %742 = vperm.xlu1 %1265, %v704_v59   ;;  %v934_v17 = vld [vmem:[%s1777_s6 + $0x18] sm:$0xff]  ;;  %v936_v19 = vld [vmem:[%s1777_s6 + $0x28] sm:$0xff]  ;;  %v935_v20 = vld [vmem:[%s1777_s6 + $0x20] sm:$0xff] }
  0x1d   :  { %1194 = vmatpush3.bf16.msra.mxu1 %v1293_v28  ;;  %1155 = vmatprep.subr.bf16.mxu0 %v1294_v29  ;;  %v938_v21 = vld [vmem:[%s1777_s6 + $0x38] sm:$0xff]  ;;  %v937_v22 = vld [vmem:[%s1777_s6 + $0x30] sm:$0xff]  ;;  %v996_v23 = vld [vmem:[%s1778_s7 + $0x8] sm:$0xff] }
  0x1e   :  { %1195 = vmatprep.subr.bf16.mxu1 %v1295_v30  ;;  %737 = vperm.xlu0 %1264, %v703_v60   ;;  %v995_v24 = vld [vmem:[%s1778_s7] sm:$0xff]  ;;  %v998_v25 = vld [vmem:[%s1778_s7 + $0x18] sm:$0xff]  ;;  %v997_v26 = vld [vmem:[%s1778_s7 + $0x10] sm:$0xff] }
  0x1f   :  { %v1000_v27 = vld [vmem:[%s1778_s7 + $0x28] sm:$0xff]  ;;  %v999_v28 = vld [vmem:[%s1778_s7 + $0x20] sm:$0xff]  ;;  %v1002_v29 = vld [vmem:[%s1778_s7 + $0x38] sm:$0xff] }
  0x20   :  { %1156 = vmatpush3.bf16.msra.mxu0 %v1296_v31  ;;  %768 = vperm.xlu1 %1265, %v754_v0   ;;  %v1001_v30 = vld [vmem:[%s1778_s7 + $0x30] sm:$0xff] }
  0x21   :  { %1196 = vmatpush3.bf16.msra.mxu1 %v1297_v32  ;;  %1235 = vmatprep.subr.bf16.mxu0 %v1304_v37 }
  0x22   :  { %1251 = vmatprep.subr.bf16.mxu1 %v1305_v38  ;;  %763 = vperm.xlu0 %1264, %v753_v1  }
  0x23   :  { %508 = vmatmul.mubr.bf16.vlgmr.msra.gmra.mrb[0].mxu0 %v1298_v33 }
  0x24   :  { %573 = vmatmul.mubr.bf16.vlgmr.msra.gmra.mrb[0].mxu1 %v1301_v35  ;;  %1236 = vmatpush3.bf16.msra.mxu0 %v1304_v37 }
  0x25   :  { %1252 = vmatpush3.bf16.msra.mxu1 %v1305_v38  ;;  %515 = vmatprep.mubr.bf16.mxu0 %v1306_v39 }
  0x26   :  { %580 = vmatprep.mubr.bf16.mxu1 %v1308_v40  ;;  %1237 = vmatprep.subr.bf16.mxu0 %v1312_v43 }
  0x27   :  { %1253 = vmatprep.subr.bf16.mxu1 %v1320_v51  ;;  %778 = vperm.xlu1 %1265, %v756_v3  }
  0x28   :  { %1238 = vmatpush3.bf16.msra.mxu0 %v1312_v43  ;;  %773 = vperm.xlu0 %1264, %v755_v4  }
  0x29   :  { %1239 = vmatprep.subr.bf16.mxu0 %v1319_v48  ;;  %1254 = vmatpush3.bf16.msra.mxu1 %v1320_v51 }
  0x2b   :  { %516 = vmatmul.mubr.bf16.gmra.mrb[4].mxu0 %v1310_v41  ;;  %788 = vperm.xlu1 %1265, %v758_v6  }
  0x2c   :  { %581 = vmatmul.mubr.bf16.gmra.mrb[4].mxu1 %v1311_v42  ;;  %523 = vmatprep.mubr.bf16.mxu0 %v1313_v44 }
  0x2d   :  { %588 = vmatprep.mubr.bf16.mxu1 %v1315_v45  ;;  %1240 = vmatpush3.bf16.msra.mxu0 %v1319_v48 }
  0x2e   :  { %1241 = vmatprep.subr.bf16.mxu0 %v1327_v58  ;;  %783 = vperm.xlu0 %1264, %v757_v9  }
  0x2f   :  { %798 = vperm.xlu1 %1265, %v760_v11  }
  0x31   :  { %1242 = vmatpush3.bf16.msra.mxu0 %v1327_v58 }
  0x32   :  { %793 = vperm.xlu0 %1264, %v759_v12  }
  0x33   :  { %524 = vmatmul.mubr.bf16.gmra.mrb[8].mxu0 %v1317_v52  ;;  %946 = vperm.xlu1 %1265, %v932_v14  }
  0x34   :  { %589 = vmatmul.mubr.bf16.gmra.mrb[8].mxu1 %v1318_v53  ;;  %531 = vmatprep.mubr.bf16.mxu0 %v1321_v55 }
  0x35   :  { %596 = vmatprep.mubr.bf16.mxu1 %v1323_v57 }
  0x36   :  { %941 = vperm.xlu0 %1264, %v931_v16  }
  0x37   :  { %956 = vperm.xlu1 %1265, %v934_v17  }
  0x3a   :  { %951 = vperm.xlu0 %1264, %v933_v18  }
  0x3b   :  { %532 = vmatmul.mubr.bf16.gmra.mrb[12].mxu0 %v1325_v61  ;;  %966 = vperm.xlu1 %1265, %v936_v19  }
  0x3c   :  { %597 = vmatmul.mubr.bf16.gmra.mrb[12].mxu1 %v1326_v62  ;;  %1243 = vmatprep.mubr.msk.bf16.mxu0 %vm462_vm0, %v1328_v63 }
  0x3d   :  { %1255 = vmatprep.mubr.msk.bf16.mxu1 %vm853_vm1, %v1329_v2 }
  0x3e   :  { %961 = vperm.xlu0 %1264, %v935_v20  }
  0x3f   :  { %976 = vperm.xlu1 %1265, %v938_v21  }
  0x42   :  { %971 = vperm.xlu0 %1264, %v937_v22  }
  0x43   :  { %1244 = vmatmul.mubr.msk.bf16.vlgmr.msra.gmra.mrb[16].mxu0 %vm462_vm0, %v1330_v5  ;;  %1010 = vperm.xlu1 %1265, %v996_v23  }
  0x44   :  { %1256 = vmatmul.mubr.msk.bf16.vlgmr.msra.gmra.mrb[16].mxu1 %vm853_vm1, %v1331_v7  ;;  %1247 = vmatprep.mubr.msk.bf16.mxu0 %vm462_vm0, %v1332_v8 }
  0x45   :  { %1259 = vmatprep.mubr.msk.bf16.mxu1 %vm853_vm1, %v1333_v10 }
  0x46   :  { %1005 = vperm.xlu0 %1264, %v995_v24  }
  0x47   :  { %1020 = vperm.xlu1 %1265, %v998_v25  }
  0x4a   :  { %1015 = vperm.xlu0 %1264, %v997_v26  }
  0x4b   :  { %1248 = vmatmul.mubr.msk.bf16.gmra.mrb[20].mxu0 %vm462_vm0, %v1334_v13  ;;  %1030 = vperm.xlu1 %1265, %v1000_v27  }
  0x4c   :  { %1260 = vmatmul.mubr.msk.bf16.gmra.mrb[20].mxu1 %vm853_vm1, %v1335_v15 }
  0x4e   :  { %1025 = vperm.xlu0 %1264, %v999_v28  }
  0x4f   :  { %1040 = vperm.xlu1 %1265, %v1002_v29  }
  0x52   :  { %1035 = vperm.xlu0 %1264, %v1001_v30  }
  0x8f   :  { %v1674_v32 = vpop.permute.xlu1 %717 }
  0x91   :  { %v1672_v31 = vpop.permute.xlu0 %707 }
  0x93   :  { %v1678_v34 = vpop.permute.xlu1 %722 }
  0x95   :  { %v1676_v33 = vpop.permute.xlu0 %712 }
  0x97   :  { %v1682_v36 = vpop.permute.xlu1 %732 }
  0x99   :  { %v1680_v35 = vpop.permute.xlu0 %727 }
  0x9b   :  { %v1686_v38 = vpop.permute.xlu1 %742 }
  0x9d   :  { %v1684_v37 = vpop.permute.xlu0 %737 }
  0x9f   :  { %v1690_v40 = vpop.permute.xlu1 %768 }
  0xa1   :  { %v1688_v39 = vpop.permute.xlu0 %763 }
  0xa6   :  { %v1694_v42 = vpop.permute.xlu1 %778 }
  0xa7   :  { %v1692_v41 = vpop.permute.xlu0 %773 }
  0xaa   :  { %v1698_v44 = vpop.permute.xlu1 %788 }
  0xad   :  { %v1696_v43 = vpop.permute.xlu0 %783 }
  0xae   :  { %v1702_v46 = vpop.permute.xlu1 %798 }
  0xb1   :  { %v1700_v45 = vpop.permute.xlu0 %793 }
  0xb2   :  { %v1706_v48 = vpop.permute.xlu1 %946 }
  0xb5   :  { %v1704_v47 = vpop.permute.xlu0 %941 }
  0xb6   :  { %v1710_v63 = vpop.permute.xlu1 %956 }
  0xb9   :  { %v1708_v49 = vpop.permute.xlu0 %951 }
  0xba   :  { %v1714_v15 = vpop.permute.xlu1 %966 }
  0xbd   :  { %v1712_v1 = vpop.permute.xlu0 %961 }
  0xc1   :  { %v1716_v17 = vpop.permute.xlu0 %971 }
  0xf6   :  { %v1157_v50 = vpop.f32.mrb[0].mxu0 }
  0xf7   :  { %v1197_v51 = vpop.f32.mrb[0].mxu1  ;;  %v1158_v52 = vpop.f32.mrb[1].mxu0 }
  0xf8   :  { %v1159_v53 = vadd.f32 %v1158_v52, %v1157_v50  ;;  %v1198_v54 = vpop.f32.mrb[1].mxu1  ;;  %v1160_v55 = vpop.f32.mrb[2].mxu0 }
  0xf9   :  { %v1199_v56 = vadd.f32 %v1198_v54, %v1197_v51  ;;  %v1200_v57 = vpop.f32.mrb[2].mxu1  ;;  %v1161_v58 = vpop.f32.mrb[3].mxu0 }
  0xfa   :  { %v1162_v59 = vadd.f32 %v1161_v58, %v1160_v55  ;;  %v1201_v60 = vpop.f32.mrb[3].mxu1  ;;  %v1718_v50 = vpop.permute.xlu1 %976 }
  0xfb   :  { %v1202_v61 = vadd.f32 %v1201_v60, %v1200_v57  ;;  %v575_v62 = vadd.f32 %v1199_v56, %v1159_v53  ;;  %v1006_v52 = vpop.permute.xlu0 %1005 }
  0xfd   :  { %v578_v0 = vadd.f32 %v1202_v61, %v1162_v59 }
  0xfe   :  { %v1163_v2 = vpop.f32.mrb[4].mxu0 }
  0xff   :  { %v1203_v3 = vpop.f32.mrb[4].mxu1  ;;  %v1164_v4 = vpop.f32.mrb[5].mxu0 }
 0x100   :  { %v1165_v5 = vadd.f32 %v1164_v4, %v1163_v2  ;;  %v1204_v6 = vpop.f32.mrb[5].mxu1  ;;  %v1166_v7 = vpop.f32.mrb[6].mxu0 }
 0x101   :  { %v1205_v8 = vadd.f32 %v1204_v6, %v1203_v3  ;;  %v1206_v9 = vpop.f32.mrb[6].mxu1  ;;  %v1167_v10 = vpop.f32.mrb[7].mxu0 }
 0x102   :  { %v1168_v11 = vadd.f32 %v1167_v10, %v1166_v7  ;;  %v1207_v12 = vpop.f32.mrb[7].mxu1  ;;  %v1011_v6 = vpop.permute.xlu1 %1010 }
 0x103   :  { %v1208_v13 = vadd.f32 %v1207_v12, %v1206_v9  ;;  %v583_v14 = vadd.f32 %v1205_v8, %v1165_v5  ;;  %v1016_v8 = vpop.permute.xlu0 %1015 }
 0x105   :  { %v586_v16 = vadd.f32 %v1208_v13, %v1168_v11 }
 0x106   :  { %v1169_v18 = vpop.f32.mrb[8].mxu0 }
 0x107   :  { %v1209_v19 = vpop.f32.mrb[8].mxu1  ;;  %v1170_v20 = vpop.f32.mrb[9].mxu0 }
 0x108   :  { %v1171_v21 = vadd.f32 %v1170_v20, %v1169_v18  ;;  %v1210_v22 = vpop.f32.mrb[9].mxu1  ;;  %v1172_v23 = vpop.f32.mrb[10].mxu0 }
 0x109   :  { %v1211_v24 = vadd.f32 %v1210_v22, %v1209_v19  ;;  %v1212_v25 = vpop.f32.mrb[10].mxu1  ;;  %v1173_v26 = vpop.f32.mrb[11].mxu0 }
 0x10a   :  { %v1174_v27 = vadd.f32 %v1173_v26, %v1172_v23  ;;  %v1213_v28 = vpop.f32.mrb[11].mxu1 }
 0x10b   :  { %v1214_v29 = vadd.f32 %v1213_v28, %v1212_v25  ;;  %v591_v30 = vadd.f32 %v1211_v24, %v1171_v21 }
 0x10d   :  { %v1720_v51 = vadd.f32 %v1214_v29, %v1174_v27 }
 0x10e   :  { %v1175_v53 = vpop.f32.mrb[12].mxu0 }
 0x10f   :  { %v1215_v54 = vpop.f32.mrb[12].mxu1  ;;  %v1176_v55 = vpop.f32.mrb[13].mxu0 }
 0x110   :  { %v1177_v56 = vadd.f32 %v1176_v55, %v1175_v53  ;;  %v1216_v57 = vpop.f32.mrb[13].mxu1  ;;  %v1178_v58 = vpop.f32.mrb[14].mxu0 }
 0x111   :  { %v1217_v59 = vadd.f32 %v1216_v57, %v1215_v54  ;;  %v1218_v60 = vpop.f32.mrb[14].mxu1  ;;  %v1179_v61 = vpop.f32.mrb[15].mxu0 }
 0x112   :  { %v1180_v2 = vadd.f32 %v1179_v61, %v1178_v58  ;;  %v1219_v3 = vpop.f32.mrb[15].mxu1 }
 0x113   :  { %v1220_v4 = vadd.f32 %v1219_v3, %v1218_v60  ;;  %v599_v5 = vadd.f32 %v1217_v59, %v1177_v56 }
 0x115   :  { %v602_v7 = vadd.f32 %v1220_v4, %v1180_v2 }
 0x116   :  { %v1245_v9 = vpop.f32.mrb[16].mxu0 }
 0x117   :  { %v648_v10 = vadd.f32 %v1245_v9, %v583_v14  ;;  %v1257_v11 = vpop.f32.mrb[16].mxu1  ;;  %v639_v12 = vpop.f32.mrb[17].mxu0 }
 0x118   :  { %v640_v13 = vadd.f32 %v639_v12, %v575_v62  ;;  %v900_v18 = vpop.f32.mrb[17].mxu1  ;;  %v1246_v19 = vpop.f32.mrb[18].mxu0  ;;  %v981_v28 = vmul.f32 %v1257_v11, %v1708_v49 }
 0x119   :  { %v747_v20 = vmul.f32 %v1674_v32, %v648_v10  ;;  %v651_v21 = vadd.f32 %v1246_v19, %v586_v16  ;;  %v1258_v22 = vpop.f32.mrb[18].mxu1  ;;  %v642_v23 = vpop.f32.mrb[19].mxu0  ;;  %v979_v62 = vmul.f32 %v1704_v47, %v900_v18 }
 0x11a   :  { %v745_v24 = vmul.f32 %v1672_v31, %v640_v13  ;;  %v643_v25 = vadd.f32 %v642_v23, %v578_v0  ;;  %v903_v26 = vpop.f32.mrb[19].mxu1  ;;  %v1021_v32 = vpop.permute.xlu1 %1020  ;;  %v982_v31 = vmul.f32 %v1258_v22, %v1710_v63 }
 0x11b   :  { %v803_v27 = vadd.f32 %v1692_v41, %v747_v20  ;;  %v748_v14 = vmul.f32 %v1678_v34, %v651_v21  ;;  %v1026_v0 = vpop.permute.xlu0 %1025  ;;  %v980_v49 = vmul.f32 %v1706_v48, %v903_v26 }
 0x11c   :  { %v801_v29 = vadd.f32 %v1688_v39, %v745_v24  ;;  %v746_v53 = vmul.f32 %v1676_v33, %v643_v25 }
 0x11d   :  { %v989_v16 = vadd.f32 %v981_v28, %v803_v27  ;;  %v804_v54 = vadd.f32 %v1694_v42, %v748_v14 }
 0x11e   :  { %v987_v55 = vadd.f32 %v979_v62, %v801_v29  ;;  %v802_v41 = vadd.f32 %v1690_v40, %v746_v53  ;;  %v1249_v56 = vpop.f32.mrb[20].mxu0 }
 0x11f   :  { %v1045_v34 = vadd.f32 %v1016_v8, %v989_v16  ;;  %v990_v57 = vadd.f32 %v982_v31, %v804_v54  ;;  %v664_v39 = vadd.f32 %v1249_v56, %v599_v5  ;;  %v1261_v58 = vpop.f32.mrb[20].mxu1  ;;  %v655_v47 = vpop.f32.mrb[21].mxu0 }
 0x120   :  { %v1043_v59 = vadd.f32 %v1006_v52, %v987_v55  ;;  %v988_v33 = vadd.f32 %v980_v49, %v802_v41  ;;  %v656_v60 = vadd.f32 %v655_v47, %v591_v30  ;;  %v916_v61 = vpop.f32.mrb[21].mxu1  ;;  %v1250_v2 = vpop.f32.mrb[22].mxu0  ;;  %v985_v12 = vmul.f32 %v1261_v58, %v1716_v17 }
 0x121   :  { %v1053_v42 = vmax.f32 %v1045_v34, 0.0  ;;  %v1046_v3 = vadd.f32 %v1021_v32, %v990_v57  ;;  %v751_v63 = vmul.f32 %v1684_v37, %v664_v39  ;;  %v1262_v4 = vpop.f32.mrb[22].mxu1  ;;  %v658_v9 = vpop.f32.mrb[23].mxu0  ;;  %v667_v8 = vadd.f32 %v1250_v2, %v602_v7 }
 0x122   :  { %v1051_v40 = vmax.f32 %v1043_v59, 0.0  ;;  %v1044_v10 = vadd.f32 %v1011_v6, %v988_v33  ;;  %v749_v48 = vmul.f32 %v1680_v35, %v656_v60  ;;  %v919_v11 = vpop.f32.mrb[23].mxu1  ;;  %v1031_v5 = vpop.permute.xlu1 %1030  ;;  %v659_v37 = vadd.f32 %v658_v9, %v1720_v51 }
 0x123   :  { %1061 = vst [vmem:[%s1779_s8 + $0x10] sm:$0xff] %v1053_v42  ;;  %v1054_v30 = vmax.f32 %v1046_v3, 0.0  ;;  %v807_v52 = vadd.f32 %v1700_v45, %v751_v63  ;;  %v983_v7 = vmul.f32 %v1712_v1, %v916_v61  ;;  %v752_v13 = vmul.f32 %v1686_v38, %v667_v8  ;;  %v1036_v18 = vpop.permute.xlu0 %1035 }
 0x124   :  { %1059 = vst [vmem:[%s1779_s8] sm:$0xff] %v1051_v40  ;;  %v1052_v6 = vmax.f32 %v1044_v10, 0.0  ;;  %v805_v35 = vadd.f32 %v1696_v43, %v749_v48  ;;  %v750_v17 = vmul.f32 %v1682_v36, %v659_v37  ;;  %v986_v43 = vmul.f32 %v1262_v4, %v1718_v50 }
 0x125   :  { %1062 = vst [vmem:[%s1779_s8 + $0x18] sm:$0xff] %v1054_v30  ;;  %v993_v45 = vadd.f32 %v985_v12, %v807_v52  ;;  %v808_v19 = vadd.f32 %v1702_v46, %v752_v13  ;;  %v984_v20 = vmul.f32 %v1714_v15, %v919_v11 }
 0x126   :  { %1060 = vst [vmem:[%s1779_s8 + $0x8] sm:$0xff] %v1052_v6  ;;  %v991_v51 = vadd.f32 %v983_v7, %v805_v35  ;;  %v806_v38 = vadd.f32 %v1698_v44, %v750_v17  ;;  %v1041_v23 = vpop.permute.xlu1 %1040 }
 0x127   :  { %v1049_v1 = vadd.f32 %v1036_v18, %v993_v45  ;;  %v994_v22 = vadd.f32 %v986_v43, %v808_v19 }
 0x128   :  { %v1047_v21 = vadd.f32 %v1026_v0, %v991_v51  ;;  %v992_v36 = vadd.f32 %v984_v20, %v806_v38 }
 0x129   :  { %v1057_v24 = vmax.f32 %v1049_v1, 0.0  ;;  %v1050_v26 = vadd.f32 %v1041_v23, %v994_v22 }
 0x12a   :  { %v1055_v25 = vmax.f32 %v1047_v21, 0.0  ;;  %v1048_v27 = vadd.f32 %v1031_v5, %v992_v36 }
 0x12b   :  { %1065 = vst [vmem:[%s1779_s8 + $0x30] sm:$0xff] %v1057_v24  ;;  %v1058_v46 = vmax.f32 %v1050_v26, 0.0 }
 0x12c   :  { %1063 = vst [vmem:[%s1779_s8 + $0x20] sm:$0xff] %v1055_v25  ;;  %v1056_v44 = vmax.f32 %v1048_v27, 0.0 }
 0x12d   :  { %1066 = vst [vmem:[%s1779_s8 + $0x38] sm:$0xff] %v1058_v46 }
 0x12e   :  { %1064 = vst [vmem:[%s1779_s8 + $0x28] sm:$0xff] %v1056_v44 }

// kernel: _lambda_.35
= control target key start
LH: loop header
LB: loop body
LE: loop exit
PB: predicated region body
PF: predicated region fallthrough
CT: control target
= control target key end

     0   :  { %v1075_v1 = vmov 0   ;;  %vm453_vm0 = vcmask 523264   ;;  %s1404_s1 = inlined_call_operand.vmem [shape: bf16[576,128], index: 1, kind: input, shape index: {}]   ;;  %s1405_s0 = inlined_call_operand.vmem [shape: bf16[64,576], index: 0, kind: input, shape index: {}]   ;;  %s1406_s2 = inlined_call_operand.vmem [shape: f32[64,1], index: 2, kind: input, shape index: {}]   ;;  %s1407_s3 = inlined_call_operand.vmem [shape: f32[64,1], index: 3, kind: input, shape index: {}]   ;;  %s1408_s4 = inlined_call_operand.vmem [shape: f32[64,128], index: 4, kind: input, shape index: {}]   ;;  %s1409_s5 = inlined_call_operand.vmem [shape: f32[64,128], index: 5, kind: output, shape index: {}]  }
   0x1   :  { %v1011_v0 = vld [vmem:[%s1404_s1 + $0x40] sm:$0xff]   ;;  %1010 = vset.pattern.permute.xlu1 %v1075_v1  ;;  %1009 = vset.pattern.permute.xlu0 %v1075_v1  ;;  %v1015_v5 = vld [vmem:[%s1404_s1 + $0x48] sm:$0xff]   ;;  %v1019_v9 = vld [vmem:[%s1404_s1 + $0x50] sm:$0xff]  }
   0x2   :  { %v1012_v2 = vld [vmem:[%s1404_s1 + $0xc0] sm:$0xff]   ;;  %896 = vmatprep.subr.bf16.mxu0 %v1011_v0  ;;  %v1016_v6 = vld [vmem:[%s1404_s1 + $0xc8] sm:$0xff]   ;;  %v1020_v10 = vld [vmem:[%s1404_s1 + $0xd0] sm:$0xff]  }
   0x3   :  { %v1013_v3 = vld [vmem:[%s1404_s1] sm:$0xff]   ;;  %936 = vmatprep.subr.bf16.mxu1 %v1012_v2  ;;  %v1017_v7 = vld [vmem:[%s1404_s1 + $0x8] sm:$0xff]   ;;  %v1021_v11 = vld [vmem:[%s1404_s1 + $0x10] sm:$0xff]  }
   0x4   :  { %v1014_v4 = vld [vmem:[%s1404_s1 + $0x80] sm:$0xff]   ;;  %897 = vmatpush3.bf16.msra.mxu0 %v1013_v3  ;;  %v1018_v8 = vld [vmem:[%s1404_s1 + $0x88] sm:$0xff]   ;;  %v1022_v12 = vld [vmem:[%s1404_s1 + $0x90] sm:$0xff]  }
   0x5   :  { %937 = vmatpush3.bf16.msra.mxu1 %v1014_v4  ;;  %898 = vmatprep.subr.bf16.mxu0 %v1015_v5  ;;  %v1023_v13 = vld [vmem:[%s1404_s1 + $0x58] sm:$0xff]   ;;  %v1027_v17 = vld [vmem:[%s1404_s1 + $0x60] sm:$0xff]   ;;  %v1031_v21 = vld [vmem:[%s1404_s1 + $0x68] sm:$0xff]  }
   0x6   :  { %938 = vmatprep.subr.bf16.mxu1 %v1016_v6  ;;  %v1024_v14 = vld [vmem:[%s1404_s1 + $0xd8] sm:$0xff]   ;;  %v1028_v18 = vld [vmem:[%s1404_s1 + $0xe0] sm:$0xff]   ;;  %v1032_v22 = vld [vmem:[%s1404_s1 + $0xe8] sm:$0xff]  }
   0x7   :  { %v1025_v15 = vld [vmem:[%s1404_s1 + $0x18] sm:$0xff]   ;;  %v1029_v19 = vld [vmem:[%s1404_s1 + $0x20] sm:$0xff]   ;;  %v1033_v23 = vld [vmem:[%s1404_s1 + $0x28] sm:$0xff]  }
   0x8   :  { %899 = vmatpush3.bf16.msra.mxu0 %v1017_v7  ;;  %v1026_v16 = vld [vmem:[%s1404_s1 + $0x98] sm:$0xff]   ;;  %v1030_v20 = vld [vmem:[%s1404_s1 + $0xa0] sm:$0xff]   ;;  %v1034_v24 = vld [vmem:[%s1404_s1 + $0xa8] sm:$0xff]  }
   0x9   :  { %939 = vmatpush3.bf16.msra.mxu1 %v1018_v8  ;;  %900 = vmatprep.subr.bf16.mxu0 %v1019_v9  ;;  %v1035_v25 = vld [vmem:[%s1404_s1 + $0x70] sm:$0xff]   ;;  %v1039_v29 = vld [vmem:[%s1404_s1 + $0x78] sm:$0xff]   ;;  %v1048_v36 = vld [vmem:[%s1405_s0 + $0xc] ss:$20 sps:$4 sm:$0xff]  }
   0xa   :  { %940 = vmatprep.subr.bf16.mxu1 %v1020_v10  ;;  %v1036_v26 = vld [vmem:[%s1404_s1 + $0xf0] sm:$0xff]   ;;  %v1040_v30 = vld [vmem:[%s1404_s1 + $0xf8] sm:$0xff]   ;;  %v1049_v37 = vld [vmem:[%s1404_s1 + $0x100] sm:$0xff]   ;;  %563 = vmatprep.mubr.bf16.mxu1 %v1048_v36 }
   0xb   :  { %v1037_v27 = vld [vmem:[%s1404_s1 + $0x30] sm:$0xff]   ;;  %v1041_v31 = vld [vmem:[%s1404_s1 + $0x38] sm:$0xff]   ;;  %v1050_v38 = vld [vmem:[%s1405_s0 + $0x2c] ss:$20 sps:$4 sm:$0xff]  }
   0xc   :  { %901 = vmatpush3.bf16.msra.mxu0 %v1021_v11  ;;  %v1038_v28 = vld [vmem:[%s1404_s1 + $0xb0] sm:$0xff]   ;;  %v1042_v32 = vld [vmem:[%s1404_s1 + $0xb8] sm:$0xff]   ;;  %v1056_v40 = vld [vmem:[%s1404_s1 + $0x108] sm:$0xff]  }
   0xd   :  { %941 = vmatpush3.bf16.msra.mxu1 %v1022_v12  ;;  %902 = vmatprep.subr.bf16.mxu0 %v1023_v13  ;;  %v1043_v33 = vld [vmem:[%s1405_s0] ss:$20 sps:$4 sm:$0xff]   ;;  %v1045_v34 = vld [vmem:[%s1405_s0 + $0x4] ss:$20 sps:$4 sm:$0xff]   ;;  %v1046_v35 = vld [vmem:[%s1405_s0 + $0x8] ss:$20 sps:$4 sm:$0xff]  }
   0xe   :  { %942 = vmatprep.subr.bf16.mxu1 %v1024_v14  ;;  %498 = vmatprep.mubr.bf16.mxu0 %v1045_v34  ;;  %v1052_v39 = vld [vmem:[%s1405_s0 + $0x34] ss:$20 sps:$4 sm:$0xff]   ;;  %v1055_v42 = vld [vmem:[%s1405_s0 + $0x30] ss:$20 sps:$4 sm:$0xff]   ;;  %v1070_v46 = vld [vmem:[%s1404_s1 + $0x118] sm:$0xff]  }
   0xf   :  { %v1054_v41 = vld [vmem:[%s1405_s0 + $0x28] ss:$20 sps:$4 sm:$0xff]   ;;  %v1063_v45 = vld [vmem:[%s1404_s1 + $0x110] sm:$0xff]   ;;  %v1062_v48 = vld [vmem:[%s1405_s0 + $0x58] ss:$20 sps:$4 sm:$0xff]  }
  0x10   :  { %903 = vmatpush3.bf16.msra.mxu0 %v1025_v15  ;;  %v1057_v43 = vld [vmem:[%s1405_s0 + $0x54] ss:$20 sps:$4 sm:$0xff]   ;;  %v1059_v44 = vld [vmem:[%s1405_s0 + $0x5c] ss:$20 sps:$4 sm:$0xff]   ;;  %v1066_v50 = vld [vmem:[%s1405_s0 + $0x84] ss:$20 sps:$4 sm:$0xff]  }
  0x11   :  { %943 = vmatpush3.bf16.msra.mxu1 %v1026_v16  ;;  %904 = vmatprep.subr.bf16.mxu0 %v1027_v17  ;;  %v1061_v47 = vld [vmem:[%s1405_s0 + $0x50] ss:$20 sps:$4 sm:$0xff]   ;;  %v691_v53 = vld [vmem:[%s1406_s2 + $0x18] sm:$0xff]  ;;  %v689_v54 = vld [vmem:[%s1406_s2 + $0x8] sm:$0xff] }
  0x12   :  { %944 = vmatprep.subr.bf16.mxu1 %v1028_v18  ;;  %v1064_v49 = vld [vmem:[%s1405_s0 + $0x7c] ss:$20 sps:$4 sm:$0xff]   ;;  %v688_v52 = vld [vmem:[%s1406_s2] sm:$0xff]  ;;  %v1068_v55 = vld [vmem:[%s1405_s0 + $0x78] ss:$20 sps:$4 sm:$0xff]  }
  0x13   :  { %v690_v51 = vld [vmem:[%s1406_s2 + $0x10] sm:$0xff]  ;;  %698 = vperm.xlu0 %1009, %v688_v52   ;;  %v693_v58 = vld [vmem:[%s1406_s2 + $0x28] sm:$0xff]  ;;  %v692_v60 = vld [vmem:[%s1406_s2 + $0x20] sm:$0xff] }
  0x14   :  { %905 = vmatpush3.bf16.msra.mxu0 %v1029_v19  ;;  %708 = vperm.xlu1 %1010, %v690_v51   ;;  %v1069_v56 = vld [vmem:[%s1405_s0 + $0x80] ss:$20 sps:$4 sm:$0xff]   ;;  %v1071_v57 = vld [vmem:[%s1405_s0 + $0x10] ss:$20 sps:$4 sm:$0xff]   ;;  %v695_v61 = vld [vmem:[%s1406_s2 + $0x38] sm:$0xff] }
  0x15   :  { %945 = vmatpush3.bf16.msra.mxu1 %v1030_v20  ;;  %906 = vmatprep.subr.bf16.mxu0 %v1031_v21  ;;  %v1072_v59 = vld [vmem:[%s1405_s0 + $0x60] ss:$20 sps:$4 sm:$0xff]   ;;  %v1073_v63 = vld [vmem:[%s1405_s0 + $0x38] ss:$20 sps:$4 sm:$0xff]   ;;  %v1074_v0 = vld [vmem:[%s1405_s0 + $0x88] ss:$20 sps:$4 sm:$0xff]  }
  0x16   :  { %946 = vmatprep.subr.bf16.mxu1 %v1032_v22  ;;  %v694_v62 = vld [vmem:[%s1406_s2 + $0x30] sm:$0xff]  ;;  %v745_v1 = vld [vmem:[%s1407_s3 + $0x8] sm:$0xff]  ;;  %v744_v2 = vld [vmem:[%s1407_s3] sm:$0xff] }
  0x17   :  { %703 = vperm.xlu0 %1009, %v689_v54   ;;  %v747_v3 = vld [vmem:[%s1407_s3 + $0x18] sm:$0xff]  ;;  %v746_v4 = vld [vmem:[%s1407_s3 + $0x10] sm:$0xff]  ;;  %v749_v5 = vld [vmem:[%s1407_s3 + $0x28] sm:$0xff] }
  0x18   :  { %907 = vmatpush3.bf16.msra.mxu0 %v1033_v23  ;;  %713 = vperm.xlu1 %1010, %v691_v53   ;;  %v748_v6 = vld [vmem:[%s1407_s3 + $0x20] sm:$0xff]  ;;  %v751_v7 = vld [vmem:[%s1407_s3 + $0x38] sm:$0xff]  ;;  %v750_v8 = vld [vmem:[%s1407_s3 + $0x30] sm:$0xff] }
  0x19   :  { %947 = vmatpush3.bf16.msra.mxu1 %v1034_v24  ;;  %908 = vmatprep.subr.bf16.mxu0 %v1035_v25 }
  0x1a   :  { %948 = vmatprep.subr.bf16.mxu1 %v1036_v26 }
  0x1b   :  { %718 = vperm.xlu0 %1009, %v692_v60  }
  0x1c   :  { %909 = vmatpush3.bf16.msra.mxu0 %v1037_v27  ;;  %723 = vperm.xlu1 %1010, %v693_v58  }
  0x1d   :  { %949 = vmatpush3.bf16.msra.mxu1 %v1038_v28  ;;  %910 = vmatprep.subr.bf16.mxu0 %v1039_v29 }
  0x1e   :  { %950 = vmatprep.subr.bf16.mxu1 %v1040_v30 }
  0x1f   :  { %728 = vperm.xlu0 %1009, %v694_v62  }
  0x20   :  { %911 = vmatpush3.bf16.msra.mxu0 %v1041_v31  ;;  %733 = vperm.xlu1 %1010, %v695_v61  }
  0x21   :  { %951 = vmatpush3.bf16.msra.mxu1 %v1042_v32  ;;  %984 = vmatprep.subr.bf16.mxu0 %v1049_v37 }
  0x22   :  { %1000 = vmatprep.subr.bf16.mxu1 %v1049_v37 }
  0x23   :  { %499 = vmatmul.mubr.bf16.vlgmr.msra.gmra.mrb[0].mxu0 %v1043_v33  ;;  %754 = vperm.xlu0 %1009, %v744_v2  }
  0x24   :  { %564 = vmatmul.mubr.bf16.vlgmr.msra.gmra.mrb[0].mxu1 %v1046_v35  ;;  %985 = vmatpush3.bf16.msra.mxu0 %v1049_v37 }
  0x25   :  { %1004 = vmatpush3.bf16.msra.mxu1 %v1049_v37  ;;  %506 = vmatprep.mubr.bf16.mxu0 %v1050_v38 }
  0x26   :  { %571 = vmatprep.mubr.bf16.mxu1 %v1052_v39  ;;  %986 = vmatprep.subr.bf16.mxu0 %v1056_v40 }
  0x27   :  { %1001 = vmatprep.subr.bf16.mxu1 %v1056_v40  ;;  %759 = vperm.xlu1 %1010, %v745_v1  }
  0x28   :  { %987 = vmatpush3.bf16.msra.mxu0 %v1056_v40  ;;  %764 = vperm.xlu0 %1009, %v746_v4  }
  0x29   :  { %1005 = vmatpush3.bf16.msra.mxu1 %v1056_v40  ;;  %988 = vmatprep.subr.bf16.mxu0 %v1063_v45 }
  0x2a   :  { %1002 = vmatprep.subr.bf16.mxu1 %v1063_v45 }
  0x2b   :  { %507 = vmatmul.mubr.bf16.gmra.mrb[4].mxu0 %v1054_v41  ;;  %769 = vperm.xlu1 %1010, %v747_v3  }
  0x2c   :  { %572 = vmatmul.mubr.bf16.gmra.mrb[4].mxu1 %v1055_v42  ;;  %514 = vmatprep.mubr.bf16.mxu0 %v1057_v43 }
  0x2d   :  { %579 = vmatprep.mubr.bf16.mxu1 %v1059_v44  ;;  %989 = vmatpush3.bf16.msra.mxu0 %v1063_v45 }
  0x2e   :  { %1006 = vmatpush3.bf16.msra.mxu1 %v1063_v45  ;;  %990 = vmatprep.subr.bf16.mxu0 %v1070_v46 }
  0x2f   :  { %1003 = vmatprep.subr.bf16.mxu1 %v1070_v46  ;;  %779 = vperm.xlu1 %1010, %v749_v5  }
  0x30   :  { %774 = vperm.xlu0 %1009, %v748_v6  }
  0x31   :  { %991 = vmatpush3.bf16.msra.mxu0 %v1070_v46 }
  0x32   :  { %1007 = vmatpush3.bf16.msra.mxu1 %v1070_v46 }
  0x33   :  { %515 = vmatmul.mubr.bf16.gmra.mrb[8].mxu0 %v1061_v47  ;;  %789 = vperm.xlu1 %1010, %v751_v7  }
  0x34   :  { %580 = vmatmul.mubr.bf16.gmra.mrb[8].mxu1 %v1062_v48  ;;  %522 = vmatprep.mubr.bf16.mxu0 %v1064_v49 }
  0x35   :  { %587 = vmatprep.mubr.bf16.mxu1 %v1066_v50  ;;  %784 = vperm.xlu0 %1009, %v750_v8  }
  0x3b   :  { %523 = vmatmul.mubr.bf16.gmra.mrb[12].mxu0 %v1068_v55 }
  0x3c   :  { %588 = vmatmul.mubr.bf16.gmra.mrb[12].mxu1 %v1069_v56  ;;  %992 = vmatprep.mubr.msk.bf16.mxu0 %vm453_vm0, %v1071_v57 }
  0x3d   :  { %996 = vmatprep.mubr.msk.bf16.mxu1 %vm453_vm0, %v1072_v59 }
  0x43   :  { %993 = vmatmul.mubr.msk.bf16.vlgmr.msra.gmra.mrb[16].mxu0 %vm453_vm0, %v1073_v63 }
  0x44   :  { %997 = vmatmul.mubr.msk.bf16.vlgmr.msra.gmra.mrb[16].mxu1 %vm453_vm0, %v1074_v0 }
  0x92   :  { %v1328_v10 = vpop.permute.xlu0 %698 }
  0x93   :  { %v1326_v9 = vpop.permute.xlu1 %708 }
  0x96   :  { %v1332_v12 = vpop.permute.xlu0 %703 }
  0x97   :  { %v1330_v11 = vpop.permute.xlu1 %713 }
  0x9a   :  { %v1336_v14 = vpop.permute.xlu0 %718 }
  0x9b   :  { %v1334_v13 = vpop.permute.xlu1 %723 }
  0x9e   :  { %v1342_v30 = vpop.permute.xlu0 %728 }
  0x9f   :  { %v1338_v28 = vpop.permute.xlu1 %733 }
  0xa2   :  { %v755_v46 = vpop.permute.xlu0 %754 }
  0xa6   :  { %v1344_v44 = vpop.permute.xlu1 %759 }
  0xa7   :  { %v765_v62 = vpop.permute.xlu0 %764 }
  0xaa   :  { %v770_v60 = vpop.permute.xlu1 %769 }
  0xf6   :  { %v912_v15 = vpop.f32.mrb[0].mxu0 }
  0xf7   :  { %v952_v16 = vpop.f32.mrb[0].mxu1  ;;  %v913_v17 = vpop.f32.mrb[1].mxu0 }
  0xf8   :  { %v914_v18 = vadd.f32 %v913_v17, %v912_v15  ;;  %v953_v19 = vpop.f32.mrb[1].mxu1  ;;  %v915_v20 = vpop.f32.mrb[2].mxu0 }
  0xf9   :  { %v954_v21 = vadd.f32 %v953_v19, %v952_v16  ;;  %v955_v22 = vpop.f32.mrb[2].mxu1  ;;  %v916_v23 = vpop.f32.mrb[3].mxu0 }
  0xfa   :  { %v917_v24 = vadd.f32 %v916_v23, %v915_v20  ;;  %v956_v25 = vpop.f32.mrb[3].mxu1  ;;  %v780_v20 = vpop.permute.xlu1 %779 }
  0xfb   :  { %v957_v26 = vadd.f32 %v956_v25, %v955_v22  ;;  %v566_v27 = vadd.f32 %v954_v21, %v914_v18  ;;  %v775_v18 = vpop.permute.xlu0 %774 }
  0xfd   :  { %v1340_v29 = vadd.f32 %v957_v26, %v917_v24 }
  0xfe   :  { %v918_v31 = vpop.f32.mrb[4].mxu0 }
  0xff   :  { %v958_v32 = vpop.f32.mrb[4].mxu1  ;;  %v919_v33 = vpop.f32.mrb[5].mxu0 }
 0x100   :  { %v920_v34 = vadd.f32 %v919_v33, %v918_v31  ;;  %v959_v35 = vpop.f32.mrb[5].mxu1  ;;  %v921_v36 = vpop.f32.mrb[6].mxu0 }
 0x101   :  { %v960_v37 = vadd.f32 %v959_v35, %v958_v32  ;;  %v961_v38 = vpop.f32.mrb[6].mxu1  ;;  %v922_v39 = vpop.f32.mrb[7].mxu0 }
 0x102   :  { %v923_v40 = vadd.f32 %v922_v39, %v921_v36  ;;  %v962_v41 = vpop.f32.mrb[7].mxu1 }
 0x103   :  { %v963_v42 = vadd.f32 %v962_v41, %v961_v38  ;;  %v574_v43 = vadd.f32 %v960_v37, %v920_v34  ;;  %v802_v38 = vld [vmem:[%s1408_s4 + $0x10] sm:$0xff] }
 0x105   :  { %v577_v45 = vadd.f32 %v963_v42, %v923_v40 }
 0x106   :  { %v924_v47 = vpop.f32.mrb[8].mxu0 }
 0x107   :  { %v964_v48 = vpop.f32.mrb[8].mxu1  ;;  %v925_v49 = vpop.f32.mrb[9].mxu0 }
 0x108   :  { %v926_v50 = vadd.f32 %v925_v49, %v924_v47  ;;  %v965_v51 = vpop.f32.mrb[9].mxu1  ;;  %v927_v52 = vpop.f32.mrb[10].mxu0 }
 0x109   :  { %v966_v53 = vadd.f32 %v965_v51, %v964_v48  ;;  %v967_v54 = vpop.f32.mrb[10].mxu1  ;;  %v928_v55 = vpop.f32.mrb[11].mxu0  ;;  %v803_v51 = vld [vmem:[%s1408_s4 + $0x18] sm:$0xff] }
 0x10a   :  { %v929_v56 = vadd.f32 %v928_v55, %v927_v52  ;;  %v968_v57 = vpop.f32.mrb[11].mxu1 }
 0x10b   :  { %v969_v58 = vadd.f32 %v968_v57, %v967_v54  ;;  %v582_v59 = vadd.f32 %v966_v53, %v926_v50  ;;  %v790_v54 = vpop.permute.xlu1 %789 }
 0x10d   :  { %v585_v61 = vadd.f32 %v969_v58, %v929_v56 }
 0x10e   :  { %v930_v63 = vpop.f32.mrb[12].mxu0 }
 0x10f   :  { %v970_v0 = vpop.f32.mrb[12].mxu1  ;;  %v931_v1 = vpop.f32.mrb[13].mxu0 }
 0x110   :  { %v932_v2 = vadd.f32 %v931_v1, %v930_v63  ;;  %v971_v3 = vpop.f32.mrb[13].mxu1  ;;  %v933_v4 = vpop.f32.mrb[14].mxu0 }
 0x111   :  { %v972_v5 = vadd.f32 %v971_v3, %v970_v0  ;;  %v973_v6 = vpop.f32.mrb[14].mxu1  ;;  %v934_v7 = vpop.f32.mrb[15].mxu0 }
 0x112   :  { %v935_v8 = vadd.f32 %v934_v7, %v933_v4  ;;  %v974_v15 = vpop.f32.mrb[15].mxu1 }
 0x113   :  { %v975_v16 = vadd.f32 %v974_v15, %v973_v6  ;;  %v590_v17 = vadd.f32 %v972_v5, %v932_v2 }
 0x115   :  { %v593_v19 = vadd.f32 %v975_v16, %v935_v8 }
 0x116   :  { %v994_v21 = vpop.f32.mrb[16].mxu0 }
 0x117   :  { %v639_v22 = vadd.f32 %v994_v21, %v574_v43  ;;  %v998_v23 = vpop.f32.mrb[16].mxu1  ;;  %v630_v24 = vpop.f32.mrb[17].mxu0 }
 0x118   :  { %v655_v25 = vadd.f32 %v998_v23, %v590_v17  ;;  %v631_v26 = vadd.f32 %v630_v24, %v566_v27  ;;  %v646_v31 = vpop.f32.mrb[17].mxu1  ;;  %v995_v32 = vpop.f32.mrb[18].mxu0 }
 0x119   :  { %v738_v33 = vmul.f32 %v1326_v9, %v639_v22  ;;  %v647_v34 = vadd.f32 %v646_v31, %v582_v59  ;;  %v642_v35 = vadd.f32 %v995_v32, %v577_v45  ;;  %v999_v36 = vpop.f32.mrb[18].mxu1  ;;  %v633_v37 = vpop.f32.mrb[19].mxu0  ;;  %v806_v9 = vld [vmem:[%s1408_s4 + $0x30] sm:$0xff]  ;;  %v800_v45 = vld [vmem:[%s1408_s4] sm:$0xff] }
 0x11a   :  { %v742_v39 = vmul.f32 %v1342_v30, %v655_v25  ;;  %v736_v40 = vmul.f32 %v1328_v10, %v631_v26  ;;  %v658_v41 = vadd.f32 %v999_v36, %v593_v19  ;;  %v634_v42 = vadd.f32 %v633_v37, %v1340_v29  ;;  %v649_v27 = vpop.f32.mrb[19].mxu1  ;;  %v785_v43 = vpop.permute.xlu0 %784  ;;  %v804_v29 = vld [vmem:[%s1408_s4 + $0x20] sm:$0xff] }
 0x11b   :  { %v794_v47 = vadd.f32 %v765_v62, %v738_v33  ;;  %v740_v48 = vmul.f32 %v1336_v14, %v647_v34  ;;  %v739_v30 = vmul.f32 %v1330_v11, %v642_v35  ;;  %v650_v49 = vadd.f32 %v649_v27, %v585_v61  ;;  %v807_v11 = vld [vmem:[%s1408_s4 + $0x38] sm:$0xff] }
 0x11c   :  { %v798_v10 = vadd.f32 %v785_v43, %v742_v39  ;;  %v792_v50 = vadd.f32 %v755_v46, %v736_v40  ;;  %v743_v52 = vmul.f32 %v1338_v28, %v658_v41  ;;  %v737_v53 = vmul.f32 %v1332_v12, %v634_v42  ;;  %v801_v46 = vld [vmem:[%s1408_s4 + $0x8] sm:$0xff] }
 0x11d   :  { %v810_v55 = vadd.f32 %v802_v38, %v794_v47  ;;  %v796_v14 = vadd.f32 %v775_v18, %v740_v48  ;;  %v795_v56 = vadd.f32 %v770_v60, %v739_v30  ;;  %v741_v57 = vmul.f32 %v1334_v13, %v650_v49  ;;  %v805_v12 = vld [vmem:[%s1408_s4 + $0x28] sm:$0xff] }
 0x11e   :  { %v814_v58 = vadd.f32 %v806_v9, %v798_v10  ;;  %v808_v59 = vadd.f32 %v800_v45, %v792_v50  ;;  %v799_v61 = vadd.f32 %v790_v54, %v743_v52  ;;  %v793_v28 = vadd.f32 %v1344_v44, %v737_v53 }
 0x11f   :  { %v818_v60 = vmax.f32 %v810_v55, 0.0  ;;  %v812_v62 = vadd.f32 %v804_v29, %v796_v14  ;;  %v811_v63 = vadd.f32 %v803_v51, %v795_v56  ;;  %v797_v0 = vadd.f32 %v780_v20, %v741_v57 }
 0x120   :  { %v822_v1 = vmax.f32 %v814_v58, 0.0  ;;  %v816_v2 = vmax.f32 %v808_v59, 0.0  ;;  %v815_v3 = vadd.f32 %v807_v11, %v799_v61  ;;  %v809_v4 = vadd.f32 %v801_v46, %v793_v28 }
 0x121   :  { %826 = vst [vmem:[%s1409_s5 + $0x10] sm:$0xff] %v818_v60  ;;  %v820_v13 = vmax.f32 %v812_v62, 0.0  ;;  %v819_v5 = vmax.f32 %v811_v63, 0.0  ;;  %v813_v6 = vadd.f32 %v805_v12, %v797_v0 }
 0x122   :  { %830 = vst [vmem:[%s1409_s5 + $0x30] sm:$0xff] %v822_v1  ;;  %824 = vst [vmem:[%s1409_s5] sm:$0xff] %v816_v2  ;;  %v823_v44 = vmax.f32 %v815_v3, 0.0  ;;  %v817_v7 = vmax.f32 %v809_v4, 0.0 }
 0x123   :  { %828 = vst [vmem:[%s1409_s5 + $0x20] sm:$0xff] %v820_v13  ;;  %827 = vst [vmem:[%s1409_s5 + $0x18] sm:$0xff] %v819_v5  ;;  %v821_v8 = vmax.f32 %v813_v6, 0.0 }
 0x124   :  { %831 = vst [vmem:[%s1409_s5 + $0x38] sm:$0xff] %v823_v44  ;;  %825 = vst [vmem:[%s1409_s5 + $0x8] sm:$0xff] %v817_v7 }
 0x125   :  { %829 = vst [vmem:[%s1409_s5 + $0x28] sm:$0xff] %v821_v8 }

// kernel: _lambda_.34
= control target key start
LH: loop header
LB: loop body
LE: loop exit
PB: predicated region body
PF: predicated region fallthrough
CT: control target
= control target key end

     0   :  { %v1056_v1 = vmov 0   ;;  %vm450_vm0 = vcmask 523264   ;;  %s1353_s1 = inlined_call_operand.vmem [shape: bf16[576,128], index: 1, kind: input, shape index: {}]   ;;  %s1354_s0 = inlined_call_operand.vmem [shape: bf16[64,576], index: 0, kind: input, shape index: {}]   ;;  %s1355_s2 = inlined_call_operand.vmem [shape: f32[64,1], index: 2, kind: input, shape index: {}]   ;;  %s1356_s3 = inlined_call_operand.vmem [shape: f32[64,1], index: 3, kind: input, shape index: {}]   ;;  %s1357_s4 = inlined_call_operand.vmem [shape: f32[64,128], index: 4, kind: output, shape index: {}]  }
   0x1   :  { %v992_v0 = vld [vmem:[%s1353_s1 + $0x40] sm:$0xff]   ;;  %991 = vset.pattern.permute.xlu1 %v1056_v1  ;;  %990 = vset.pattern.permute.xlu0 %v1056_v1  ;;  %v996_v5 = vld [vmem:[%s1353_s1 + $0x48] sm:$0xff]   ;;  %v1000_v9 = vld [vmem:[%s1353_s1 + $0x50] sm:$0xff]  }
   0x2   :  { %v993_v2 = vld [vmem:[%s1353_s1 + $0xc0] sm:$0xff]   ;;  %877 = vmatprep.subr.bf16.mxu0 %v992_v0  ;;  %v997_v6 = vld [vmem:[%s1353_s1 + $0xc8] sm:$0xff]   ;;  %v1001_v10 = vld [vmem:[%s1353_s1 + $0xd0] sm:$0xff]  }
   0x3   :  { %v994_v3 = vld [vmem:[%s1353_s1] sm:$0xff]   ;;  %917 = vmatprep.subr.bf16.mxu1 %v993_v2  ;;  %v998_v7 = vld [vmem:[%s1353_s1 + $0x8] sm:$0xff]   ;;  %v1002_v11 = vld [vmem:[%s1353_s1 + $0x10] sm:$0xff]  }
   0x4   :  { %v995_v4 = vld [vmem:[%s1353_s1 + $0x80] sm:$0xff]   ;;  %878 = vmatpush3.bf16.msra.mxu0 %v994_v3  ;;  %v999_v8 = vld [vmem:[%s1353_s1 + $0x88] sm:$0xff]   ;;  %v1003_v12 = vld [vmem:[%s1353_s1 + $0x90] sm:$0xff]  }
   0x5   :  { %918 = vmatpush3.bf16.msra.mxu1 %v995_v4  ;;  %879 = vmatprep.subr.bf16.mxu0 %v996_v5  ;;  %v1004_v13 = vld [vmem:[%s1353_s1 + $0x58] sm:$0xff]   ;;  %v1008_v17 = vld [vmem:[%s1353_s1 + $0x60] sm:$0xff]   ;;  %v1012_v21 = vld [vmem:[%s1353_s1 + $0x68] sm:$0xff]  }
   0x6   :  { %919 = vmatprep.subr.bf16.mxu1 %v997_v6  ;;  %v1005_v14 = vld [vmem:[%s1353_s1 + $0xd8] sm:$0xff]   ;;  %v1009_v18 = vld [vmem:[%s1353_s1 + $0xe0] sm:$0xff]   ;;  %v1013_v22 = vld [vmem:[%s1353_s1 + $0xe8] sm:$0xff]  }
   0x7   :  { %v1006_v15 = vld [vmem:[%s1353_s1 + $0x18] sm:$0xff]   ;;  %v1010_v19 = vld [vmem:[%s1353_s1 + $0x20] sm:$0xff]   ;;  %v1014_v23 = vld [vmem:[%s1353_s1 + $0x28] sm:$0xff]  }
   0x8   :  { %880 = vmatpush3.bf16.msra.mxu0 %v998_v7  ;;  %v1007_v16 = vld [vmem:[%s1353_s1 + $0x98] sm:$0xff]   ;;  %v1011_v20 = vld [vmem:[%s1353_s1 + $0xa0] sm:$0xff]   ;;  %v1015_v24 = vld [vmem:[%s1353_s1 + $0xa8] sm:$0xff]  }
   0x9   :  { %920 = vmatpush3.bf16.msra.mxu1 %v999_v8  ;;  %881 = vmatprep.subr.bf16.mxu0 %v1000_v9  ;;  %v1016_v25 = vld [vmem:[%s1353_s1 + $0x70] sm:$0xff]   ;;  %v1020_v29 = vld [vmem:[%s1353_s1 + $0x78] sm:$0xff]   ;;  %v1029_v36 = vld [vmem:[%s1354_s0 + $0xc] ss:$20 sps:$4 sm:$0xff]  }
   0xa   :  { %921 = vmatprep.subr.bf16.mxu1 %v1001_v10  ;;  %v1017_v26 = vld [vmem:[%s1353_s1 + $0xf0] sm:$0xff]   ;;  %v1021_v30 = vld [vmem:[%s1353_s1 + $0xf8] sm:$0xff]   ;;  %v1030_v37 = vld [vmem:[%s1353_s1 + $0x100] sm:$0xff]   ;;  %560 = vmatprep.mubr.bf16.mxu1 %v1029_v36 }
   0xb   :  { %v1018_v27 = vld [vmem:[%s1353_s1 + $0x30] sm:$0xff]   ;;  %v1022_v31 = vld [vmem:[%s1353_s1 + $0x38] sm:$0xff]   ;;  %v1031_v38 = vld [vmem:[%s1354_s0 + $0x2c] ss:$20 sps:$4 sm:$0xff]  }
   0xc   :  { %882 = vmatpush3.bf16.msra.mxu0 %v1002_v11  ;;  %v1019_v28 = vld [vmem:[%s1353_s1 + $0xb0] sm:$0xff]   ;;  %v1023_v32 = vld [vmem:[%s1353_s1 + $0xb8] sm:$0xff]   ;;  %v1037_v40 = vld [vmem:[%s1353_s1 + $0x108] sm:$0xff]  }
   0xd   :  { %922 = vmatpush3.bf16.msra.mxu1 %v1003_v12  ;;  %883 = vmatprep.subr.bf16.mxu0 %v1004_v13  ;;  %v1024_v33 = vld [vmem:[%s1354_s0] ss:$20 sps:$4 sm:$0xff]   ;;  %v1026_v34 = vld [vmem:[%s1354_s0 + $0x4] ss:$20 sps:$4 sm:$0xff]   ;;  %v1027_v35 = vld [vmem:[%s1354_s0 + $0x8] ss:$20 sps:$4 sm:$0xff]  }
   0xe   :  { %923 = vmatprep.subr.bf16.mxu1 %v1005_v14  ;;  %495 = vmatprep.mubr.bf16.mxu0 %v1026_v34  ;;  %v1033_v39 = vld [vmem:[%s1354_s0 + $0x34] ss:$20 sps:$4 sm:$0xff]   ;;  %v1036_v42 = vld [vmem:[%s1354_s0 + $0x30] ss:$20 sps:$4 sm:$0xff]   ;;  %v1051_v46 = vld [vmem:[%s1353_s1 + $0x118] sm:$0xff]  }
   0xf   :  { %v1035_v41 = vld [vmem:[%s1354_s0 + $0x28] ss:$20 sps:$4 sm:$0xff]   ;;  %v1044_v45 = vld [vmem:[%s1353_s1 + $0x110] sm:$0xff]   ;;  %v1043_v48 = vld [vmem:[%s1354_s0 + $0x58] ss:$20 sps:$4 sm:$0xff]  }
  0x10   :  { %884 = vmatpush3.bf16.msra.mxu0 %v1006_v15  ;;  %v1038_v43 = vld [vmem:[%s1354_s0 + $0x54] ss:$20 sps:$4 sm:$0xff]   ;;  %v1040_v44 = vld [vmem:[%s1354_s0 + $0x5c] ss:$20 sps:$4 sm:$0xff]   ;;  %v1047_v50 = vld [vmem:[%s1354_s0 + $0x84] ss:$20 sps:$4 sm:$0xff]  }
  0x11   :  { %924 = vmatpush3.bf16.msra.mxu1 %v1007_v16  ;;  %885 = vmatprep.subr.bf16.mxu0 %v1008_v17  ;;  %v1042_v47 = vld [vmem:[%s1354_s0 + $0x50] ss:$20 sps:$4 sm:$0xff]   ;;  %v688_v53 = vld [vmem:[%s1355_s2 + $0x18] sm:$0xff]  ;;  %v686_v54 = vld [vmem:[%s1355_s2 + $0x8] sm:$0xff] }
  0x12   :  { %925 = vmatprep.subr.bf16.mxu1 %v1009_v18  ;;  %v1045_v49 = vld [vmem:[%s1354_s0 + $0x7c] ss:$20 sps:$4 sm:$0xff]   ;;  %v685_v52 = vld [vmem:[%s1355_s2] sm:$0xff]  ;;  %v1049_v55 = vld [vmem:[%s1354_s0 + $0x78] ss:$20 sps:$4 sm:$0xff]  }
  0x13   :  { %v687_v51 = vld [vmem:[%s1355_s2 + $0x10] sm:$0xff]  ;;  %695 = vperm.xlu0 %990, %v685_v52   ;;  %v690_v58 = vld [vmem:[%s1355_s2 + $0x28] sm:$0xff]  ;;  %v689_v60 = vld [vmem:[%s1355_s2 + $0x20] sm:$0xff] }
  0x14   :  { %886 = vmatpush3.bf16.msra.mxu0 %v1010_v19  ;;  %705 = vperm.xlu1 %991, %v687_v51   ;;  %v1050_v56 = vld [vmem:[%s1354_s0 + $0x80] ss:$20 sps:$4 sm:$0xff]   ;;  %v1052_v57 = vld [vmem:[%s1354_s0 + $0x10] ss:$20 sps:$4 sm:$0xff]   ;;  %v692_v61 = vld [vmem:[%s1355_s2 + $0x38] sm:$0xff] }
  0x15   :  { %926 = vmatpush3.bf16.msra.mxu1 %v1011_v20  ;;  %887 = vmatprep.subr.bf16.mxu0 %v1012_v21  ;;  %v1053_v59 = vld [vmem:[%s1354_s0 + $0x60] ss:$20 sps:$4 sm:$0xff]   ;;  %v1054_v63 = vld [vmem:[%s1354_s0 + $0x38] ss:$20 sps:$4 sm:$0xff]   ;;  %v1055_v0 = vld [vmem:[%s1354_s0 + $0x88] ss:$20 sps:$4 sm:$0xff]  }
  0x16   :  { %927 = vmatprep.subr.bf16.mxu1 %v1013_v22  ;;  %v691_v62 = vld [vmem:[%s1355_s2 + $0x30] sm:$0xff]  ;;  %v742_v1 = vld [vmem:[%s1356_s3 + $0x8] sm:$0xff]  ;;  %v741_v2 = vld [vmem:[%s1356_s3] sm:$0xff] }
  0x17   :  { %700 = vperm.xlu0 %990, %v686_v54   ;;  %v744_v3 = vld [vmem:[%s1356_s3 + $0x18] sm:$0xff]  ;;  %v743_v4 = vld [vmem:[%s1356_s3 + $0x10] sm:$0xff]  ;;  %v746_v5 = vld [vmem:[%s1356_s3 + $0x28] sm:$0xff] }
  0x18   :  { %888 = vmatpush3.bf16.msra.mxu0 %v1014_v23  ;;  %710 = vperm.xlu1 %991, %v688_v53   ;;  %v745_v6 = vld [vmem:[%s1356_s3 + $0x20] sm:$0xff]  ;;  %v748_v7 = vld [vmem:[%s1356_s3 + $0x38] sm:$0xff]  ;;  %v747_v8 = vld [vmem:[%s1356_s3 + $0x30] sm:$0xff] }
  0x19   :  { %928 = vmatpush3.bf16.msra.mxu1 %v1015_v24  ;;  %889 = vmatprep.subr.bf16.mxu0 %v1016_v25 }
  0x1a   :  { %929 = vmatprep.subr.bf16.mxu1 %v1017_v26 }
  0x1b   :  { %715 = vperm.xlu0 %990, %v689_v60  }
  0x1c   :  { %890 = vmatpush3.bf16.msra.mxu0 %v1018_v27  ;;  %720 = vperm.xlu1 %991, %v690_v58  }
  0x1d   :  { %930 = vmatpush3.bf16.msra.mxu1 %v1019_v28  ;;  %891 = vmatprep.subr.bf16.mxu0 %v1020_v29 }
  0x1e   :  { %931 = vmatprep.subr.bf16.mxu1 %v1021_v30 }
  0x1f   :  { %725 = vperm.xlu0 %990, %v691_v62  }
  0x20   :  { %892 = vmatpush3.bf16.msra.mxu0 %v1022_v31  ;;  %730 = vperm.xlu1 %991, %v692_v61  }
  0x21   :  { %932 = vmatpush3.bf16.msra.mxu1 %v1023_v32  ;;  %965 = vmatprep.subr.bf16.mxu0 %v1030_v37 }
  0x22   :  { %981 = vmatprep.subr.bf16.mxu1 %v1030_v37 }
  0x23   :  { %496 = vmatmul.mubr.bf16.vlgmr.msra.gmra.mrb[0].mxu0 %v1024_v33  ;;  %751 = vperm.xlu0 %990, %v741_v2  }
  0x24   :  { %561 = vmatmul.mubr.bf16.vlgmr.msra.gmra.mrb[0].mxu1 %v1027_v35  ;;  %966 = vmatpush3.bf16.msra.mxu0 %v1030_v37 }
  0x25   :  { %985 = vmatpush3.bf16.msra.mxu1 %v1030_v37  ;;  %503 = vmatprep.mubr.bf16.mxu0 %v1031_v38 }
  0x26   :  { %568 = vmatprep.mubr.bf16.mxu1 %v1033_v39  ;;  %967 = vmatprep.subr.bf16.mxu0 %v1037_v40 }
  0x27   :  { %982 = vmatprep.subr.bf16.mxu1 %v1037_v40  ;;  %756 = vperm.xlu1 %991, %v742_v1  }
  0x28   :  { %968 = vmatpush3.bf16.msra.mxu0 %v1037_v40  ;;  %761 = vperm.xlu0 %990, %v743_v4  }
  0x29   :  { %986 = vmatpush3.bf16.msra.mxu1 %v1037_v40  ;;  %969 = vmatprep.subr.bf16.mxu0 %v1044_v45 }
  0x2a   :  { %983 = vmatprep.subr.bf16.mxu1 %v1044_v45 }
  0x2b   :  { %504 = vmatmul.mubr.bf16.gmra.mrb[4].mxu0 %v1035_v41  ;;  %766 = vperm.xlu1 %991, %v744_v3  }
  0x2c   :  { %569 = vmatmul.mubr.bf16.gmra.mrb[4].mxu1 %v1036_v42  ;;  %511 = vmatprep.mubr.bf16.mxu0 %v1038_v43 }
  0x2d   :  { %576 = vmatprep.mubr.bf16.mxu1 %v1040_v44  ;;  %970 = vmatpush3.bf16.msra.mxu0 %v1044_v45 }
  0x2e   :  { %987 = vmatpush3.bf16.msra.mxu1 %v1044_v45  ;;  %971 = vmatprep.subr.bf16.mxu0 %v1051_v46 }
  0x2f   :  { %984 = vmatprep.subr.bf16.mxu1 %v1051_v46  ;;  %776 = vperm.xlu1 %991, %v746_v5  }
  0x30   :  { %771 = vperm.xlu0 %990, %v745_v6  }
  0x31   :  { %972 = vmatpush3.bf16.msra.mxu0 %v1051_v46 }
  0x32   :  { %988 = vmatpush3.bf16.msra.mxu1 %v1051_v46 }
  0x33   :  { %512 = vmatmul.mubr.bf16.gmra.mrb[8].mxu0 %v1042_v47  ;;  %786 = vperm.xlu1 %991, %v748_v7  }
  0x34   :  { %577 = vmatmul.mubr.bf16.gmra.mrb[8].mxu1 %v1043_v48  ;;  %519 = vmatprep.mubr.bf16.mxu0 %v1045_v49 }
  0x35   :  { %584 = vmatprep.mubr.bf16.mxu1 %v1047_v50  ;;  %781 = vperm.xlu0 %990, %v747_v8  }
  0x3b   :  { %520 = vmatmul.mubr.bf16.gmra.mrb[12].mxu0 %v1049_v55 }
  0x3c   :  { %585 = vmatmul.mubr.bf16.gmra.mrb[12].mxu1 %v1050_v56  ;;  %973 = vmatprep.mubr.msk.bf16.mxu0 %vm450_vm0, %v1052_v57 }
  0x3d   :  { %977 = vmatprep.mubr.msk.bf16.mxu1 %vm450_vm0, %v1053_v59 }
  0x43   :  { %974 = vmatmul.mubr.msk.bf16.vlgmr.msra.gmra.mrb[16].mxu0 %vm450_vm0, %v1054_v63 }
  0x44   :  { %978 = vmatmul.mubr.msk.bf16.vlgmr.msra.gmra.mrb[16].mxu1 %vm450_vm0, %v1055_v0 }
  0x92   :  { %v1304_v10 = vpop.permute.xlu0 %695 }
  0x93   :  { %v1302_v9 = vpop.permute.xlu1 %705 }
  0x96   :  { %v1308_v12 = vpop.permute.xlu0 %700 }
  0x97   :  { %v1306_v11 = vpop.permute.xlu1 %710 }
  0x9a   :  { %v1312_v14 = vpop.permute.xlu0 %715 }
  0x9b   :  { %v1310_v13 = vpop.permute.xlu1 %720 }
  0x9e   :  { %v726_v30 = vpop.permute.xlu0 %725 }
  0x9f   :  { %v1314_v28 = vpop.permute.xlu1 %730 }
  0xa2   :  { %v752_v46 = vpop.permute.xlu0 %751 }
  0xa6   :  { %v1318_v44 = vpop.permute.xlu1 %756 }
  0xa7   :  { %v762_v62 = vpop.permute.xlu0 %761 }
  0xaa   :  { %v767_v60 = vpop.permute.xlu1 %766 }
  0xf6   :  { %v893_v15 = vpop.f32.mrb[0].mxu0 }
  0xf7   :  { %v933_v16 = vpop.f32.mrb[0].mxu1  ;;  %v894_v17 = vpop.f32.mrb[1].mxu0 }
  0xf8   :  { %v895_v18 = vadd.f32 %v894_v17, %v893_v15  ;;  %v934_v19 = vpop.f32.mrb[1].mxu1  ;;  %v896_v20 = vpop.f32.mrb[2].mxu0 }
  0xf9   :  { %v935_v21 = vadd.f32 %v934_v19, %v933_v16  ;;  %v936_v22 = vpop.f32.mrb[2].mxu1  ;;  %v897_v23 = vpop.f32.mrb[3].mxu0 }
  0xfa   :  { %v898_v24 = vadd.f32 %v897_v23, %v896_v20  ;;  %v937_v25 = vpop.f32.mrb[3].mxu1  ;;  %v777_v20 = vpop.permute.xlu1 %776 }
  0xfb   :  { %v938_v26 = vadd.f32 %v937_v25, %v936_v22  ;;  %v563_v27 = vadd.f32 %v935_v21, %v895_v18  ;;  %v772_v18 = vpop.permute.xlu0 %771 }
  0xfd   :  { %v1316_v29 = vadd.f32 %v938_v26, %v898_v24 }
  0xfe   :  { %v899_v31 = vpop.f32.mrb[4].mxu0 }
  0xff   :  { %v939_v32 = vpop.f32.mrb[4].mxu1  ;;  %v900_v33 = vpop.f32.mrb[5].mxu0 }
 0x100   :  { %v901_v34 = vadd.f32 %v900_v33, %v899_v31  ;;  %v940_v35 = vpop.f32.mrb[5].mxu1  ;;  %v902_v36 = vpop.f32.mrb[6].mxu0 }
 0x101   :  { %v941_v37 = vadd.f32 %v940_v35, %v939_v32  ;;  %v942_v38 = vpop.f32.mrb[6].mxu1  ;;  %v903_v39 = vpop.f32.mrb[7].mxu0 }
 0x102   :  { %v904_v40 = vadd.f32 %v903_v39, %v902_v36  ;;  %v943_v41 = vpop.f32.mrb[7].mxu1 }
 0x103   :  { %v944_v42 = vadd.f32 %v943_v41, %v942_v38  ;;  %v571_v43 = vadd.f32 %v941_v37, %v901_v34 }
 0x105   :  { %v574_v45 = vadd.f32 %v944_v42, %v904_v40 }
 0x106   :  { %v905_v47 = vpop.f32.mrb[8].mxu0 }
 0x107   :  { %v945_v48 = vpop.f32.mrb[8].mxu1  ;;  %v906_v49 = vpop.f32.mrb[9].mxu0 }
 0x108   :  { %v907_v50 = vadd.f32 %v906_v49, %v905_v47  ;;  %v946_v51 = vpop.f32.mrb[9].mxu1  ;;  %v908_v52 = vpop.f32.mrb[10].mxu0 }
 0x109   :  { %v947_v53 = vadd.f32 %v946_v51, %v945_v48  ;;  %v948_v54 = vpop.f32.mrb[10].mxu1  ;;  %v909_v55 = vpop.f32.mrb[11].mxu0 }
 0x10a   :  { %v910_v56 = vadd.f32 %v909_v55, %v908_v52  ;;  %v949_v57 = vpop.f32.mrb[11].mxu1 }
 0x10b   :  { %v950_v58 = vadd.f32 %v949_v57, %v948_v54  ;;  %v579_v59 = vadd.f32 %v947_v53, %v907_v50 }
 0x10d   :  { %v582_v61 = vadd.f32 %v950_v58, %v910_v56 }
 0x10e   :  { %v911_v63 = vpop.f32.mrb[12].mxu0 }
 0x10f   :  { %v951_v0 = vpop.f32.mrb[12].mxu1  ;;  %v912_v1 = vpop.f32.mrb[13].mxu0 }
 0x110   :  { %v913_v2 = vadd.f32 %v912_v1, %v911_v63  ;;  %v952_v3 = vpop.f32.mrb[13].mxu1  ;;  %v914_v4 = vpop.f32.mrb[14].mxu0 }
 0x111   :  { %v953_v5 = vadd.f32 %v952_v3, %v951_v0  ;;  %v954_v6 = vpop.f32.mrb[14].mxu1  ;;  %v915_v7 = vpop.f32.mrb[15].mxu0 }
 0x112   :  { %v916_v8 = vadd.f32 %v915_v7, %v914_v4  ;;  %v955_v15 = vpop.f32.mrb[15].mxu1 }
 0x113   :  { %v956_v16 = vadd.f32 %v955_v15, %v954_v6  ;;  %v587_v17 = vadd.f32 %v953_v5, %v913_v2 }
 0x115   :  { %v590_v19 = vadd.f32 %v956_v16, %v916_v8 }
 0x116   :  { %v975_v21 = vpop.f32.mrb[16].mxu0 }
 0x117   :  { %v636_v22 = vadd.f32 %v975_v21, %v571_v43  ;;  %v979_v23 = vpop.f32.mrb[16].mxu1  ;;  %v627_v24 = vpop.f32.mrb[17].mxu0 }
 0x118   :  { %v652_v25 = vadd.f32 %v979_v23, %v587_v17  ;;  %v628_v26 = vadd.f32 %v627_v24, %v563_v27  ;;  %v643_v31 = vpop.f32.mrb[17].mxu1  ;;  %v976_v32 = vpop.f32.mrb[18].mxu0 }
 0x119   :  { %v735_v33 = vmul.f32 %v1302_v9, %v636_v22  ;;  %v644_v34 = vadd.f32 %v643_v31, %v579_v59  ;;  %v639_v35 = vadd.f32 %v976_v32, %v574_v45  ;;  %v980_v36 = vpop.f32.mrb[18].mxu1  ;;  %v630_v37 = vpop.f32.mrb[19].mxu0 }
 0x11a   :  { %v739_v38 = vmul.f32 %v726_v30, %v652_v25  ;;  %v733_v39 = vmul.f32 %v1304_v10, %v628_v26  ;;  %v655_v40 = vadd.f32 %v980_v36, %v590_v19  ;;  %v631_v41 = vadd.f32 %v630_v37, %v1316_v29  ;;  %v646_v42 = vpop.f32.mrb[19].mxu1  ;;  %v782_v43 = vpop.permute.xlu0 %781 }
 0x11b   :  { %v791_v47 = vadd.f32 %v762_v62, %v735_v33  ;;  %v737_v48 = vmul.f32 %v1312_v14, %v644_v34  ;;  %v736_v27 = vmul.f32 %v1306_v11, %v639_v35  ;;  %v647_v49 = vadd.f32 %v646_v42, %v582_v61  ;;  %v787_v30 = vpop.permute.xlu1 %786 }
 0x11c   :  { %v795_v50 = vadd.f32 %v782_v43, %v739_v38  ;;  %v789_v9 = vadd.f32 %v752_v46, %v733_v39  ;;  %v740_v45 = vmul.f32 %v1314_v28, %v655_v40  ;;  %v734_v51 = vmul.f32 %v1308_v12, %v631_v41 }
 0x11d   :  { %v799_v52 = vmax.f32 %v791_v47, 0.0  ;;  %v793_v10 = vadd.f32 %v772_v18, %v737_v48  ;;  %v792_v53 = vadd.f32 %v767_v60, %v736_v27  ;;  %v738_v29 = vmul.f32 %v1310_v13, %v647_v49 }
 0x11e   :  { %v803_v54 = vmax.f32 %v795_v50, 0.0  ;;  %v797_v55 = vmax.f32 %v789_v9, 0.0  ;;  %v796_v56 = vadd.f32 %v787_v30, %v740_v45  ;;  %v790_v14 = vadd.f32 %v1318_v44, %v734_v51 }
 0x11f   :  { %807 = vst [vmem:[%s1357_s4 + $0x10] sm:$0xff] %v799_v52  ;;  %v801_v11 = vmax.f32 %v793_v10, 0.0  ;;  %v800_v46 = vmax.f32 %v792_v53, 0.0  ;;  %v794_v28 = vadd.f32 %v777_v20, %v738_v29 }
 0x120   :  { %811 = vst [vmem:[%s1357_s4 + $0x30] sm:$0xff] %v803_v54  ;;  %805 = vst [vmem:[%s1357_s4] sm:$0xff] %v797_v55  ;;  %v804_v12 = vmax.f32 %v796_v56, 0.0  ;;  %v798_v13 = vmax.f32 %v790_v14, 0.0 }
 0x121   :  { %809 = vst [vmem:[%s1357_s4 + $0x20] sm:$0xff] %v801_v11  ;;  %808 = vst [vmem:[%s1357_s4 + $0x18] sm:$0xff] %v800_v46  ;;  %v802_v44 = vmax.f32 %v794_v28, 0.0 }
 0x122   :  { %812 = vst [vmem:[%s1357_s4 + $0x38] sm:$0xff] %v804_v12  ;;  %806 = vst [vmem:[%s1357_s4 + $0x8] sm:$0xff] %v798_v13 }
 0x123   :  { %810 = vst [vmem:[%s1357_s4 + $0x28] sm:$0xff] %v802_v44 }

</bundles_post_ra>
